<compile_context>
chip_gen: v5e
topology: v5e:2x2
jax: 0.10.0
libtpu: 0.0.40
codegen_flags: <defaults>
</compile_context>

<pallas_src>
import jax
import jax.numpy as jnp
from jax.experimental import pallas as pl
from jax.experimental.pallas import tpu as pltpu

LEN_INPUT = 595
LAYER_DIMS = [LEN_INPUT, 512, 512, 256, 128, 64, 32, 16, 8]
HAS_BN = [False, True, True, True, True, True, False, False]   # bn2..bn6
BN_EPS = 1e-5
K1_PAD = 640     # 595 -> 5*128: aligned K for the first (dominant) matmul
OUT_PAD = 128    # 8 -> 128: lane-dense final store


def _round_up(n, m):
    return ((n + m - 1) // m) * m


# --------------------------------------------------------------------------
# Kernel: whole 8-layer MLP fused, one batch tile per grid step.
# --------------------------------------------------------------------------
def _sharednet_kernel(x_ref, *refs):
    out_ref = refs[-1]
    param_refs = refs[:-1]          # [w1, b1, w2, b2, ..., w8, b8]

    h = x_ref[...]                  # (TB, K1_PAD), incoming activation dtype
    for li in range(len(LAYER_DIMS) - 1):
        w = param_refs[2 * li][...]          # (K, N) bf16, BN pre-folded
        b = param_refs[2 * li + 1][...]      # (1, N) f32
        # bf16 operands feed the MXU at full rate; accumulate in f32, then do
        # the bias-add and ReLU on the f32 accumulator (VPU).
        y = jnp.dot(h.astype(jnp.bfloat16), w,
                    preferred_element_type=jnp.float32) + b
        h = jnp.maximum(y, 0.0)
        # Dropout(0.2): identity in eval-mode forward.

    out_ref[...] = h.astype(out_ref.dtype)


# --------------------------------------------------------------------------
# Wrapper
# --------------------------------------------------------------------------
def sharednet_forward(x, params, *, block_b=512, training=False):
    """x: (B, LEN_INPUT). params: output of prepare_params() (bf16 weights
    with eval-mode BN folded in, f32 biases, K1/out padding applied)."""
    if training:
        # TODO(synk): training-mode Dropout(0.2) / batch-stats BN not implemented.
        raise NotImplementedError("sharednet_forward implements the eval-mode "
                                  "forward only (Dropout/BN use running stats).")
    B, D = x.shape
    assert D == LEN_INPUT

    # Sublane granularity of the activation dtype (8 for f32, 16 for bf16, ...).
    min_b = max(8, 32 // jnp.dtype(x.dtype).itemsize)

    TB = _round_up(min(block_b, _round_up(B, min_b)), min_b)
    Bp = _round_up(B, TB)
    # v7x megacore: the "parallel" batch axis is how work splits across the two
    # TensorCores -- keep >= 2 grid steps whenever the batch allows it.
    if Bp // TB < 2 and Bp > min_b:
        TB = _round_up(pl.cdiv(Bp, 2), min_b)
        Bp = _round_up(B, TB)

    # Pad batch rows and the K dim (595 -> 640) with zeros; W1's padded K rows
    # are zero, so results are unchanged.
    x = jnp.pad(x, ((0, Bp - B), (0, K1_PAD - D)))

    flat_params = [p for wb in params for p in wb]

    flops = 2 * Bp * sum(int(w.shape[0]) * int(w.shape[1]) for w, _ in params)
    bytes_accessed = (
        x.size * x.dtype.itemsize
        + sum(w.size * w.dtype.itemsize + b.size * b.dtype.itemsize
              for w, b in params)
        + Bp * OUT_PAD * 4)
    cost = pl.CostEstimate(flops=flops, transcendentals=0,
                           bytes_accessed=bytes_accessed)

    def _run(single_buffer_params):
        def param_spec(shape):
            # Constant index_map: fetched once, VMEM-resident across all grid
            # steps. Single-buffering halves the resident parameter footprint.
            if single_buffer_params:
                return pl.BlockSpec(shape, lambda i: (0, 0),
                                    pipeline_mode=pl.Buffered(1))
            return pl.BlockSpec(shape, lambda i: (0, 0))

        in_specs = [pl.BlockSpec((TB, K1_PAD), lambda i: (i, 0))]
        in_specs += [param_spec(p.shape) for p in flat_params]

        out = pl.pallas_call(
            _sharednet_kernel,
            out_shape=jax.ShapeDtypeStruct((Bp, OUT_PAD), jnp.float32),
            grid=(Bp // TB,),
            in_specs=in_specs,
            out_specs=pl.BlockSpec((TB, OUT_PAD), lambda i: (i, 0)),
            compiler_params=pltpu.CompilerParams(
                dimension_semantics=("parallel",),       # megacore split (v7x)
                vmem_limit_bytes=32 * 1024 * 1024,
            ),
            cost_estimate=cost,
        )(x, *flat_params)
        return jax.block_until_ready(out)

    try:
        out = _run(True)
    except Exception:
        # pl.Buffered(1) params not supported by this JAX/Mosaic build -> fall
        # back to default double-buffering (~1.5 MB extra VMEM; still tiny).
        out = _run(False)

    return out[:B, :LAYER_DIMS[-1]]


# --------------------------------------------------------------------------
# Parameter construction, BN folding / bf16 prep, pure-JAX references
# --------------------------------------------------------------------------
def init_params(key):
    """Per layer: (W[in,out], b[out], bn) where bn = (gamma, beta, mean, var)
    for layers with BatchNorm, else None."""
    layers = []
    for li in range(len(LAYER_DIMS) - 1):
        fan_in, fan_out = LAYER_DIMS[li], LAYER_DIMS[li + 1]
        key, kw, kb, kg, kbe, km, kv = jax.random.split(key, 7)
        bound = fan_in ** -0.5
        w = jax.random.uniform(kw, (fan_in, fan_out), jnp.float32, -bound, bound)
        b = jax.random.uniform(kb, (fan_out,), jnp.float32, -bound, bound)
        if HAS_BN[li]:
            gamma = jax.random.uniform(kg, (fan_out,), jnp.float32, 0.5, 1.5)
            beta = 0.1 * jax.random.normal(kbe, (fan_out,), jnp.float32)
            mean = 0.1 * jax.random.normal(km, (fan_out,), jnp.float32)
            var = jax.random.uniform(kv, (fan_out,), jnp.float32, 0.5, 1.5)
            bn = (gamma, beta, mean, var)
        else:
            bn = None
        layers.append((w, b, bn))
    return layers


def prepare_params(layers):
    """Fold eval-mode BN into the preceding Linear (in f32), pad W1's K dim to
    640 and the last layer's N dim to 128 with zeros, then cast weights to
    bf16 (biases stay f32)."""
    prepared = []
    n_layers = len(layers)
    for li, (w, b, bn) in enumerate(layers):
        w = w.astype(jnp.float32)
        b = b.astype(jnp.float32)
        if bn is not None:
            gamma, beta, mean, var = bn
            scale = gamma / jnp.sqrt(var + BN_EPS)
            w = w * scale[None, :]
            b = (b - mean) * scale + beta
        if li == 0:
            w = jnp.pad(w, ((0, K1_PAD - w.shape[0]), (0, 0)))
        if li == n_layers - 1:
            w = jnp.pad(w, ((0, 0), (0, OUT_PAD - w.shape[1])))
            b = jnp.pad(b, (0, OUT_PAD - b.shape[0]))
        prepared.append((w.astype(jnp.bfloat16), b.reshape(1, -1)))
    return prepared


def _reference(x, layers):
    """Pure-JAX f32 (HIGHEST precision) eval-mode forward mirroring SharedNet."""
    h = x.astype(jnp.float32)
    for w, b, bn in layers:
        h = jnp.dot(h, w, precision=jax.lax.Precision.HIGHEST) + b
        if bn is not None:
            gamma, beta, mean, var = bn
            h = (h - mean) / jnp.sqrt(var + BN_EPS) * gamma + beta
        h = jnp.maximum(h, 0.0)          # ReLU; Dropout is identity in eval
    return h


def _reference_matched(x, prepared):
    """Plain-JAX replica of the exact kernel math (bf16 operands, f32 accum)."""
    h = jnp.pad(x, ((0, 0), (0, K1_PAD - x.shape[1]))).astype(jnp.float32)
    for w, b in prepared:
        h = jnp.maximum(
            jnp.dot(h.astype(jnp.bfloat16), w,
                    preferred_element_type=jnp.float32) + b, 0.0)
    return h[:, :LAYER_DIMS[-1]]


# --------------------------------------------------------------------------
if __name__ == "__main__":
    key = jax.random.PRNGKey(0)
    kx, kp = jax.random.split(key)

    B = 8
    x = jax.random.normal(kx, (B, LEN_INPUT), jnp.float32)

    layers = init_params(kp)
    prepared = prepare_params(layers)

    out = jax.block_until_ready(sharednet_forward(x, prepared))
    assert out.shape == (B, LAYER_DIMS[-1]), out.shape

    # Kernel vs. an exactly-matched (bf16-operand, f32-accum) JAX reference.
    ref_matched = _reference_matched(x, prepared)
    assert jnp.allclose(out, ref_matched, rtol=1e-3, atol=1e-3), (
        "kernel vs matched-precision ref, max abs diff",
        float(jnp.max(jnp.abs(out - ref_matched))))

    # Kernel vs. the full-f32 module semantics (looser: bf16 MXU operands).
    ref_exact = _reference(x, layers)
    assert jnp.allclose(out, ref_exact, rtol=3e-2, atol=3e-2), (
        "kernel vs f32 module ref, max abs diff",
        float(jnp.max(jnp.abs(out - ref_exact))))

    print("KERNEL_OK")
</pallas_src>

<mosaic_0001>
module attributes {stable_mosaic.version = 11 : i64} {
  func.func @_sharednet_kernel(%arg0: i32, %arg1: memref<8x640xf32, #tpu.memory_space<vmem>>, %arg2: memref<640x512xbf16, #tpu.memory_space<vmem>>, %arg3: memref<1x512xf32, #tpu.memory_space<vmem>>, %arg4: memref<512x512xbf16, #tpu.memory_space<vmem>>, %arg5: memref<1x512xf32, #tpu.memory_space<vmem>>, %arg6: memref<512x256xbf16, #tpu.memory_space<vmem>>, %arg7: memref<1x256xf32, #tpu.memory_space<vmem>>, %arg8: memref<256x128xbf16, #tpu.memory_space<vmem>>, %arg9: memref<1x128xf32, #tpu.memory_space<vmem>>, %arg10: memref<128x64xbf16, #tpu.memory_space<vmem>>, %arg11: memref<1x64xf32, #tpu.memory_space<vmem>>, %arg12: memref<64x32xbf16, #tpu.memory_space<vmem>>, %arg13: memref<1x32xf32, #tpu.memory_space<vmem>>, %arg14: memref<32x16xbf16, #tpu.memory_space<vmem>>, %arg15: memref<1x16xf32, #tpu.memory_space<vmem>>, %arg16: memref<16x128xbf16, #tpu.memory_space<vmem>>, %arg17: memref<1x128xf32, #tpu.memory_space<vmem>>, %arg18: memref<8x128xf32, #tpu.memory_space<vmem>>) attributes {dimension_semantics = [#tpu.dimension_semantics<parallel>], iteration_bounds = array<i64: 1>, scalar_prefetch = 0 : i64, scratch_operands = 0 : i64, tpu.core_type = #tpu.core_type<tc>, window_params = [{transform_indices = @transform_0, window_bounds = array<i64: 8, 640>}, {pipeline_mode = #tpu.pipeline_mode<synchronous>, transform_indices = @transform_1, window_bounds = array<i64: 640, 512>}, {pipeline_mode = #tpu.pipeline_mode<synchronous>, transform_indices = @transform_2, window_bounds = array<i64: 1, 512>}, {pipeline_mode = #tpu.pipeline_mode<synchronous>, transform_indices = @transform_3, window_bounds = array<i64: 512, 512>}, {pipeline_mode = #tpu.pipeline_mode<synchronous>, transform_indices = @transform_4, window_bounds = array<i64: 1, 512>}, {pipeline_mode = #tpu.pipeline_mode<synchronous>, transform_indices = @transform_5, window_bounds = array<i64: 512, 256>}, {pipeline_mode = #tpu.pipeline_mode<synchronous>, transform_indices = @transform_6, window_bounds = array<i64: 1, 256>}, {pipeline_mode = #tpu.pipeline_mode<synchronous>, transform_indices = @transform_7, window_bounds = array<i64: 256, 128>}, {pipeline_mode = #tpu.pipeline_mode<synchronous>, transform_indices = @transform_8, window_bounds = array<i64: 1, 128>}, {pipeline_mode = #tpu.pipeline_mode<synchronous>, transform_indices = @transform_9, window_bounds = array<i64: 128, 64>}, {pipeline_mode = #tpu.pipeline_mode<synchronous>, transform_indices = @transform_10, window_bounds = array<i64: 1, 64>}, {pipeline_mode = #tpu.pipeline_mode<synchronous>, transform_indices = @transform_11, window_bounds = array<i64: 64, 32>}, {pipeline_mode = #tpu.pipeline_mode<synchronous>, transform_indices = @transform_12, window_bounds = array<i64: 1, 32>}, {pipeline_mode = #tpu.pipeline_mode<synchronous>, transform_indices = @transform_13, window_bounds = array<i64: 32, 16>}, {pipeline_mode = #tpu.pipeline_mode<synchronous>, transform_indices = @transform_14, window_bounds = array<i64: 1, 16>}, {pipeline_mode = #tpu.pipeline_mode<synchronous>, transform_indices = @transform_15, window_bounds = array<i64: 16, 128>}, {pipeline_mode = #tpu.pipeline_mode<synchronous>, transform_indices = @transform_16, window_bounds = array<i64: 1, 128>}, {transform_indices = @transform_17, window_bounds = array<i64: 8, 128>}]} {
    %c0 = arith.constant 0 : index
    %c0_0 = arith.constant 0 : index
    %0 = vector.load %arg1[%c0, %c0_0] : memref<8x640xf32, #tpu.memory_space<vmem>>, vector<8x640xf32>
    %c0_1 = arith.constant 0 : index
    %c0_2 = arith.constant 0 : index
    %1 = vector.load %arg2[%c0_1, %c0_2] : memref<640x512xbf16, #tpu.memory_space<vmem>>, vector<640x512xbf16>
    %c0_3 = arith.constant 0 : index
    %c0_4 = arith.constant 0 : index
    %2 = vector.load %arg3[%c0_3, %c0_4] : memref<1x512xf32, #tpu.memory_space<vmem>>, vector<1x512xf32>
    %3 = arith.truncf %0 : vector<8x640xf32> to vector<8x640xbf16>
    %cst = arith.constant dense<0.000000e+00> : vector<8x512xf32>
    %4 = tpu.matmul %3, %1, %cst {dimension_numbers = #tpu.dot_dimension_numbers<[1], [0], [0], [1], [0, 0, 1, 1], [], []>} : vector<8x640xbf16>, vector<640x512xbf16>, vector<8x512xf32> -> vector<8x512xf32>
    %5 = vector.broadcast %2 : vector<1x512xf32> to vector<8x512xf32>
    %6 = arith.addf %4, %5 : vector<8x512xf32>
    %cst_5 = arith.constant 0.000000e+00 : f32
    %7 = vector.broadcast %cst_5 : f32 to vector<8x512xf32>
    %8 = arith.maximumf %6, %7 : vector<8x512xf32>
    %c0_6 = arith.constant 0 : index
    %c0_7 = arith.constant 0 : index
    %9 = vector.load %arg4[%c0_6, %c0_7] : memref<512x512xbf16, #tpu.memory_space<vmem>>, vector<512x512xbf16>
    %c0_8 = arith.constant 0 : index
    %c0_9 = arith.constant 0 : index
    %10 = vector.load %arg5[%c0_8, %c0_9] : memref<1x512xf32, #tpu.memory_space<vmem>>, vector<1x512xf32>
    %11 = arith.truncf %8 : vector<8x512xf32> to vector<8x512xbf16>
    %cst_10 = arith.constant dense<0.000000e+00> : vector<8x512xf32>
    %12 = tpu.matmul %11, %9, %cst_10 {dimension_numbers = #tpu.dot_dimension_numbers<[1], [0], [0], [1], [0, 0, 1, 1], [], []>} : vector<8x512xbf16>, vector<512x512xbf16>, vector<8x512xf32> -> vector<8x512xf32>
    %13 = vector.broadcast %10 : vector<1x512xf32> to vector<8x512xf32>
    %14 = arith.addf %12, %13 : vector<8x512xf32>
    %cst_11 = arith.constant 0.000000e+00 : f32
    %15 = vector.broadcast %cst_11 : f32 to vector<8x512xf32>
    %16 = arith.maximumf %14, %15 : vector<8x512xf32>
    %c0_12 = arith.constant 0 : index
    %c0_13 = arith.constant 0 : index
    %17 = vector.load %arg6[%c0_12, %c0_13] : memref<512x256xbf16, #tpu.memory_space<vmem>>, vector<512x256xbf16>
    %c0_14 = arith.constant 0 : index
    %c0_15 = arith.constant 0 : index
    %18 = vector.load %arg7[%c0_14, %c0_15] : memref<1x256xf32, #tpu.memory_space<vmem>>, vector<1x256xf32>
    %19 = arith.truncf %16 : vector<8x512xf32> to vector<8x512xbf16>
    %cst_16 = arith.constant dense<0.000000e+00> : vector<8x256xf32>
    %20 = tpu.matmul %19, %17, %cst_16 {dimension_numbers = #tpu.dot_dimension_numbers<[1], [0], [0], [1], [0, 0, 1, 1], [], []>} : vector<8x512xbf16>, vector<512x256xbf16>, vector<8x256xf32> -> vector<8x256xf32>
    %21 = vector.broadcast %18 : vector<1x256xf32> to vector<8x256xf32>
    %22 = arith.addf %20, %21 : vector<8x256xf32>
    %cst_17 = arith.constant 0.000000e+00 : f32
    %23 = vector.broadcast %cst_17 : f32 to vector<8x256xf32>
    %24 = arith.maximumf %22, %23 : vector<8x256xf32>
    %c0_18 = arith.constant 0 : index
    %c0_19 = arith.constant 0 : index
    %25 = vector.load %arg8[%c0_18, %c0_19] : memref<256x128xbf16, #tpu.memory_space<vmem>>, vector<256x128xbf16>
    %c0_20 = arith.constant 0 : index
    %c0_21 = arith.constant 0 : index
    %26 = vector.load %arg9[%c0_20, %c0_21] : memref<1x128xf32, #tpu.memory_space<vmem>>, vector<1x128xf32>
    %27 = arith.truncf %24 : vector<8x256xf32> to vector<8x256xbf16>
    %cst_22 = arith.constant dense<0.000000e+00> : vector<8x128xf32>
    %28 = tpu.matmul %27, %25, %cst_22 {dimension_numbers = #tpu.dot_dimension_numbers<[1], [0], [0], [1], [0, 0, 1, 1], [], []>} : vector<8x256xbf16>, vector<256x128xbf16>, vector<8x128xf32> -> vector<8x128xf32>
    %29 = vector.broadcast %26 : vector<1x128xf32> to vector<8x128xf32>
    %30 = arith.addf %28, %29 : vector<8x128xf32>
    %cst_23 = arith.constant 0.000000e+00 : f32
    %31 = vector.broadcast %cst_23 : f32 to vector<8x128xf32>
    %32 = arith.maximumf %30, %31 : vector<8x128xf32>
    %c0_24 = arith.constant 0 : index
    %c0_25 = arith.constant 0 : index
    %33 = vector.load %arg10[%c0_24, %c0_25] : memref<128x64xbf16, #tpu.memory_space<vmem>>, vector<128x64xbf16>
    %c0_26 = arith.constant 0 : index
    %c0_27 = arith.constant 0 : index
    %34 = vector.load %arg11[%c0_26, %c0_27] : memref<1x64xf32, #tpu.memory_space<vmem>>, vector<1x64xf32>
    %35 = arith.truncf %32 : vector<8x128xf32> to vector<8x128xbf16>
    %cst_28 = arith.constant dense<0.000000e+00> : vector<8x64xf32>
    %36 = tpu.matmul %35, %33, %cst_28 {dimension_numbers = #tpu.dot_dimension_numbers<[1], [0], [0], [1], [0, 0, 1, 1], [], []>} : vector<8x128xbf16>, vector<128x64xbf16>, vector<8x64xf32> -> vector<8x64xf32>
    %37 = vector.broadcast %34 : vector<1x64xf32> to vector<8x64xf32>
    %38 = arith.addf %36, %37 : vector<8x64xf32>
    %cst_29 = arith.constant 0.000000e+00 : f32
    %39 = vector.broadcast %cst_29 : f32 to vector<8x64xf32>
    %40 = arith.maximumf %38, %39 : vector<8x64xf32>
    %c0_30 = arith.constant 0 : index
    %c0_31 = arith.constant 0 : index
    %41 = vector.load %arg12[%c0_30, %c0_31] : memref<64x32xbf16, #tpu.memory_space<vmem>>, vector<64x32xbf16>
    %c0_32 = arith.constant 0 : index
    %c0_33 = arith.constant 0 : index
    %42 = vector.load %arg13[%c0_32, %c0_33] : memref<1x32xf32, #tpu.memory_space<vmem>>, vector<1x32xf32>
    %43 = arith.truncf %40 : vector<8x64xf32> to vector<8x64xbf16>
    %cst_34 = arith.constant dense<0.000000e+00> : vector<8x32xf32>
    %44 = tpu.matmul %43, %41, %cst_34 {dimension_numbers = #tpu.dot_dimension_numbers<[1], [0], [0], [1], [0, 0, 1, 1], [], []>} : vector<8x64xbf16>, vector<64x32xbf16>, vector<8x32xf32> -> vector<8x32xf32>
    %45 = vector.broadcast %42 : vector<1x32xf32> to vector<8x32xf32>
    %46 = arith.addf %44, %45 : vector<8x32xf32>
    %cst_35 = arith.constant 0.000000e+00 : f32
    %47 = vector.broadcast %cst_35 : f32 to vector<8x32xf32>
    %48 = arith.maximumf %46, %47 : vector<8x32xf32>
    %c0_36 = arith.constant 0 : index
    %c0_37 = arith.constant 0 : index
    %49 = vector.load %arg14[%c0_36, %c0_37] : memref<32x16xbf16, #tpu.memory_space<vmem>>, vector<32x16xbf16>
    %c0_38 = arith.constant 0 : index
    %c0_39 = arith.constant 0 : index
    %50 = vector.load %arg15[%c0_38, %c0_39] : memref<1x16xf32, #tpu.memory_space<vmem>>, vector<1x16xf32>
    %51 = arith.truncf %48 : vector<8x32xf32> to vector<8x32xbf16>
    %cst_40 = arith.constant dense<0.000000e+00> : vector<8x16xf32>
    %52 = tpu.matmul %51, %49, %cst_40 {dimension_numbers = #tpu.dot_dimension_numbers<[1], [0], [0], [1], [0, 0, 1, 1], [], []>} : vector<8x32xbf16>, vector<32x16xbf16>, vector<8x16xf32> -> vector<8x16xf32>
    %53 = vector.broadcast %50 : vector<1x16xf32> to vector<8x16xf32>
    %54 = arith.addf %52, %53 : vector<8x16xf32>
    %cst_41 = arith.constant 0.000000e+00 : f32
    %55 = vector.broadcast %cst_41 : f32 to vector<8x16xf32>
    %56 = arith.maximumf %54, %55 : vector<8x16xf32>
    %c0_42 = arith.constant 0 : index
    %c0_43 = arith.constant 0 : index
    %57 = vector.load %arg16[%c0_42, %c0_43] : memref<16x128xbf16, #tpu.memory_space<vmem>>, vector<16x128xbf16>
    %c0_44 = arith.constant 0 : index
    %c0_45 = arith.constant 0 : index
    %58 = vector.load %arg17[%c0_44, %c0_45] : memref<1x128xf32, #tpu.memory_space<vmem>>, vector<1x128xf32>
    %59 = arith.truncf %56 : vector<8x16xf32> to vector<8x16xbf16>
    %cst_46 = arith.constant dense<0.000000e+00> : vector<8x128xf32>
    %60 = tpu.matmul %59, %57, %cst_46 {dimension_numbers = #tpu.dot_dimension_numbers<[1], [0], [0], [1], [0, 0, 1, 1], [], []>} : vector<8x16xbf16>, vector<16x128xbf16>, vector<8x128xf32> -> vector<8x128xf32>
    %61 = vector.broadcast %58 : vector<1x128xf32> to vector<8x128xf32>
    %62 = arith.addf %60, %61 : vector<8x128xf32>
    %cst_47 = arith.constant 0.000000e+00 : f32
    %63 = vector.broadcast %cst_47 : f32 to vector<8x128xf32>
    %64 = arith.maximumf %62, %63 : vector<8x128xf32>
    %c0_48 = arith.constant 0 : index
    %c0_49 = arith.constant 0 : index
    %65 = vector.load %arg18[%c0_48, %c0_49] : memref<8x128xf32, #tpu.memory_space<vmem>>, vector<8x128xf32>
    tpu.vector_store %arg18[%c0_48, %c0_49], %64 {strides = array<i32>} : memref<8x128xf32, #tpu.memory_space<vmem>>, vector<8x128xf32>,
    return
  }
  func.func @transform_0(%arg0: i32) -> (i32, i32) {
    %c0_i32 = arith.constant 0 : i32
    %c0_i32_0 = arith.constant 0 : i32
    return %arg0, %c0_i32 : i32, i32
  }
  func.func @transform_1(%arg0: i32) -> (i32, i32) {
    %c0_i32 = arith.constant 0 : i32
    %c0_i32_0 = arith.constant 0 : i32
    %c0_i32_1 = arith.constant 0 : i32
    return %c0_i32, %c0_i32_0 : i32, i32
  }
  func.func @transform_2(%arg0: i32) -> (i32, i32) {
    %c0_i32 = arith.constant 0 : i32
    %c0_i32_0 = arith.constant 0 : i32
    %c0_i32_1 = arith.constant 0 : i32
    return %c0_i32, %c0_i32_0 : i32, i32
  }
  func.func @transform_3(%arg0: i32) -> (i32, i32) {
    %c0_i32 = arith.constant 0 : i32
    %c0_i32_0 = arith.constant 0 : i32
    %c0_i32_1 = arith.constant 0 : i32
    return %c0_i32, %c0_i32_0 : i32, i32
  }
  func.func @transform_4(%arg0: i32) -> (i32, i32) {
    %c0_i32 = arith.constant 0 : i32
    %c0_i32_0 = arith.constant 0 : i32
    %c0_i32_1 = arith.constant 0 : i32
    return %c0_i32, %c0_i32_0 : i32, i32
  }
  func.func @transform_5(%arg0: i32) -> (i32, i32) {
    %c0_i32 = arith.constant 0 : i32
    %c0_i32_0 = arith.constant 0 : i32
    %c0_i32_1 = arith.constant 0 : i32
    return %c0_i32, %c0_i32_0 : i32, i32
  }
  func.func @transform_6(%arg0: i32) -> (i32, i32) {
    %c0_i32 = arith.constant 0 : i32
    %c0_i32_0 = arith.constant 0 : i32
    %c0_i32_1 = arith.constant 0 : i32
    return %c0_i32, %c0_i32_0 : i32, i32
  }
  func.func @transform_7(%arg0: i32) -> (i32, i32) {
    %c0_i32 = arith.constant 0 : i32
    %c0_i32_0 = arith.constant 0 : i32
    %c0_i32_1 = arith.constant 0 : i32
    return %c0_i32, %c0_i32_0 : i32, i32
  }
  func.func @transform_8(%arg0: i32) -> (i32, i32) {
    %c0_i32 = arith.constant 0 : i32
    %c0_i32_0 = arith.constant 0 : i32
    %c0_i32_1 = arith.constant 0 : i32
    return %c0_i32, %c0_i32_0 : i32, i32
  }
  func.func @transform_9(%arg0: i32) -> (i32, i32) {
    %c0_i32 = arith.constant 0 : i32
    %c0_i32_0 = arith.constant 0 : i32
    %c0_i32_1 = arith.constant 0 : i32
    return %c0_i32, %c0_i32_0 : i32, i32
  }
  func.func @transform_10(%arg0: i32) -> (i32, i32) {
    %c0_i32 = arith.constant 0 : i32
    %c0_i32_0 = arith.constant 0 : i32
    %c0_i32_1 = arith.constant 0 : i32
    return %c0_i32, %c0_i32_0 : i32, i32
  }
  func.func @transform_11(%arg0: i32) -> (i32, i32) {
    %c0_i32 = arith.constant 0 : i32
    %c0_i32_0 = arith.constant 0 : i32
    %c0_i32_1 = arith.constant 0 : i32
    return %c0_i32, %c0_i32_0 : i32, i32
  }
  func.func @transform_12(%arg0: i32) -> (i32, i32) {
    %c0_i32 = arith.constant 0 : i32
    %c0_i32_0 = arith.constant 0 : i32
    %c0_i32_1 = arith.constant 0 : i32
    return %c0_i32, %c0_i32_0 : i32, i32
  }
  func.func @transform_13(%arg0: i32) -> (i32, i32) {
    %c0_i32 = arith.constant 0 : i32
    %c0_i32_0 = arith.constant 0 : i32
    %c0_i32_1 = arith.constant 0 : i32
    return %c0_i32, %c0_i32_0 : i32, i32
  }
  func.func @transform_14(%arg0: i32) -> (i32, i32) {
    %c0_i32 = arith.constant 0 : i32
    %c0_i32_0 = arith.constant 0 : i32
    %c0_i32_1 = arith.constant 0 : i32
    return %c0_i32, %c0_i32_0 : i32, i32
  }
  func.func @transform_15(%arg0: i32) -> (i32, i32) {
    %c0_i32 = arith.constant 0 : i32
    %c0_i32_0 = arith.constant 0 : i32
    %c0_i32_1 = arith.constant 0 : i32
    return %c0_i32, %c0_i32_0 : i32, i32
  }
  func.func @transform_16(%arg0: i32) -> (i32, i32) {
    %c0_i32 = arith.constant 0 : i32
    %c0_i32_0 = arith.constant 0 : i32
    %c0_i32_1 = arith.constant 0 : i32
    return %c0_i32, %c0_i32_0 : i32, i32
  }
  func.func @transform_17(%arg0: i32) -> (i32, i32) {
    %c0_i32 = arith.constant 0 : i32
    %c0_i32_0 = arith.constant 0 : i32
    return %arg0, %c0_i32 : i32, i32
  }
}

module attributes {stable_mosaic.version = 11 : i64} {
  func.func @_sharednet_kernel(%arg0: i32, %arg1: memref<8x640xf32, #tpu.memory_space<vmem>>, %arg2: memref<640x512xbf16, #tpu.memory_space<vmem>>, %arg3: memref<1x512xf32, #tpu.memory_space<vmem>>, %arg4: memref<512x512xbf16, #tpu.memory_space<vmem>>, %arg5: memref<1x512xf32, #tpu.memory_space<vmem>>, %arg6: memref<512x256xbf16, #tpu.memory_space<vmem>>, %arg7: memref<1x256xf32, #tpu.memory_space<vmem>>, %arg8: memref<256x128xbf16, #tpu.memory_space<vmem>>, %arg9: memref<1x128xf32, #tpu.memory_space<vmem>>, %arg10: memref<128x64xbf16, #tpu.memory_space<vmem>>, %arg11: memref<1x64xf32, #tpu.memory_space<vmem>>, %arg12: memref<64x32xbf16, #tpu.memory_space<vmem>>, %arg13: memref<1x32xf32, #tpu.memory_space<vmem>>, %arg14: memref<32x16xbf16, #tpu.memory_space<vmem>>, %arg15: memref<1x16xf32, #tpu.memory_space<vmem>>, %arg16: memref<16x128xbf16, #tpu.memory_space<vmem>>, %arg17: memref<1x128xf32, #tpu.memory_space<vmem>>, %arg18: memref<8x128xf32, #tpu.memory_space<vmem>>) attributes {dimension_semantics = [#tpu.dimension_semantics<parallel>], iteration_bounds = array<i64: 1>, scalar_prefetch = 0 : i64, scratch_operands = 0 : i64, tpu.core_type = #tpu.core_type<tc>, window_params = [{transform_indices = @transform_0, window_bounds = array<i64: 8, 640>}, {pipeline_mode = #tpu.pipeline_mode<synchronous>, transform_indices = @transform_1, window_bounds = array<i64: 640, 512>}, {pipeline_mode = #tpu.pipeline_mode<synchronous>, transform_indices = @transform_2, window_bounds = array<i64: 1, 512>}, {pipeline_mode = #tpu.pipeline_mode<synchronous>, transform_indices = @transform_3, window_bounds = array<i64: 512, 512>}, {pipeline_mode = #tpu.pipeline_mode<synchronous>, transform_indices = @transform_4, window_bounds = array<i64: 1, 512>}, {pipeline_mode = #tpu.pipeline_mode<synchronous>, transform_indices = @transform_5, window_bounds = array<i64: 512, 256>}, {pipeline_mode = #tpu.pipeline_mode<synchronous>, transform_indices = @transform_6, window_bounds = array<i64: 1, 256>}, {pipeline_mode = #tpu.pipeline_mode<synchronous>, transform_indices = @transform_7, window_bounds = array<i64: 256, 128>}, {pipeline_mode = #tpu.pipeline_mode<synchronous>, transform_indices = @transform_8, window_bounds = array<i64: 1, 128>}, {pipeline_mode = #tpu.pipeline_mode<synchronous>, transform_indices = @transform_9, window_bounds = array<i64: 128, 64>}, {pipeline_mode = #tpu.pipeline_mode<synchronous>, transform_indices = @transform_10, window_bounds = array<i64: 1, 64>}, {pipeline_mode = #tpu.pipeline_mode<synchronous>, transform_indices = @transform_11, window_bounds = array<i64: 64, 32>}, {pipeline_mode = #tpu.pipeline_mode<synchronous>, transform_indices = @transform_12, window_bounds = array<i64: 1, 32>}, {pipeline_mode = #tpu.pipeline_mode<synchronous>, transform_indices = @transform_13, window_bounds = array<i64: 32, 16>}, {pipeline_mode = #tpu.pipeline_mode<synchronous>, transform_indices = @transform_14, window_bounds = array<i64: 1, 16>}, {pipeline_mode = #tpu.pipeline_mode<synchronous>, transform_indices = @transform_15, window_bounds = array<i64: 16, 128>}, {pipeline_mode = #tpu.pipeline_mode<synchronous>, transform_indices = @transform_16, window_bounds = array<i64: 1, 128>}, {transform_indices = @transform_17, window_bounds = array<i64: 8, 128>}]} {
    %c0 = arith.constant 0 : index
    %c0_0 = arith.constant 0 : index
    %0 = vector.load %arg1[%c0, %c0_0] : memref<8x640xf32, #tpu.memory_space<vmem>>, vector<8x640xf32>
    %c0_1 = arith.constant 0 : index
    %c0_2 = arith.constant 0 : index
    %1 = vector.load %arg2[%c0_1, %c0_2] : memref<640x512xbf16, #tpu.memory_space<vmem>>, vector<640x512xbf16>
    %c0_3 = arith.constant 0 : index
    %c0_4 = arith.constant 0 : index
    %2 = vector.load %arg3[%c0_3, %c0_4] : memref<1x512xf32, #tpu.memory_space<vmem>>, vector<1x512xf32>
    %3 = arith.truncf %0 : vector<8x640xf32> to vector<8x640xbf16>
    %cst = arith.constant dense<0.000000e+00> : vector<8x512xf32>
    %4 = tpu.matmul %3, %1, %cst {dimension_numbers = #tpu.dot_dimension_numbers<[1], [0], [0], [1], [0, 0, 1, 1], [], []>} : vector<8x640xbf16>, vector<640x512xbf16>, vector<8x512xf32> -> vector<8x512xf32>
    %5 = vector.broadcast %2 : vector<1x512xf32> to vector<8x512xf32>
    %6 = arith.addf %4, %5 : vector<8x512xf32>
    %cst_5 = arith.constant 0.000000e+00 : f32
    %7 = vector.broadcast %cst_5 : f32 to vector<8x512xf32>
    %8 = arith.maximumf %6, %7 : vector<8x512xf32>
    %c0_6 = arith.constant 0 : index
    %c0_7 = arith.constant 0 : index
    %9 = vector.load %arg4[%c0_6, %c0_7] : memref<512x512xbf16, #tpu.memory_space<vmem>>, vector<512x512xbf16>
    %c0_8 = arith.constant 0 : index
    %c0_9 = arith.constant 0 : index
    %10 = vector.load %arg5[%c0_8, %c0_9] : memref<1x512xf32, #tpu.memory_space<vmem>>, vector<1x512xf32>
    %11 = arith.truncf %8 : vector<8x512xf32> to vector<8x512xbf16>
    %cst_10 = arith.constant dense<0.000000e+00> : vector<8x512xf32>
    %12 = tpu.matmul %11, %9, %cst_10 {dimension_numbers = #tpu.dot_dimension_numbers<[1], [0], [0], [1], [0, 0, 1, 1], [], []>} : vector<8x512xbf16>, vector<512x512xbf16>, vector<8x512xf32> -> vector<8x512xf32>
    %13 = vector.broadcast %10 : vector<1x512xf32> to vector<8x512xf32>
    %14 = arith.addf %12, %13 : vector<8x512xf32>
    %cst_11 = arith.constant 0.000000e+00 : f32
    %15 = vector.broadcast %cst_11 : f32 to vector<8x512xf32>
    %16 = arith.maximumf %14, %15 : vector<8x512xf32>
    %c0_12 = arith.constant 0 : index
    %c0_13 = arith.constant 0 : index
    %17 = vector.load %arg6[%c0_12, %c0_13] : memref<512x256xbf16, #tpu.memory_space<vmem>>, vector<512x256xbf16>
    %c0_14 = arith.constant 0 : index
    %c0_15 = arith.constant 0 : index
    %18 = vector.load %arg7[%c0_14, %c0_15] : memref<1x256xf32, #tpu.memory_space<vmem>>, vector<1x256xf32>
    %19 = arith.truncf %16 : vector<8x512xf32> to vector<8x512xbf16>
    %cst_16 = arith.constant dense<0.000000e+00> : vector<8x256xf32>
    %20 = tpu.matmul %19, %17, %cst_16 {dimension_numbers = #tpu.dot_dimension_numbers<[1], [0], [0], [1], [0, 0, 1, 1], [], []>} : vector<8x512xbf16>, vector<512x256xbf16>, vector<8x256xf32> -> vector<8x256xf32>
    %21 = vector.broadcast %18 : vector<1x256xf32> to vector<8x256xf32>
    %22 = arith.addf %20, %21 : vector<8x256xf32>
    %cst_17 = arith.constant 0.000000e+00 : f32
    %23 = vector.broadcast %cst_17 : f32 to vector<8x256xf32>
    %24 = arith.maximumf %22, %23 : vector<8x256xf32>
    %c0_18 = arith.constant 0 : index
    %c0_19 = arith.constant 0 : index
    %25 = vector.load %arg8[%c0_18, %c0_19] : memref<256x128xbf16, #tpu.memory_space<vmem>>, vector<256x128xbf16>
    %c0_20 = arith.constant 0 : index
    %c0_21 = arith.constant 0 : index
    %26 = vector.load %arg9[%c0_20, %c0_21] : memref<1x128xf32, #tpu.memory_space<vmem>>, vector<1x128xf32>
    %27 = arith.truncf %24 : vector<8x256xf32> to vector<8x256xbf16>
    %cst_22 = arith.constant dense<0.000000e+00> : vector<8x128xf32>
    %28 = tpu.matmul %27, %25, %cst_22 {dimension_numbers = #tpu.dot_dimension_numbers<[1], [0], [0], [1], [0, 0, 1, 1], [], []>} : vector<8x256xbf16>, vector<256x128xbf16>, vector<8x128xf32> -> vector<8x128xf32>
    %29 = vector.broadcast %26 : vector<1x128xf32> to vector<8x128xf32>
    %30 = arith.addf %28, %29 : vector<8x128xf32>
    %cst_23 = arith.constant 0.000000e+00 : f32
    %31 = vector.broadcast %cst_23 : f32 to vector<8x128xf32>
    %32 = arith.maximumf %30, %31 : vector<8x128xf32>
    %c0_24 = arith.constant 0 : index
    %c0_25 = arith.constant 0 : index
    %33 = vector.load %arg10[%c0_24, %c0_25] : memref<128x64xbf16, #tpu.memory_space<vmem>>, vector<128x64xbf16>
    %c0_26 = arith.constant 0 : index
    %c0_27 = arith.constant 0 : index
    %34 = vector.load %arg11[%c0_26, %c0_27] : memref<1x64xf32, #tpu.memory_space<vmem>>, vector<1x64xf32>
    %35 = arith.truncf %32 : vector<8x128xf32> to vector<8x128xbf16>
    %cst_28 = arith.constant dense<0.000000e+00> : vector<8x64xf32>
    %36 = tpu.matmul %35, %33, %cst_28 {dimension_numbers = #tpu.dot_dimension_numbers<[1], [0], [0], [1], [0, 0, 1, 1], [], []>} : vector<8x128xbf16>, vector<128x64xbf16>, vector<8x64xf32> -> vector<8x64xf32>
    %37 = vector.broadcast %34 : vector<1x64xf32> to vector<8x64xf32>
    %38 = arith.addf %36, %37 : vector<8x64xf32>
    %cst_29 = arith.constant 0.000000e+00 : f32
    %39 = vector.broadcast %cst_29 : f32 to vector<8x64xf32>
    %40 = arith.maximumf %38, %39 : vector<8x64xf32>
    %c0_30 = arith.constant 0 : index
    %c0_31 = arith.constant 0 : index
    %41 = vector.load %arg12[%c0_30, %c0_31] : memref<64x32xbf16, #tpu.memory_space<vmem>>, vector<64x32xbf16>
    %c0_32 = arith.constant 0 : index
    %c0_33 = arith.constant 0 : index
    %42 = vector.load %arg13[%c0_32, %c0_33] : memref<1x32xf32, #tpu.memory_space<vmem>>, vector<1x32xf32>
    %43 = arith.truncf %40 : vector<8x64xf32> to vector<8x64xbf16>
    %cst_34 = arith.constant dense<0.000000e+00> : vector<8x32xf32>
    %44 = tpu.matmul %43, %41, %cst_34 {dimension_numbers = #tpu.dot_dimension_numbers<[1], [0], [0], [1], [0, 0, 1, 1], [], []>} : vector<8x64xbf16>, vector<64x32xbf16>, vector<8x32xf32> -> vector<8x32xf32>
    %45 = vector.broadcast %42 : vector<1x32xf32> to vector<8x32xf32>
    %46 = arith.addf %44, %45 : vector<8x32xf32>
    %cst_35 = arith.constant 0.000000e+00 : f32
    %47 = vector.broadcast %cst_35 : f32 to vector<8x32xf32>
    %48 = arith.maximumf %46, %47 : vector<8x32xf32>
    %c0_36 = arith.constant 0 : index
    %c0_37 = arith.constant 0 : index
    %49 = vector.load %arg14[%c0_36, %c0_37] : memref<32x16xbf16, #tpu.memory_space<vmem>>, vector<32x16xbf16>
    %c0_38 = arith.constant 0 : index
    %c0_39 = arith.constant 0 : index
    %50 = vector.load %arg15[%c0_38, %c0_39] : memref<1x16xf32, #tpu.memory_space<vmem>>, vector<1x16xf32>
    %51 = arith.truncf %48 : vector<8x32xf32> to vector<8x32xbf16>
    %cst_40 = arith.constant dense<0.000000e+00> : vector<8x16xf32>
    %52 = tpu.matmul %51, %49, %cst_40 {dimension_numbers = #tpu.dot_dimension_numbers<[1], [0], [0], [1], [0, 0, 1, 1], [], []>} : vector<8x32xbf16>, vector<32x16xbf16>, vector<8x16xf32> -> vector<8x16xf32>
    %53 = vector.broadcast %50 : vector<1x16xf32> to vector<8x16xf32>
    %54 = arith.addf %52, %53 : vector<8x16xf32>
    %cst_41 = arith.constant 0.000000e+00 : f32
    %55 = vector.broadcast %cst_41 : f32 to vector<8x16xf32>
    %56 = arith.maximumf %54, %55 : vector<8x16xf32>
    %c0_42 = arith.constant 0 : index
    %c0_43 = arith.constant 0 : index
    %57 = vector.load %arg16[%c0_42, %c0_43] : memref<16x128xbf16, #tpu.memory_space<vmem>>, vector<16x128xbf16>
    %c0_44 = arith.constant 0 : index
    %c0_45 = arith.constant 0 : index
    %58 = vector.load %arg17[%c0_44, %c0_45] : memref<1x128xf32, #tpu.memory_space<vmem>>, vector<1x128xf32>
    %59 = arith.truncf %56 : vector<8x16xf32> to vector<8x16xbf16>
    %cst_46 = arith.constant dense<0.000000e+00> : vector<8x128xf32>
    %60 = tpu.matmul %59, %57, %cst_46 {dimension_numbers = #tpu.dot_dimension_numbers<[1], [0], [0], [1], [0, 0, 1, 1], [], []>} : vector<8x16xbf16>, vector<16x128xbf16>, vector<8x128xf32> -> vector<8x128xf32>
    %61 = vector.broadcast %58 : vector<1x128xf32> to vector<8x128xf32>
    %62 = arith.addf %60, %61 : vector<8x128xf32>
    %cst_47 = arith.constant 0.000000e+00 : f32
    %63 = vector.broadcast %cst_47 : f32 to vector<8x128xf32>
    %64 = arith.maximumf %62, %63 : vector<8x128xf32>
    %c0_48 = arith.constant 0 : index
    %c0_49 = arith.constant 0 : index
    %65 = vector.load %arg18[%c0_48, %c0_49] : memref<8x128xf32, #tpu.memory_space<vmem>>, vector<8x128xf32>
    tpu.vector_store %arg18[%c0_48, %c0_49], %64 {strides = array<i32>} : memref<8x128xf32, #tpu.memory_space<vmem>>, vector<8x128xf32>,
    return
  }
  func.func @transform_0(%arg0: i32) -> (i32, i32) {
    %c0_i32 = arith.constant 0 : i32
    %c0_i32_0 = arith.constant 0 : i32
    return %arg0, %c0_i32 : i32, i32
  }
  func.func @transform_1(%arg0: i32) -> (i32, i32) {
    %c0_i32 = arith.constant 0 : i32
    %c0_i32_0 = arith.constant 0 : i32
    %c0_i32_1 = arith.constant 0 : i32
    return %c0_i32, %c0_i32_0 : i32, i32
  }
  func.func @transform_2(%arg0: i32) -> (i32, i32) {
    %c0_i32 = arith.constant 0 : i32
    %c0_i32_0 = arith.constant 0 : i32
    %c0_i32_1 = arith.constant 0 : i32
    return %c0_i32, %c0_i32_0 : i32, i32
  }
  func.func @transform_3(%arg0: i32) -> (i32, i32) {
    %c0_i32 = arith.constant 0 : i32
    %c0_i32_0 = arith.constant 0 : i32
    %c0_i32_1 = arith.constant 0 : i32
    return %c0_i32, %c0_i32_0 : i32, i32
  }
  func.func @transform_4(%arg0: i32) -> (i32, i32) {
    %c0_i32 = arith.constant 0 : i32
    %c0_i32_0 = arith.constant 0 : i32
    %c0_i32_1 = arith.constant 0 : i32
    return %c0_i32, %c0_i32_0 : i32, i32
  }
  func.func @transform_5(%arg0: i32) -> (i32, i32) {
    %c0_i32 = arith.constant 0 : i32
    %c0_i32_0 = arith.constant 0 : i32
    %c0_i32_1 = arith.constant 0 : i32
    return %c0_i32, %c0_i32_0 : i32, i32
  }
  func.func @transform_6(%arg0: i32) -> (i32, i32) {
    %c0_i32 = arith.constant 0 : i32
    %c0_i32_0 = arith.constant 0 : i32
    %c0_i32_1 = arith.constant 0 : i32
    return %c0_i32, %c0_i32_0 : i32, i32
  }
  func.func @transform_7(%arg0: i32) -> (i32, i32) {
    %c0_i32 = arith.constant 0 : i32
    %c0_i32_0 = arith.constant 0 : i32
    %c0_i32_1 = arith.constant 0 : i32
    return %c0_i32, %c0_i32_0 : i32, i32
  }
  func.func @transform_8(%arg0: i32) -> (i32, i32) {
    %c0_i32 = arith.constant 0 : i32
    %c0_i32_0 = arith.constant 0 : i32
    %c0_i32_1 = arith.constant 0 : i32
    return %c0_i32, %c0_i32_0 : i32, i32
  }
  func.func @transform_9(%arg0: i32) -> (i32, i32) {
    %c0_i32 = arith.constant 0 : i32
    %c0_i32_0 = arith.constant 0 : i32
    %c0_i32_1 = arith.constant 0 : i32
    return %c0_i32, %c0_i32_0 : i32, i32
  }
  func.func @transform_10(%arg0: i32) -> (i32, i32) {
    %c0_i32 = arith.constant 0 : i32
    %c0_i32_0 = arith.constant 0 : i32
    %c0_i32_1 = arith.constant 0 : i32
    return %c0_i32, %c0_i32_0 : i32, i32
  }
  func.func @transform_11(%arg0: i32) -> (i32, i32) {
    %c0_i32 = arith.constant 0 : i32
    %c0_i32_0 = arith.constant 0 : i32
    %c0_i32_1 = arith.constant 0 : i32
    return %c0_i32, %c0_i32_0 : i32, i32
  }
  func.func @transform_12(%arg0: i32) -> (i32, i32) {
    %c0_i32 = arith.constant 0 : i32
    %c0_i32_0 = arith.constant 0 : i32
    %c0_i32_1 = arith.constant 0 : i32
    return %c0_i32, %c0_i32_0 : i32, i32
  }
  func.func @transform_13(%arg0: i32) -> (i32, i32) {
    %c0_i32 = arith.constant 0 : i32
    %c0_i32_0 = arith.constant 0 : i32
    %c0_i32_1 = arith.constant 0 : i32
    return %c0_i32, %c0_i32_0 : i32, i32
  }
  func.func @transform_14(%arg0: i32) -> (i32, i32) {
    %c0_i32 = arith.constant 0 : i32
    %c0_i32_0 = arith.constant 0 : i32
    %c0_i32_1 = arith.constant 0 : i32
    return %c0_i32, %c0_i32_0 : i32, i32
  }
  func.func @transform_15(%arg0: i32) -> (i32, i32) {
    %c0_i32 = arith.constant 0 : i32
    %c0_i32_0 = arith.constant 0 : i32
    %c0_i32_1 = arith.constant 0 : i32
    return %c0_i32, %c0_i32_0 : i32, i32
  }
  func.func @transform_16(%arg0: i32) -> (i32, i32) {
    %c0_i32 = arith.constant 0 : i32
    %c0_i32_0 = arith.constant 0 : i32
    %c0_i32_1 = arith.constant 0 : i32
    return %c0_i32, %c0_i32_0 : i32, i32
  }
  func.func @transform_17(%arg0: i32) -> (i32, i32) {
    %c0_i32 = arith.constant 0 : i32
    %c0_i32_0 = arith.constant 0 : i32
    return %arg0, %c0_i32 : i32, i32
  }
}

</mosaic_0001>

<bundles_post_ra>
// kernel: tpu_custom_call.1
= control target key start
LH: loop header
LB: loop body
LE: loop exit
PB: predicated region body
PF: predicated region fallthrough
CT: control target
= control target key end

     0   :  { %s5775_s0 = inlined_call_operand.vmem [shape: f32[8,640], index: 0, kind: input, shape index: {}]   ;;  %s5776_s1 = inlined_call_operand.hbm [shape: bf16[640,512], index: 1, kind: input, shape index: {}]   ;;  %s5777_s2 = inlined_call_operand.hbm [shape: f32[1,512], index: 2, kind: input, shape index: {}]   ;;  %s5778_s3 = inlined_call_operand.hbm [shape: bf16[512,512], index: 3, kind: input, shape index: {}]   ;;  %s5779_s4 = inlined_call_operand.hbm [shape: f32[1,512], index: 4, kind: input, shape index: {}]   ;;  %s5780_s5 = inlined_call_operand.hbm [shape: bf16[512,256], index: 5, kind: input, shape index: {}]   ;;  %s5781_s6 = inlined_call_operand.hbm [shape: f32[1,256], index: 6, kind: input, shape index: {}]   ;;  %s5782_s7 = inlined_call_operand.vmem [shape: bf16[256,128], index: 7, kind: input, shape index: {}]   ;;  %s5783_s8 = inlined_call_operand.vmem [shape: f32[1,128], index: 8, kind: input, shape index: {}]   ;;  %s5784_s9 = inlined_call_operand.vmem [shape: bf16[128,64], index: 9, kind: input, shape index: {}]   ;;  %s5785_s10 = inlined_call_operand.hbm [shape: f32[1,64], index: 10, kind: input, shape index: {}]   ;;  %s5786_s11 = inlined_call_operand.vmem [shape: bf16[64,32], index: 11, kind: input, shape index: {}]   ;;  %s5787_s12 = inlined_call_operand.vmem [shape: f32[1,32], index: 12, kind: input, shape index: {}]   ;;  %s5788_s13 = inlined_call_operand.vmem [shape: bf16[32,16], index: 13, kind: input, shape index: {}]   ;;  %s5789_s14 = inlined_call_operand.vmem [shape: f32[1,16], index: 14, kind: input, shape index: {}]   ;;  %s5790_s15 = inlined_call_operand.vmem [shape: bf16[16,128], index: 15, kind: input, shape index: {}]   ;;  %s5791_s16 = inlined_call_operand.vmem [shape: f32[1,128], index: 16, kind: input, shape index: {}]   ;;  %s5792_s17 = inlined_call_operand.hbm [shape: f32[8,128], index: 17, kind: output, shape index: {}]  }
   0x1   :  { %5794 = sst [smem:[#allocation20_spill]] %s5775_s0 }
   0x2   :  { %5795 = sst [smem:[#allocation21_spill]] %s5776_s1 }
   0x3   :  { %22 = vsyncpa [#allocation3], 0 }
   0x4   :  { %23 = vsyncpa [#allocation6], 0 }
   0x5   :  { %24 = vsyncpa [#allocation9], 0 }
   0x6   :  { %25 = vsyncpa [#allocation12], 0  ;;  %s47_s26 = sshll.u32 %s5777_s2, 4  ;;  %s48_s26 = int_to_ptr.hbm [resolvable:$true] %s47_s26 }
   0x7   :  { %26 = vsyncpa [#allocation4], 0  ;;  %s5424_s27 = smov [#allocation5]   ;;  %s71_s30 = sshll.u32 %s5779_s4, 4  ;;  %s72_s30 = int_to_ptr.hbm [resolvable:$true] %s71_s30 }
   0x8   :  { %s49_s28 = sshll.u32 %s5424_s27, 4  ;;  %s5425_s18 = smov [#allocation8]   ;;  %s50_s28 = int_to_ptr.vmem [resolvable:$true] %s49_s28 }
   0x9   :  { %52 = dma.hbm_to_vmem [thread:$0]  %s48_s26, 64, %s50_s28, [#allocation6]  }
   0xa   :  { %s73_s19 = sshll.u32 %s5425_s18, 4  ;;  %s95_s21 = sshll.u32 %s5781_s6, 4  ;;  %s74_s19 = int_to_ptr.vmem [resolvable:$true] %s73_s19  ;;  %s96_s21 = int_to_ptr.hbm [resolvable:$true] %s95_s21 }
   0xb   :  { %76 = dma.hbm_to_vmem [thread:$0]  %s72_s30, 64, %s74_s19, [#allocation9]  }
   0xc   :  { %s5796_s23 = sld [smem:[#allocation21_spill]]  ;;  %s5426_s25 = smov [#allocation11]  }
   0xd   :  { %s97_s27 = sshll.u32 %s5426_s25, 4  ;;  %s5427_s4 = smov [#allocation2]   ;;  %s98_s27 = int_to_ptr.vmem [resolvable:$true] %s97_s27 }
   0xe   :  { %100 = dma.hbm_to_vmem [thread:$0]  %s96_s21, 32, %s98_s27, [#allocation12]  }
   0xf   :  { %s35_s26 = sshll.u32 %s5427_s4, 4  ;;  %s5428_s28 = smov 256   ;;  %s36_s26 = int_to_ptr.vmem [resolvable:$true] %s35_s26 }
  0x10   :  { %s5429_s29 = smov 16   ;;  %s57_s18 = sshll.u32 %s5778_s3, 4  ;;  %s58_s18 = int_to_ptr.hbm [resolvable:$true] %s57_s18 }
  0x11   :  { %s5430_s30 = smov [#allocation7]   ;;  %s81_s2 = sshll.u32 %s5780_s5, 4  ;;  %s82_s2 = int_to_ptr.hbm [resolvable:$true] %s81_s2 }
  0x12   :  { %s33_s24 = sshll.u32 %s5796_s23, 4  ;;  %s59_s19 = sshll.u32 %s5430_s30, 4  ;;  %s34_s24 = int_to_ptr.hbm [resolvable:$true] %s33_s24  ;;  %s60_s19 = int_to_ptr.vmem [resolvable:$true] %s59_s19 }
  0x13   :  { %41 = dma.hbm_to_vmem [thread:$0]  %s34_s24, 20480, %s36_s26, [#allocation3], %s5428_s28, %s5428_s28, %s5429_s29  }
  0x14   :  { %65 = dma.hbm_to_vmem [thread:$0]  %s58_s18, 16384, %s60_s19, [#allocation6], %s5428_s28, %s5428_s28, %s5429_s29  }
  0x15   :  { %s5431_s21 = smov [#allocation10]   ;;  %s5432_s23 = smov 128  }
  0x16   :  { %s83_s22 = sshll.u32 %s5431_s21, 4  ;;  %s5433_s25 = smov 8   ;;  %s84_s22 = int_to_ptr.vmem [resolvable:$true] %s83_s22 }
  0x17   :  { %89 = dma.hbm_to_vmem [thread:$0]  %s82_s2, 8192, %s84_s22, [#allocation9], %s5432_s23, %s5432_s23, %s5433_s25  }
  0x18   :  { %s112_s3 = sshll.u32 %s5785_s10, 4  ;;  %s5434_s4 = smov [#allocation13]   ;;  %s113_s3 = int_to_ptr.hbm [resolvable:$true] %s112_s3 }
  0x19   :  { %s114_s26 = sshll.u32 %s5434_s4, 4  ;;  %s115_s26 = int_to_ptr.vmem [resolvable:$true] %s114_s26 }
  0x1a   :  { %117 = dma.hbm_to_vmem [thread:$0]  %s113_s3, 16, %s115_s26, [#allocation12]  }
  0x1b   :  { %5414 = dma.done.wait [#allocation3], 20480  }
  0x1c   :  { %5415 = vsyncadd [#allocation3], 4294946816 }
  0x1d   :  { %5416 = dma.done.wait [#allocation6], 16448  }
  0x1e   :  { %5417 = vsyncadd [#allocation6], 4294950848 }
  0x1f   :  { %5418 = dma.done.wait [#allocation9], 8256  }
  0x20   :  { %5419 = vsyncadd [#allocation9], 4294959040 }
  0x21   :  { %5420 = dma.done.wait [#allocation12], 48  }
  0x22   :  { %5421 = vsyncadd [#allocation12], 4294967248  ;;  %v3401_v0 = vld [vmem:[#allocation2 + $0xe0] sm:$0xf]  ;;  %v4852_v1 = vld [vmem:[#allocation2 + $0xec] sm:$0xf0] }
  0x23   :  { %v3529_v2 = vld [vmem:[#allocation2 + $0x1e0] sm:$0xf]  ;;  %v3402_v3 = vor.u32 %v4852_v1, %v3401_v0  ;;  %v4884_v4 = vld [vmem:[#allocation2 + $0x1ec] sm:$0xf0]  ;;  %s5797_s28 = sld [smem:[#allocation20_spill]]  ;;  %vm3178_vm0 = vcmask 523264  }
  0x24   :  { %v3657_v5 = vld [vmem:[#allocation2 + $0x2e0] sm:$0xf]  ;;  %v4916_v6 = vld [vmem:[#allocation2 + $0x2ec] sm:$0xf0]  ;;  %v3530_v7 = vor.u32 %v4884_v4, %v3529_v2  ;;  %vm3217_vm1 = vcmask 261120   ;;  %vm3248_vm2 = vcmask 130048  }
  0x25   :  { %v3658_v8 = vor.u32 %v4916_v6, %v3657_v5  ;;  %v3785_v9 = vld [vmem:[#allocation2 + $0x3e0] sm:$0xf]  ;;  %v4948_v10 = vld [vmem:[#allocation2 + $0x3ec] sm:$0xf0]  ;;  %1139 = vmatpush.bf16.msra.mxu0 %v3402_v3  ;;  %s5435_s20 = smov [#allocation14]   ;;  %s3274_s23 = sshll.u32 %s5792_s17, 4  ;;  %s3275_s23 = int_to_ptr.hbm [resolvable:$true] %s3274_s23 }
  0x26   :  { %v3385_v11 = vld [vmem:[#allocation2 + $0xc0] sm:$0xf]  ;;  %v3786_v12 = vor.u32 %v4948_v10, %v3785_v9  ;;  %v4848_v13 = vld [vmem:[#allocation2 + $0xcc] sm:$0xf0]  ;;  %1152 = vmatpush.bf16.msra.mxu1 %v3530_v7  ;;  %s3272_s2 = sshll.u32 %s5435_s20, 4  ;;  %s3273_s2 = int_to_ptr.vmem [resolvable:$true] %s3272_s2 }
  0x27   :  { %v3513_v14 = vld [vmem:[#allocation2 + $0x1c0] sm:$0xf]  ;;  %v4880_v15 = vld [vmem:[#allocation2 + $0x1cc] sm:$0xf0]  ;;  %1165 = vmatpush.bf16.msra.mxu2 %v3658_v8  ;;  %v3386_v16 = vor.u32 %v4848_v13, %v3385_v11 }
  0x28   :  { %v3514_v17 = vor.u32 %v4880_v15, %v3513_v14  ;;  %v3641_v18 = vld [vmem:[#allocation2 + $0x2c0] sm:$0xf]  ;;  %v4912_v19 = vld [vmem:[#allocation2 + $0x2cc] sm:$0xf0]  ;;  %1178 = vmatpush.bf16.msra.mxu3 %v3786_v12 }
  0x29   :  { %v3769_v20 = vld [vmem:[#allocation2 + $0x3c0] sm:$0xf]  ;;  %v3642_v21 = vor.u32 %v4912_v19, %v3641_v18  ;;  %v4944_v22 = vld [vmem:[#allocation2 + $0x3cc] sm:$0xf0]  ;;  %1140 = vmatpush.bf16.msra.mxu0 %v3386_v16 }
  0x2a   :  { %v3369_v23 = vld [vmem:[#allocation2 + $0xa0] sm:$0xf]  ;;  %v4844_v24 = vld [vmem:[#allocation2 + $0xac] sm:$0xf0]  ;;  %v3770_v25 = vor.u32 %v4944_v22, %v3769_v20  ;;  %1153 = vmatpush.bf16.msra.mxu1 %v3514_v17 }
  0x2b   :  { %v3497_v26 = vld [vmem:[#allocation2 + $0x1a0] sm:$0xf]  ;;  %v4876_v27 = vld [vmem:[#allocation2 + $0x1ac] sm:$0xf0]  ;;  %v3370_v29 = vor.u32 %v4844_v24, %v3369_v23  ;;  %1166 = vmatpush.bf16.msra.mxu2 %v3642_v21 }
  0x2c   :  { %v3625_v28 = vld [vmem:[#allocation2 + $0x2a0] sm:$0xf]  ;;  %v4908_v30 = vld [vmem:[#allocation2 + $0x2ac] sm:$0xf0]  ;;  %v3498_v33 = vor.u32 %v4876_v27, %v3497_v26  ;;  %1179 = vmatpush.bf16.msra.mxu3 %v3770_v25 }
  0x2d   :  { %v3753_v31 = vld [vmem:[#allocation2 + $0x3a0] sm:$0xf]  ;;  %v4940_v32 = vld [vmem:[#allocation2 + $0x3ac] sm:$0xf0]  ;;  %v3626_v34 = vor.u32 %v4908_v30, %v3625_v28  ;;  %1141 = vmatpush.bf16.msra.mxu0 %v3370_v29  ;;  %v4850_v30 = vld [vmem:[#allocation2 + $0xe4] sm:$0xf] }
  0x2e   :  { %v3353_v35 = vld [vmem:[#allocation2 + $0x80] sm:$0xf]  ;;  %v4840_v36 = vld [vmem:[#allocation2 + $0x8c] sm:$0xf0]  ;;  %v3754_v38 = vor.u32 %v4940_v32, %v3753_v31  ;;  %1154 = vmatpush.bf16.msra.mxu1 %v3498_v33  ;;  %v3403_v32 = vld [vmem:[#allocation2 + $0xf0] sm:$0xf0] }
  0x2f   :  { %v3481_v37 = vld [vmem:[#allocation2 + $0x180] sm:$0xf]  ;;  %v4872_v39 = vld [vmem:[#allocation2 + $0x18c] sm:$0xf0]  ;;  %v3354_v44 = vor.u32 %v4840_v36, %v3353_v35  ;;  %1167 = vmatpush.bf16.msra.mxu2 %v3626_v34  ;;  %v4882_v33 = vld [vmem:[#allocation2 + $0x1e4] sm:$0xf] }
  0x30   :  { %v3609_v40 = vld [vmem:[#allocation2 + $0x280] sm:$0xf]  ;;  %v4904_v41 = vld [vmem:[#allocation2 + $0x28c] sm:$0xf0]  ;;  %v3482_v45 = vor.u32 %v4872_v39, %v3481_v37  ;;  %1180 = vmatpush.bf16.msra.mxu3 %v3754_v38  ;;  %v3531_v34 = vld [vmem:[#allocation2 + $0x1f0] sm:$0xf0] }
  0x31   :  { %v3737_v42 = vld [vmem:[#allocation2 + $0x380] sm:$0xf]  ;;  %v4936_v43 = vld [vmem:[#allocation2 + $0x38c] sm:$0xf0]  ;;  %v3610_v46 = vor.u32 %v4904_v41, %v3609_v40  ;;  %1142 = vmatpush.bf16.msra.mxu0 %v3354_v44  ;;  %v4914_v37 = vld [vmem:[#allocation2 + $0x2e4] sm:$0xf]  ;;  %v3406_v41 = vor.u32 %v4850_v30, %v3403_v32 }
  0x32   :  { %v3337_v47 = vld [vmem:[#allocation2 + $0x60] sm:$0xf]  ;;  %v4836_v48 = vld [vmem:[#allocation2 + $0x6c] sm:$0xf0]  ;;  %v3738_v50 = vor.u32 %v4936_v43, %v3737_v42  ;;  %1155 = vmatpush.bf16.msra.mxu1 %v3482_v45  ;;  %v3659_v38 = vld [vmem:[#allocation2 + $0x2f0] sm:$0xf0]  ;;  %v3534_v42 = vor.u32 %v4882_v33, %v3531_v34 }
  0x33   :  { %v3465_v49 = vld [vmem:[#allocation2 + $0x160] sm:$0xf]  ;;  %v4868_v51 = vld [vmem:[#allocation2 + $0x16c] sm:$0xf0]  ;;  %v3338_v56 = vor.u32 %v4836_v48, %v3337_v47  ;;  %1168 = vmatpush.bf16.msra.mxu2 %v3610_v46  ;;  %v4846_v45 = vld [vmem:[#allocation2 + $0xc4] sm:$0xf]  ;;  %v3662_v46 = vor.u32 %v4914_v37, %v3659_v38 }
  0x34   :  { %v3593_v52 = vld [vmem:[#allocation2 + $0x260] sm:$0xf]  ;;  %v4900_v53 = vld [vmem:[#allocation2 + $0x26c] sm:$0xf0]  ;;  %v3466_v57 = vor.u32 %v4868_v51, %v3465_v49  ;;  %1181 = vmatpush.bf16.msra.mxu3 %v3738_v50  ;;  %v3387_v47 = vld [vmem:[#allocation2 + $0xd0] sm:$0xf0] }
  0x35   :  { %v3721_v54 = vld [vmem:[#allocation2 + $0x360] sm:$0xf]  ;;  %v4932_v55 = vld [vmem:[#allocation2 + $0x36c] sm:$0xf0]  ;;  %v3594_v58 = vor.u32 %v4900_v53, %v3593_v52  ;;  %1143 = vmatpush.bf16.msra.mxu0 %v3338_v56  ;;  %v4878_v48 = vld [vmem:[#allocation2 + $0x1c4] sm:$0xf] }
  0x36   :  { %v3321_v59 = vld [vmem:[#allocation2 + $0x40] sm:$0xf]  ;;  %v4832_v60 = vld [vmem:[#allocation2 + $0x4c] sm:$0xf0]  ;;  %v3722_v62 = vor.u32 %v4932_v55, %v3721_v54  ;;  %1156 = vmatpush.bf16.msra.mxu1 %v3466_v57  ;;  %v3515_v49 = vld [vmem:[#allocation2 + $0x1d0] sm:$0xf0]  ;;  %v3390_v55 = vor.u32 %v4846_v45, %v3387_v47 }
  0x37   :  { %v3449_v61 = vld [vmem:[#allocation2 + $0x140] sm:$0xf]  ;;  %v4864_v63 = vld [vmem:[#allocation2 + $0x14c] sm:$0xf0]  ;;  %v3322_v4 = vor.u32 %v4832_v60, %v3321_v59  ;;  %1169 = vmatpush.bf16.msra.mxu2 %v3594_v58  ;;  %v4910_v50 = vld [vmem:[#allocation2 + $0x2c4] sm:$0xf]  ;;  %v3518_v56 = vor.u32 %v4878_v48, %v3515_v49 }
  0x38   :  { %v3577_v0 = vld [vmem:[#allocation2 + $0x240] sm:$0xf]  ;;  %v4896_v1 = vld [vmem:[#allocation2 + $0x24c] sm:$0xf0]  ;;  %v3450_v5 = vor.u32 %v4864_v63, %v3449_v61  ;;  %1182 = vmatpush.bf16.msra.mxu3 %v3722_v62  ;;  %v3643_v51 = vld [vmem:[#allocation2 + $0x2d0] sm:$0xf0] }
  0x39   :  { %v3705_v2 = vld [vmem:[#allocation2 + $0x340] sm:$0xf]  ;;  %v4928_v3 = vld [vmem:[#allocation2 + $0x34c] sm:$0xf0]  ;;  %v3578_v6 = vor.u32 %v4896_v1, %v3577_v0  ;;  %1144 = vmatpush.bf16.msra.mxu0 %v3322_v4  ;;  %v4842_v59 = vld [vmem:[#allocation2 + $0xa4] sm:$0xf]  ;;  %v3646_v60 = vor.u32 %v4910_v50, %v3643_v51 }
  0x3a   :  { %v3305_v7 = vld [vmem:[#allocation2 + $0x20] sm:$0xf]  ;;  %v4828_v8 = vld [vmem:[#allocation2 + $0x2c] sm:$0xf0]  ;;  %v3706_v10 = vor.u32 %v4928_v3, %v3705_v2  ;;  %1157 = vmatpush.bf16.msra.mxu1 %v3450_v5  ;;  %v3371_v61 = vld [vmem:[#allocation2 + $0xb0] sm:$0xf0] }
  0x3b   :  { %v3433_v9 = vld [vmem:[#allocation2 + $0x120] sm:$0xf]  ;;  %v4860_v11 = vld [vmem:[#allocation2 + $0x12c] sm:$0xf0]  ;;  %v3306_v16 = vor.u32 %v4828_v8, %v3305_v7  ;;  %1170 = vmatpush.bf16.msra.mxu2 %v3578_v6  ;;  %v4874_v62 = vld [vmem:[#allocation2 + $0x1a4] sm:$0xf]  ;;  %v3374_v5 = vor.u32 %v4842_v59, %v3371_v61 }
  0x3c   :  { %v3561_v12 = vld [vmem:[#allocation2 + $0x220] sm:$0xf]  ;;  %v4892_v13 = vld [vmem:[#allocation2 + $0x22c] sm:$0xf0]  ;;  %v3434_v19 = vor.u32 %v4860_v11, %v3433_v9  ;;  %1183 = vmatpush.bf16.msra.mxu3 %v3706_v10  ;;  %v3499_v63 = vld [vmem:[#allocation2 + $0x1b0] sm:$0xf0] }
  0x3d   :  { %v3689_v14 = vld [vmem:[#allocation2 + $0x320] sm:$0xf]  ;;  %v4924_v15 = vld [vmem:[#allocation2 + $0x32c] sm:$0xf0]  ;;  %v3562_v20 = vor.u32 %v4892_v13, %v3561_v12  ;;  %1145 = vmatpush.bf16.msra.mxu0 %v3306_v16  ;;  %v4906_v0 = vld [vmem:[#allocation2 + $0x2a4] sm:$0xf]  ;;  %v3502_v6 = vor.u32 %v4874_v62, %v3499_v63 }
  0x3e   :  { %v3289_v17 = vld [vmem:[#allocation2] sm:$0xf]  ;;  %v4824_v18 = vld [vmem:[#allocation2 + $0xc] sm:$0xf0]  ;;  %v3690_v24 = vor.u32 %v4924_v15, %v3689_v14  ;;  %1158 = vmatpush.bf16.msra.mxu1 %v3434_v19  ;;  %v3627_v1 = vld [vmem:[#allocation2 + $0x2b0] sm:$0xf0] }
  0x3f   :  { %v3417_v21 = vld [vmem:[#allocation2 + $0x100] sm:$0xf]  ;;  %v4856_v22 = vld [vmem:[#allocation2 + $0x10c] sm:$0xf0]  ;;  %v3290_v31 = vor.u32 %v4824_v18, %v3289_v17  ;;  %1171 = vmatpush.bf16.msra.mxu2 %v3562_v20  ;;  %v4838_v8 = vld [vmem:[#allocation2 + $0x84] sm:$0xf]  ;;  %v3630_v11 = vor.u32 %v4906_v0, %v3627_v1 }
  0x40   :  { %v3545_v23 = vld [vmem:[#allocation2 + $0x200] sm:$0xf]  ;;  %v4888_v25 = vld [vmem:[#allocation2 + $0x20c] sm:$0xf0]  ;;  %v3418_v35 = vor.u32 %v4856_v22, %v3417_v21  ;;  %1184 = vmatpush.bf16.msra.mxu3 %v3690_v24  ;;  %v162_v10 = vld [vmem:[%s5797_s28 + $0x18] sm:$0xff] }
  0x41   :  { %v3673_v26 = vld [vmem:[#allocation2 + $0x300] sm:$0xf]  ;;  %v4920_v27 = vld [vmem:[#allocation2 + $0x30c] sm:$0xf0]  ;;  %v3546_v36 = vor.u32 %v4888_v25, %v3545_v23  ;;  %1146 = vmatpush.bf16.msra.mxu0 %v3290_v31  ;;  %v3355_v12 = vld [vmem:[#allocation2 + $0x90] sm:$0xf0]  ;;  %v5561_v15 = vpack.c.bf16 %v162_v10, %v162_v10 }
  0x42   :  { %v3913_v28 = vld [vmem:[#allocation2 + $0x4e0] sm:$0xf]  ;;  %v4980_v29 = vld [vmem:[#allocation2 + $0x4ec] sm:$0xf0]  ;;  %v3674_v39 = vor.u32 %v4920_v27, %v3673_v26  ;;  %1159 = vmatpush.bf16.msra.mxu1 %v3418_v35  ;;  %v4870_v13 = vld [vmem:[#allocation2 + $0x184] sm:$0xf]  ;;  %v3358_v20 = vor.u32 %v4838_v8, %v3355_v12 }
  0x43   :  { %v3914_v40 = vor.u32 %v4980_v29, %v3913_v28  ;;  %v3897_v43 = vld [vmem:[#allocation2 + $0x4c0] sm:$0xf]  ;;  %v4976_v44 = vld [vmem:[#allocation2 + $0x4cc] sm:$0xf0]  ;;  %1172 = vmatpush.bf16.msra.mxu2 %v3546_v36  ;;  %v3483_v14 = vld [vmem:[#allocation2 + $0x190] sm:$0xf0] }
  0x44   :  { %v159_v52 = vld [vmem:[%s5797_s28] sm:$0xff]  ;;  %1185 = vmatpush.bf16.msra.mxu3 %v3674_v39  ;;  %v3898_v53 = vor.u32 %v4976_v44, %v3897_v43  ;;  %v4972_v58 = vld [vmem:[#allocation2 + $0x4ac] sm:$0xf0]  ;;  %v3611_v17 = vld [vmem:[#allocation2 + $0x290] sm:$0xf0]  ;;  %v3486_v21 = vor.u32 %v4870_v13, %v3483_v14 }
  0x45   :  { %1191 = vmatpush.bf16.msrb.mxu0 %v3914_v40  ;;  %v5550_v54 = vpack.c.bf16 %v159_v52, %v159_v52  ;;  %v3881_v57 = vld [vmem:[#allocation2 + $0x4a0] sm:$0xf]  ;;  %v161_v4 = vld [vmem:[%s5797_s28 + $0x10] sm:$0xff]  ;;  %v4902_v16 = vld [vmem:[#allocation2 + $0x284] sm:$0xf] }
  0x46   :  { %1204 = vmatpush.bf16.msrb.mxu1 %v3406_v41  ;;  %v3882_v2 = vor.u32 %v4972_v58, %v3881_v57  ;;  %v3865_v3 = vld [vmem:[#allocation2 + $0x480] sm:$0xf]  ;;  %v4968_v7 = vld [vmem:[#allocation2 + $0x48c] sm:$0xf0]  ;;  %v5556_v9 = vpack.c.bf16 %v161_v4, %v161_v4  ;;  %v160_v19 = vld [vmem:[%s5797_s28 + $0x8] sm:$0xff]  ;;  %v3614_v26 = vor.u32 %v4902_v16, %v3611_v17 }
  0x47   :  { %1217 = vmatpush.bf16.msrb.mxu2 %v3534_v42  ;;  %1147 = vmatmul.bf16.vlgmr.msra.gmra.mxu0 %v5550_v54  ;;  %v3866_v18 = vor.u32 %v4968_v7, %v3865_v3  ;;  %v3849_v22 = vld [vmem:[#allocation2 + $0x460] sm:$0xf]  ;;  %v4964_v23 = vld [vmem:[#allocation2 + $0x46c] sm:$0xf0]  ;;  %v4834_v24 = vld [vmem:[#allocation2 + $0x64] sm:$0xf]  ;;  %v5568_v25 = vpack.c.bf16 %v160_v19, %v160_v19 }
  0x48   :  { %1230 = vmatpush.bf16.msrb.mxu3 %v3662_v46  ;;  %1173 = vmatmul.bf16.vlgmr.msra.gmra.mxu2 %v5556_v9  ;;  %v3339_v27 = vld [vmem:[#allocation2 + $0x70] sm:$0xf0]  ;;  %v4866_v28 = vld [vmem:[#allocation2 + $0x164] sm:$0xf]  ;;  %v3850_v32 = vor.u32 %v4964_v23, %v3849_v22  ;;  %v3833_v35 = vld [vmem:[#allocation2 + $0x440] sm:$0xf] }
  0x49   :  { %1192 = vmatpush.bf16.msrb.mxu0 %v3898_v53  ;;  %1186 = vmatmul.bf16.vlgmr.msra.gmra.mxu3 %v5561_v15  ;;  %v3467_v29 = vld [vmem:[#allocation2 + $0x170] sm:$0xf0]  ;;  %v4898_v30 = vld [vmem:[#allocation2 + $0x264] sm:$0xf]  ;;  %v3342_v33 = vor.u32 %v4834_v24, %v3339_v27  ;;  %v4960_v36 = vld [vmem:[#allocation2 + $0x44c] sm:$0xf0] }
  0x4a   :  { %1205 = vmatpush.bf16.msrb.mxu1 %v3390_v55  ;;  %v3595_v31 = vld [vmem:[#allocation2 + $0x270] sm:$0xf0]  ;;  %v3470_v34 = vor.u32 %v4866_v28, %v3467_v29  ;;  %v4830_v37 = vld [vmem:[#allocation2 + $0x44] sm:$0xf]  ;;  %v3834_v44 = vor.u32 %v4960_v36, %v3833_v35  ;;  %v3817_v47 = vld [vmem:[#allocation2 + $0x420] sm:$0xf] }
  0x4b   :  { %1218 = vmatpush.bf16.msrb.mxu2 %v3518_v56  ;;  %1160 = vmatmul.bf16.vlgmr.msra.gmra.mxu1 %v5568_v25  ;;  %v3598_v38 = vor.u32 %v4898_v30, %v3595_v31  ;;  %v3323_v39 = vld [vmem:[#allocation2 + $0x50] sm:$0xf0]  ;;  %v4862_v40 = vld [vmem:[#allocation2 + $0x144] sm:$0xf]  ;;  %v4956_v48 = vld [vmem:[#allocation2 + $0x42c] sm:$0xf0] }
  0x4c   :  { %1231 = vmatpush.bf16.msrb.mxu3 %v3646_v60  ;;  %v3451_v41 = vld [vmem:[#allocation2 + $0x150] sm:$0xf0]  ;;  %v4894_v42 = vld [vmem:[#allocation2 + $0x244] sm:$0xf]  ;;  %v3326_v45 = vor.u32 %v4830_v37, %v3323_v39  ;;  %v3818_v57 = vor.u32 %v4956_v48, %v3817_v47  ;;  %v3801_v58 = vld [vmem:[#allocation2 + $0x400] sm:$0xf] }
  0x4d   :  { %1193 = vmatpush.bf16.msrb.mxu0 %v3882_v2  ;;  %v3579_v43 = vld [vmem:[#allocation2 + $0x250] sm:$0xf0]  ;;  %v3454_v46 = vor.u32 %v4862_v40, %v3451_v41  ;;  %v4826_v49 = vld [vmem:[#allocation2 + $0x24] sm:$0xf]  ;;  %v4952_v59 = vld [vmem:[#allocation2 + $0x40c] sm:$0xf0] }
  0x4e   :  { %1206 = vmatpush.bf16.msrb.mxu1 %v3374_v5  ;;  %v3582_v50 = vor.u32 %v4894_v42, %v3579_v43  ;;  %v3307_v51 = vld [vmem:[#allocation2 + $0x30] sm:$0xf0]  ;;  %v4858_v52 = vld [vmem:[#allocation2 + $0x124] sm:$0xf]  ;;  %v3802_v8 = vor.u32 %v4952_v59, %v3801_v58  ;;  %v4853_v12 = vld [vmem:[#allocation2 + $0xf4] sm:$0xf0] }
  0x4f   :  { %1219 = vmatpush.bf16.msrb.mxu2 %v3502_v6  ;;  %v3435_v53 = vld [vmem:[#allocation2 + $0x130] sm:$0xf0]  ;;  %v4890_v55 = vld [vmem:[#allocation2 + $0x224] sm:$0xf]  ;;  %v3310_v60 = vor.u32 %v4826_v49, %v3307_v51  ;;  %v3537_v16 = vld [vmem:[#allocation2 + $0x1e8] sm:$0xf] }
  0x50   :  { %1232 = vmatpush.bf16.msrb.mxu3 %v3630_v11  ;;  %v3563_v56 = vld [vmem:[#allocation2 + $0x230] sm:$0xf0]  ;;  %v3438_v61 = vor.u32 %v4858_v52, %v3435_v53  ;;  %v4822_v62 = vld [vmem:[#allocation2 + $0x4] sm:$0xf]  ;;  %v3409_v11 = vld [vmem:[#allocation2 + $0xe8] sm:$0xf] }
  0x51   :  { %1194 = vmatpush.bf16.msrb.mxu0 %v3866_v18  ;;  %v3291_v63 = vld [vmem:[#allocation2 + $0x10] sm:$0xf0]  ;;  %v4854_v0 = vld [vmem:[#allocation2 + $0x104] sm:$0xf]  ;;  %v3566_v1 = vor.u32 %v4890_v55, %v3563_v56  ;;  %v4885_v17 = vld [vmem:[#allocation2 + $0x1f4] sm:$0xf0]  ;;  %v3410_v22 = vor.u32 %v4853_v12, %v3409_v11 }
  0x52   :  { %1207 = vmatpush.bf16.msrb.mxu1 %v3358_v20  ;;  %v3419_v2 = vld [vmem:[#allocation2 + $0x110] sm:$0xf0]  ;;  %v4886_v3 = vld [vmem:[#allocation2 + $0x204] sm:$0xf]  ;;  %v3294_v13 = vor.u32 %v4822_v62, %v3291_v63  ;;  %v3538_v27 = vor.u32 %v4885_v17, %v3537_v16  ;;  %v3393_v30 = vld [vmem:[#allocation2 + $0xc8] sm:$0xf] }
  0x53   :  { %1220 = vmatpush.bf16.msrb.mxu2 %v3486_v21  ;;  %v3547_v4 = vld [vmem:[#allocation2 + $0x210] sm:$0xf0]  ;;  %v4946_v5 = vld [vmem:[#allocation2 + $0x3e4] sm:$0xf]  ;;  %v3422_v14 = vor.u32 %v4854_v0, %v3419_v2  ;;  %v4849_v31 = vld [vmem:[#allocation2 + $0xd4] sm:$0xf0] }
  0x54   :  { %1233 = vmatpush.bf16.msrb.mxu3 %v3614_v26  ;;  %v3787_v6 = vld [vmem:[#allocation2 + $0x3f0] sm:$0xf0]  ;;  %v4978_v7 = vld [vmem:[#allocation2 + $0x4e4] sm:$0xf]  ;;  %v3550_v19 = vor.u32 %v4886_v3, %v3547_v4  ;;  %v3394_v36 = vor.u32 %v4849_v31, %v3393_v30  ;;  %v3377_v42 = vld [vmem:[#allocation2 + $0xa8] sm:$0xf] }
  0x55   :  { %1195 = vmatpush.bf16.msrb.mxu0 %v3850_v32  ;;  %v3915_v10 = vld [vmem:[#allocation2 + $0x4f0] sm:$0xf0]  ;;  %v163_v18 = vld [vmem:[%s5797_s28 + $0x20] sm:$0xff]  ;;  %v3790_v20 = vor.u32 %v4946_v5, %v3787_v6  ;;  %v3521_v32 = vld [vmem:[#allocation2 + $0x1c8] sm:$0xf] }
  0x56   :  { %1208 = vmatpush.bf16.msrb.mxu1 %v3342_v33  ;;  %v3918_v21 = vor.u32 %v4978_v7, %v3915_v10  ;;  %v4942_v23 = vld [vmem:[#allocation2 + $0x3c4] sm:$0xf]  ;;  %v3771_v24 = vld [vmem:[#allocation2 + $0x3d0] sm:$0xf0]  ;;  %v5574_v28 = vpack.c.bf16 %v163_v18, %v163_v18  ;;  %v4881_v33 = vld [vmem:[#allocation2 + $0x1d4] sm:$0xf0] }
  0x57   :  { %1221 = vmatpush.bf16.msrb.mxu2 %v3470_v34  ;;  %v4974_v26 = vld [vmem:[#allocation2 + $0x4c4] sm:$0xf]  ;;  %v3899_v29 = vld [vmem:[#allocation2 + $0x4d0] sm:$0xf0]  ;;  %v3774_v34 = vor.u32 %v4942_v23, %v3771_v24  ;;  %v3522_v40 = vor.u32 %v4881_v33, %v3521_v32  ;;  %v4845_v43 = vld [vmem:[#allocation2 + $0xb4] sm:$0xf0] }
  0x58   :  { %1234 = vmatpush.bf16.msrb.mxu3 %v3598_v38  ;;  %v3902_v35 = vor.u32 %v4974_v26, %v3899_v29  ;;  %v4938_v37 = vld [vmem:[#allocation2 + $0x3a4] sm:$0xf]  ;;  %v3755_v38 = vld [vmem:[#allocation2 + $0x3b0] sm:$0xf0]  ;;  %v3378_v48 = vor.u32 %v4845_v43, %v3377_v42  ;;  %v3361_v55 = vld [vmem:[#allocation2 + $0x88] sm:$0xf] }
  0x59   :  { %1196 = vmatpush.bf16.msrb.mxu0 %v3834_v44  ;;  %v4970_v39 = vld [vmem:[#allocation2 + $0x4a4] sm:$0xf]  ;;  %v3883_v41 = vld [vmem:[#allocation2 + $0x4b0] sm:$0xf0]  ;;  %v3505_v44 = vld [vmem:[#allocation2 + $0x1a8] sm:$0xf] }
  0x5a   :  { %1209 = vmatpush.bf16.msrb.mxu1 %v3326_v45  ;;  %v4877_v45 = vld [vmem:[#allocation2 + $0x1b4] sm:$0xf0]  ;;  %v3886_v47 = vor.u32 %v4970_v39, %v3883_v41  ;;  %v4934_v49 = vld [vmem:[#allocation2 + $0x384] sm:$0xf]  ;;  %v3867_v53 = vld [vmem:[#allocation2 + $0x490] sm:$0xf0] }
  0x5b   :  { %1222 = vmatpush.bf16.msrb.mxu2 %v3454_v46  ;;  %v3758_v46 = vor.u32 %v4938_v37, %v3755_v38  ;;  %v4966_v51 = vld [vmem:[#allocation2 + $0x484] sm:$0xf]  ;;  %v3506_v52 = vor.u32 %v4877_v45, %v3505_v44  ;;  %v4841_v56 = vld [vmem:[#allocation2 + $0x94] sm:$0xf0]  ;;  %v3723_v63 = vld [vmem:[#allocation2 + $0x370] sm:$0xf0] }
  0x5c   :  { %1235 = vmatpush.bf16.msrb.mxu3 %v3582_v50  ;;  %v3739_v50 = vld [vmem:[#allocation2 + $0x390] sm:$0xf0]  ;;  %v4873_v58 = vld [vmem:[#allocation2 + $0x194] sm:$0xf0]  ;;  %v4930_v62 = vld [vmem:[#allocation2 + $0x364] sm:$0xf] }
  0x5d   :  { %1197 = vmatpush.bf16.msrb.mxu0 %v3818_v57  ;;  %v3489_v57 = vld [vmem:[#allocation2 + $0x188] sm:$0xf]  ;;  %v3742_v59 = vor.u32 %v4934_v49, %v3739_v50  ;;  %v4962_v0 = vld [vmem:[#allocation2 + $0x464] sm:$0xf]  ;;  %v3851_v2 = vld [vmem:[#allocation2 + $0x470] sm:$0xf0]  ;;  %v3726_v7 = vor.u32 %v4930_v62, %v3723_v63 }
  0x5e   :  { %1210 = vmatpush.bf16.msrb.mxu1 %v3310_v60  ;;  %v3870_v60 = vor.u32 %v4966_v51, %v3867_v53  ;;  %v3345_v3 = vld [vmem:[#allocation2 + $0x68] sm:$0xf]  ;;  %v4837_v4 = vld [vmem:[#allocation2 + $0x74] sm:$0xf0]  ;;  %v4926_v11 = vld [vmem:[#allocation2 + $0x344] sm:$0xf] }
  0x5f   :  { %1223 = vmatpush.bf16.msrb.mxu2 %v3438_v61  ;;  %v3362_v61 = vor.u32 %v4841_v56, %v3361_v55  ;;  %v3473_v5 = vld [vmem:[#allocation2 + $0x168] sm:$0xf]  ;;  %v4869_v6 = vld [vmem:[#allocation2 + $0x174] sm:$0xf0]  ;;  %v3346_v10 = vor.u32 %v4837_v4, %v3345_v3  ;;  %v3707_v12 = vld [vmem:[#allocation2 + $0x350] sm:$0xf0] }
  0x60   :  { %1236 = vmatpush.bf16.msrb.mxu3 %v3566_v1  ;;  %v3490_v1 = vor.u32 %v4873_v58, %v3489_v57  ;;  %v3835_v16 = vld [vmem:[#allocation2 + $0x450] sm:$0xf0]  ;;  %v3329_v17 = vld [vmem:[#allocation2 + $0x48] sm:$0xf]  ;;  %v4833_v18 = vld [vmem:[#allocation2 + $0x54] sm:$0xf0] }
  0x61   :  { %1198 = vmatpush.bf16.msrb.mxu0 %v3802_v8  ;;  %v3854_v8 = vor.u32 %v4962_v0, %v3851_v2  ;;  %v3691_v23 = vld [vmem:[#allocation2 + $0x330] sm:$0xf0]  ;;  %v3330_v26 = vor.u32 %v4833_v18, %v3329_v17  ;;  %v3313_v30 = vld [vmem:[#allocation2 + $0x28] sm:$0xf]  ;;  %v4829_v32 = vld [vmem:[#allocation2 + $0x34] sm:$0xf0] }
  0x62   :  { %1211 = vmatpush.bf16.msrb.mxu1 %v3294_v13  ;;  %v4958_v13 = vld [vmem:[#allocation2 + $0x444] sm:$0xf]  ;;  %v3819_v29 = vld [vmem:[#allocation2 + $0x430] sm:$0xf0]  ;;  %v3441_v33 = vld [vmem:[#allocation2 + $0x128] sm:$0xf]  ;;  %v3314_v39 = vor.u32 %v4829_v32, %v3313_v30 }
  0x63   :  { %1224 = vmatpush.bf16.msrb.mxu2 %v3422_v14  ;;  %v3474_v14 = vor.u32 %v4869_v6, %v3473_v5  ;;  %v3838_v24 = vor.u32 %v4958_v13, %v3835_v16  ;;  %v3675_v37 = vld [vmem:[#allocation2 + $0x310] sm:$0xf0]  ;;  %v3297_v42 = vld [vmem:[#allocation2 + $0x8] sm:$0xf]  ;;  %v4825_v44 = vld [vmem:[#allocation2 + $0x14] sm:$0xf0] }
  0x64   :  { %1237 = vmatpush.bf16.msrb.mxu3 %v3550_v19  ;;  %1199 = vmatmul.bf16.vlgmr.msrb.gmra.mxu0 %v5574_v28  ;;  %v3457_v19 = vld [vmem:[#allocation2 + $0x148] sm:$0xf]  ;;  %v3803_v41 = vld [vmem:[#allocation2 + $0x410] sm:$0xf0]  ;;  %v4949_v51 = vld [vmem:[#allocation2 + $0x3f4] sm:$0xf0]  ;;  %v3298_v56 = vor.u32 %v4825_v44, %v3297_v42 }
  0x65   :  { %1243 = vmatpush.bf16.msra.mxu0 %v3790_v20  ;;  %1212 = vmatmul.bf16.vlgmr.msrb.gmra.mxu1 %v5550_v54  ;;  %v4865_v20 = vld [vmem:[#allocation2 + $0x154] sm:$0xf0]  ;;  %v3425_v45 = vld [vmem:[#allocation2 + $0x108] sm:$0xf]  ;;  %v4851_v57 = vld [vmem:[#allocation2 + $0xec] sm:$0xf] }
  0x66   :  { %1256 = vmatpush.bf16.msra.mxu1 %v3918_v21  ;;  %1225 = vmatmul.bf16.vlgmr.msrb.gmra.mxu2 %v5568_v25  ;;  %v3710_v21 = vor.u32 %v4926_v11, %v3707_v12  ;;  %v3458_v31 = vor.u32 %v4865_v20, %v3457_v19  ;;  %v3793_v49 = vld [vmem:[#allocation2 + $0x3e8] sm:$0xf]  ;;  %v4981_v53 = vld [vmem:[#allocation2 + $0x4f4] sm:$0xf0]  ;;  %v3411_v58 = vld [vmem:[#allocation2 + $0xf8] sm:$0xf0] }
  0x67   :  { %1269 = vmatpush.bf16.msra.mxu2 %v3410_v22  ;;  %1238 = vmatmul.bf16.vlgmr.msrb.gmra.mxu3 %v5556_v9  ;;  %v4922_v22 = vld [vmem:[#allocation2 + $0x324] sm:$0xf]  ;;  %v3649_v63 = vld [vmem:[#allocation2 + $0x2c8] sm:$0xf]  ;;  %v4913_v0 = vld [vmem:[#allocation2 + $0x2d4] sm:$0xf0]  ;;  %v3414_v2 = vor.u32 %v4851_v57, %v3411_v58 }
  0x68   :  { %1282 = vmatpush.bf16.msra.mxu3 %v3538_v27  ;;  %v4954_v27 = vld [vmem:[#allocation2 + $0x424] sm:$0xf]  ;;  %v4945_v3 = vld [vmem:[#allocation2 + $0x3d4] sm:$0xf0]  ;;  %v3905_v4 = vld [vmem:[#allocation2 + $0x4c8] sm:$0xf] }
  0x69   :  { %1244 = vmatpush.bf16.msra.mxu0 %v3774_v34  ;;  %v4861_v34 = vld [vmem:[#allocation2 + $0x134] sm:$0xf0]  ;;  %v3822_v38 = vor.u32 %v4954_v27, %v3819_v29  ;;  %v4847_v6 = vld [vmem:[#allocation2 + $0xcc] sm:$0xf]  ;;  %v3633_v12 = vld [vmem:[#allocation2 + $0x2a8] sm:$0xf] }
  0x6a   :  { %1257 = vmatpush.bf16.msra.mxu1 %v3902_v35  ;;  %v3694_v35 = vor.u32 %v4922_v22, %v3691_v23  ;;  %v3442_v43 = vor.u32 %v4861_v34, %v3441_v33  ;;  %v4977_v5 = vld [vmem:[#allocation2 + $0x4d4] sm:$0xf0]  ;;  %v3889_v18 = vld [vmem:[#allocation2 + $0x4a8] sm:$0xf]  ;;  %v4843_v20 = vld [vmem:[#allocation2 + $0xac] sm:$0xf] }
  0x6b   :  { %1270 = vmatpush.bf16.msra.mxu2 %v3394_v36  ;;  %v4918_v36 = vld [vmem:[#allocation2 + $0x304] sm:$0xf]  ;;  %v3906_v11 = vor.u32 %v4977_v5, %v3905_v4  ;;  %v4909_v13 = vld [vmem:[#allocation2 + $0x2b4] sm:$0xf0]  ;;  %v3745_v29 = vld [vmem:[#allocation2 + $0x388] sm:$0xf] }
  0x6c   :  { %1283 = vmatpush.bf16.msra.mxu3 %v3522_v40  ;;  %v4950_v40 = vld [vmem:[#allocation2 + $0x404] sm:$0xf]  ;;  %v3678_v50 = vor.u32 %v4918_v36, %v3675_v37  ;;  %v4941_v17 = vld [vmem:[#allocation2 + $0x3b4] sm:$0xf0]  ;;  %v3634_v22 = vor.u32 %v4909_v13, %v3633_v12  ;;  %v3873_v32 = vld [vmem:[#allocation2 + $0x488] sm:$0xf] }
  0x6d   :  { %1245 = vmatpush.bf16.msra.mxu0 %v3758_v46  ;;  %v4857_v46 = vld [vmem:[#allocation2 + $0x114] sm:$0xf0]  ;;  %v3806_v55 = vor.u32 %v4950_v40, %v3803_v41  ;;  %v4839_v34 = vld [vmem:[#allocation2 + $0x8c] sm:$0xf]  ;;  %v3729_v41 = vld [vmem:[#allocation2 + $0x368] sm:$0xf] }
  0x6e   :  { %1258 = vmatpush.bf16.msra.mxu1 %v3886_v47  ;;  %v3665_v47 = vld [vmem:[#allocation2 + $0x2e8] sm:$0xf]  ;;  %v4973_v19 = vld [vmem:[#allocation2 + $0x4b4] sm:$0xf0] }
  0x6f   :  { %1271 = vmatpush.bf16.msra.mxu2 %v3378_v48  ;;  %v4917_v48 = vld [vmem:[#allocation2 + $0x2f4] sm:$0xf0]  ;;  %v3857_v44 = vld [vmem:[#allocation2 + $0x468] sm:$0xf] }
  0x70   :  { %1284 = vmatpush.bf16.msra.mxu3 %v3506_v52  ;;  %v3921_v52 = vld [vmem:[#allocation2 + $0x4e8] sm:$0xf]  ;;  %v4905_v27 = vld [vmem:[#allocation2 + $0x294] sm:$0xf0] }
  0x71   :  { %1246 = vmatpush.bf16.msra.mxu0 %v3742_v59  ;;  %v3426_v59 = vor.u32 %v4857_v46, %v3425_v45  ;;  %v3922_v62 = vor.u32 %v4981_v53, %v3921_v52  ;;  %v4969_v33 = vld [vmem:[#allocation2 + $0x494] sm:$0xf0]  ;;  %v4835_v46 = vld [vmem:[#allocation2 + $0x6c] sm:$0xf]  ;;  %v3713_v53 = vld [vmem:[#allocation2 + $0x348] sm:$0xf] }
  0x72   :  { %1259 = vmatpush.bf16.msra.mxu1 %v3870_v60  ;;  %v3666_v60 = vor.u32 %v4917_v48, %v3665_v47  ;;  %v4901_v40 = vld [vmem:[#allocation2 + $0x274] sm:$0xf0]  ;;  %v3347_v47 = vld [vmem:[#allocation2 + $0x78] sm:$0xf0]  ;;  %v3841_v57 = vld [vmem:[#allocation2 + $0x448] sm:$0xf] }
  0x73   :  { %1272 = vmatpush.bf16.msra.mxu2 %v3362_v61  ;;  %v3794_v61 = vor.u32 %v4949_v51, %v3793_v49  ;;  %v4965_v45 = vld [vmem:[#allocation2 + $0x474] sm:$0xf0]  ;;  %v3585_v51 = vld [vmem:[#allocation2 + $0x248] sm:$0xf] }
  0x74   :  { %1285 = vmatpush.bf16.msra.mxu3 %v3490_v1  ;;  %v3777_v1 = vld [vmem:[#allocation2 + $0x3c8] sm:$0xf]  ;;  %v4897_v52 = vld [vmem:[#allocation2 + $0x254] sm:$0xf0] }
  0x75   :  { %1247 = vmatpush.bf16.msra.mxu0 %v3726_v7  ;;  %v3395_v7 = vld [vmem:[#allocation2 + $0xd8] sm:$0xf0]  ;;  %v4961_v58 = vld [vmem:[#allocation2 + $0x454] sm:$0xf0]  ;;  %v3825_v5 = vld [vmem:[#allocation2 + $0x428] sm:$0xf] }
  0x76   :  { %1260 = vmatpush.bf16.msra.mxu1 %v3854_v8  ;;  %v3650_v8 = vor.u32 %v4913_v0, %v3649_v63  ;;  %v3398_v16 = vor.u32 %v4847_v6, %v3395_v7  ;;  %v3842_v63 = vor.u32 %v4961_v58, %v3841_v57  ;;  %v3569_v0 = vld [vmem:[#allocation2 + $0x228] sm:$0xf]  ;;  %v4925_v4 = vld [vmem:[#allocation2 + $0x334] sm:$0xf0]  ;;  %v4827_v7 = vld [vmem:[#allocation2 + $0x2c] sm:$0xf] }
  0x77   :  { %1273 = vmatpush.bf16.msra.mxu2 %v3346_v10  ;;  %v3778_v10 = vor.u32 %v4945_v3, %v3777_v1  ;;  %v4893_v1 = vld [vmem:[#allocation2 + $0x234] sm:$0xf0]  ;;  %v3635_v57 = vld [vmem:[#allocation2 + $0x2b8] sm:$0xf0]  ;;  %v4939_v58 = vld [vmem:[#allocation2 + $0x3ac] sm:$0xf] }
  0x78   :  { %1286 = vmatpush.bf16.msra.mxu3 %v3474_v14  ;;  %v3761_v14 = vld [vmem:[#allocation2 + $0x3a8] sm:$0xf]  ;;  %v4957_v6 = vld [vmem:[#allocation2 + $0x434] sm:$0xf0] }
  0x79   :  { %1248 = vmatpush.bf16.msra.mxu0 %v3710_v21  ;;  %v3379_v21 = vld [vmem:[#allocation2 + $0xb8] sm:$0xf0]  ;;  %v3762_v23 = vor.u32 %v4941_v17, %v3761_v14  ;;  %v4889_v12 = vld [vmem:[#allocation2 + $0x214] sm:$0xf0]  ;;  %v3826_v14 = vor.u32 %v4957_v6, %v3825_v5  ;;  %v4935_v6 = vld [vmem:[#allocation2 + $0x38c] sm:$0xf] }
  0x7a   :  { %1261 = vmatpush.bf16.msra.mxu1 %v3838_v24  ;;  %v3890_v24 = vor.u32 %v4973_v19, %v3889_v18  ;;  %v3382_v30 = vor.u32 %v4843_v20, %v3379_v21  ;;  %v4921_v17 = vld [vmem:[#allocation2 + $0x314] sm:$0xf0]  ;;  %v3809_v18 = vld [vmem:[#allocation2 + $0x408] sm:$0xf]  ;;  %v4823_v21 = vld [vmem:[#allocation2 + $0xc] sm:$0xf] }
  0x7b   :  { %1274 = vmatpush.bf16.msra.mxu2 %v3330_v26  ;;  %v3617_v26 = vld [vmem:[#allocation2 + $0x288] sm:$0xf]  ;;  %v4953_v20 = vld [vmem:[#allocation2 + $0x414] sm:$0xf0]  ;;  %v3619_v5 = vld [vmem:[#allocation2 + $0x298] sm:$0xf0] }
  0x7c   :  { %1287 = vmatpush.bf16.msra.mxu3 %v3458_v31  ;;  %v4937_v31 = vld [vmem:[#allocation2 + $0x394] sm:$0xf0]  ;;  %v3618_v36 = vor.u32 %v4905_v27, %v3617_v26  ;;  %v4915_v26 = vld [vmem:[#allocation2 + $0x2ec] sm:$0xf] }
  0x7d   :  { %1249 = vmatpush.bf16.msra.mxu0 %v3694_v35  ;;  %v3363_v35 = vld [vmem:[#allocation2 + $0x98] sm:$0xf0]  ;;  %v3746_v37 = vor.u32 %v4937_v31, %v3745_v29 }
  0x7e   :  { %1262 = vmatpush.bf16.msra.mxu1 %v3822_v38  ;;  %v3874_v38 = vor.u32 %v4969_v33, %v3873_v32  ;;  %v3366_v42 = vor.u32 %v4839_v34, %v3363_v35  ;;  %v3667_v29 = vld [vmem:[#allocation2 + $0x2f8] sm:$0xf0]  ;;  %v3810_v33 = vor.u32 %v4953_v20, %v3809_v18  ;;  %v4979_v34 = vld [vmem:[#allocation2 + $0x4ec] sm:$0xf] }
  0x7f   :  { %1275 = vmatpush.bf16.msra.mxu2 %v3314_v39  ;;  %v3601_v39 = vld [vmem:[#allocation2 + $0x268] sm:$0xf]  ;;  %v3795_v31 = vld [vmem:[#allocation2 + $0x3f8] sm:$0xf0] }
  0x80   :  { %1288 = vmatpush.bf16.msra.mxu3 %v3442_v43  ;;  %v4933_v43 = vld [vmem:[#allocation2 + $0x374] sm:$0xf0]  ;;  %v3602_v48 = vor.u32 %v4901_v40, %v3601_v39  ;;  %v3923_v35 = vld [vmem:[#allocation2 + $0x4f8] sm:$0xf0]  ;;  %v4879_v40 = vld [vmem:[#allocation2 + $0x1cc] sm:$0xf] }
  0x81   :  { %1250 = vmatpush.bf16.msra.mxu0 %v3678_v50  ;;  %v3730_v49 = vor.u32 %v4933_v43, %v3729_v41  ;;  %v3858_v50 = vor.u32 %v4965_v45, %v3857_v44  ;;  %v3523_v41 = vld [vmem:[#allocation2 + $0x1d8] sm:$0xf0]  ;;  %v3926_v43 = vor.u32 %v4979_v34, %v3923_v35  ;;  %v4943_v45 = vld [vmem:[#allocation2 + $0x3cc] sm:$0xf] }
  0x82   :  { %1263 = vmatpush.bf16.msra.mxu1 %v3806_v55  ;;  %v3350_v55 = vor.u32 %v4835_v46, %v3347_v47  ;;  %v3651_v44 = vld [vmem:[#allocation2 + $0x2d8] sm:$0xf0]  ;;  %v4975_v47 = vld [vmem:[#allocation2 + $0x4cc] sm:$0xf] }
  0x83   :  { %1276 = vmatpush.bf16.msra.mxu2 %v3298_v56  ;;  %v4929_v56 = vld [vmem:[#allocation2 + $0x354] sm:$0xf0]  ;;  %v3779_v46 = vld [vmem:[#allocation2 + $0x3d8] sm:$0xf0]  ;;  %v4959_v35 = vld [vmem:[#allocation2 + $0x44c] sm:$0xf] }
  0x84   :  { %1289 = vmatpush.bf16.msra.mxu3 %v3426_v59  ;;  %1251 = vmatmul.bf16.vlgmr.msra.gmra.mxu0 %v5561_v15  ;;  %v4831_v59 = vld [vmem:[#allocation2 + $0x4c] sm:$0xf]  ;;  %v3603_v18 = vld [vmem:[#allocation2 + $0x278] sm:$0xf0] }
  0x85   :  { %1295 = vmatpush.bf16.msrb.mxu0 %v3666_v60  ;;  %1264 = vmatmul.bf16.vlgmr.msra.gmra.mxu1 %v5574_v28  ;;  %v3331_v60 = vld [vmem:[#allocation2 + $0x58] sm:$0xf0] }
  0x86   :  { %1308 = vmatpush.bf16.msrb.mxu1 %v3794_v61  ;;  %1277 = vmatmul.bf16.vlgmr.msra.gmra.mxu2 %v5550_v54  ;;  %v3586_v61 = vor.u32 %v4897_v52, %v3585_v51  ;;  %v3334_v3 = vor.u32 %v4831_v59, %v3331_v60  ;;  %v3782_v51 = vor.u32 %v4943_v45, %v3779_v46  ;;  %v4875_v52 = vld [vmem:[#allocation2 + $0x1ac] sm:$0xf]  ;;  %v3763_v59 = vld [vmem:[#allocation2 + $0x3b8] sm:$0xf0] }
  0x87   :  { %1321 = vmatpush.bf16.msrb.mxu2 %v3922_v62  ;;  %1290 = vmatmul.bf16.vlgmr.msra.gmra.mxu3 %v5568_v25  ;;  %v3714_v62 = vor.u32 %v4929_v56, %v3713_v53  ;;  %v3507_v53 = vld [vmem:[#allocation2 + $0x1b8] sm:$0xf0]  ;;  %v4971_v60 = vld [vmem:[#allocation2 + $0x4ac] sm:$0xf] }
  0x88   :  { %1334 = vmatpush.bf16.msrb.mxu3 %v3414_v2  ;;  %v3697_v2 = vld [vmem:[#allocation2 + $0x328] sm:$0xf]  ;;  %v3731_v20 = vld [vmem:[#allocation2 + $0x378] sm:$0xf0]  ;;  %v4923_v45 = vld [vmem:[#allocation2 + $0x32c] sm:$0xf] }
  0x89   :  { %1296 = vmatpush.bf16.msrb.mxu0 %v3650_v8  ;;  %v3315_v8 = vld [vmem:[#allocation2 + $0x38] sm:$0xf0]  ;;  %v3698_v13 = vor.u32 %v4925_v4, %v3697_v2 }
  0x8a   :  { %1309 = vmatpush.bf16.msrb.mxu1 %v3778_v10  ;;  %v3570_v10 = vor.u32 %v4893_v1, %v3569_v0  ;;  %v3318_v19 = vor.u32 %v4827_v7, %v3315_v8  ;;  %v3766_v0 = vor.u32 %v4939_v58, %v3763_v59  ;;  %v4871_v1 = vld [vmem:[#allocation2 + $0x18c] sm:$0xf]  ;;  %v3491_v2 = vld [vmem:[#allocation2 + $0x198] sm:$0xf0] }
  0x8b   :  { %1322 = vmatpush.bf16.msrb.mxu2 %v3906_v11  ;;  %v3553_v11 = vld [vmem:[#allocation2 + $0x208] sm:$0xf]  ;;  %v3747_v7 = vld [vmem:[#allocation2 + $0x398] sm:$0xf0]  ;;  %v4967_v8 = vld [vmem:[#allocation2 + $0x48c] sm:$0xf] }
  0x8c   :  { %1335 = vmatpush.bf16.msrb.mxu3 %v3398_v16  ;;  %v3681_v16 = vld [vmem:[#allocation2 + $0x308] sm:$0xf]  ;;  %v3554_v27 = vor.u32 %v4889_v12, %v3553_v11  ;;  %v3494_v11 = vor.u32 %v4871_v1, %v3491_v2  ;;  %v3715_v34 = vld [vmem:[#allocation2 + $0x358] sm:$0xf0]  ;;  %v4919_v58 = vld [vmem:[#allocation2 + $0x30c] sm:$0xf] }
  0x8d   :  { %1297 = vmatpush.bf16.msrb.mxu0 %v3634_v22  ;;  %v3299_v22 = vld [vmem:[#allocation2 + $0x18] sm:$0xf0]  ;;  %v3682_v32 = vor.u32 %v4921_v17, %v3681_v16  ;;  %v4899_v16 = vld [vmem:[#allocation2 + $0x26c] sm:$0xf]  ;;  %v4169_v1 = vld [vmem:[#allocation7 + $0x1e0] sm:$0xf] }
  0x8e   :  { %1310 = vmatpush.bf16.msrb.mxu1 %v3762_v23  ;;  %v4883_v23 = vld [vmem:[#allocation2 + $0x1ec] sm:$0xf]  ;;  %v3699_v46 = vld [vmem:[#allocation2 + $0x338] sm:$0xf0]  ;;  %v5044_v2 = vld [vmem:[#allocation7 + $0x1ec] sm:$0xf0] }
  0x8f   :  { %1323 = vmatpush.bf16.msrb.mxu2 %v3890_v24  ;;  %v3539_v24 = vld [vmem:[#allocation2 + $0x1f8] sm:$0xf0] }
  0x90   :  { %1336 = vmatpush.bf16.msrb.mxu3 %v3382_v30  ;;  %v4947_v30 = vld [vmem:[#allocation2 + $0x3ec] sm:$0xf]  ;;  %v3683_v59 = vld [vmem:[#allocation2 + $0x318] sm:$0xf0] }
  0x91   :  { %1298 = vmatpush.bf16.msrb.mxu0 %v3618_v36  ;;  %v3302_v36 = vor.u32 %v4823_v21, %v3299_v22  ;;  %v3798_v39 = vor.u32 %v4947_v30, %v3795_v31  ;;  %v4963_v21 = vld [vmem:[#allocation2 + $0x46c] sm:$0xf]  ;;  %v3859_v22 = vld [vmem:[#allocation2 + $0x478] sm:$0xf0] }
  0x92   :  { %1311 = vmatpush.bf16.msrb.mxu1 %v3746_v37  ;;  %v3542_v37 = vor.u32 %v4883_v23, %v3539_v24  ;;  %v3606_v24 = vor.u32 %v4899_v16, %v3603_v18  ;;  %v4895_v30 = vld [vmem:[#allocation2 + $0x24c] sm:$0xf]  ;;  %v3862_v31 = vor.u32 %v4963_v21, %v3859_v22  ;;  %v5036_v18 = vld [vmem:[#allocation7 + $0x1ac] sm:$0xf0] }
  0x93   :  { %1324 = vmatpush.bf16.msrb.mxu2 %v3874_v38  ;;  %v3670_v38 = vor.u32 %v4915_v26, %v3667_v29  ;;  %v3459_v29 = vld [vmem:[#allocation2 + $0x158] sm:$0xf0]  ;;  %v5000_v21 = vld [vmem:[#allocation7 + $0x8c] sm:$0xf0] }
  0x94   :  { %1337 = vmatpush.bf16.msrb.mxu3 %v3366_v42  ;;  %v4911_v42 = vld [vmem:[#allocation2 + $0x2cc] sm:$0xf] }
  0x95   :  { %1299 = vmatpush.bf16.msrb.mxu0 %v3602_v48  ;;  %v3907_v48 = vld [vmem:[#allocation2 + $0x4d8] sm:$0xf0] }
  0x96   :  { %1312 = vmatpush.bf16.msrb.mxu1 %v3730_v49  ;;  %v3526_v49 = vor.u32 %v4879_v40, %v3523_v41  ;;  %v3910_v56 = vor.u32 %v4975_v47, %v3907_v48  ;;  %v4859_v40 = vld [vmem:[#allocation2 + $0x12c] sm:$0xf]  ;;  %v3443_v41 = vld [vmem:[#allocation2 + $0x138] sm:$0xf0] }
  0x97   :  { %1325 = vmatpush.bf16.msrb.mxu2 %v3858_v50  ;;  %v3654_v50 = vor.u32 %v4911_v42, %v3651_v44  ;;  %v4891_v42 = vld [vmem:[#allocation2 + $0x22c] sm:$0xf]  ;;  %v3571_v44 = vld [vmem:[#allocation2 + $0x238] sm:$0xf0] }
  0x98   :  { %1338 = vmatpush.bf16.msrb.mxu3 %v3350_v55  ;;  %v4907_v55 = vld [vmem:[#allocation2 + $0x2ac] sm:$0xf]  ;;  %v3827_v48 = vld [vmem:[#allocation2 + $0x438] sm:$0xf0] }
  0x99   :  { %1300 = vmatpush.bf16.msrb.mxu0 %v3586_v61  ;;  %v3891_v61 = vld [vmem:[#allocation2 + $0x4b8] sm:$0xf0]  ;;  %v4955_v47 = vld [vmem:[#allocation2 + $0x42c] sm:$0xf] }
  0x9a   :  { %1313 = vmatpush.bf16.msrb.mxu1 %v3714_v62  ;;  %v3510_v62 = vor.u32 %v4875_v52, %v3507_v53  ;;  %v3894_v4 = vor.u32 %v4971_v60, %v3891_v61  ;;  %v3702_v52 = vor.u32 %v4923_v45, %v3699_v46  ;;  %v3427_v53 = vld [vmem:[#allocation2 + $0x118] sm:$0xf0]  ;;  %v4951_v60 = vld [vmem:[#allocation2 + $0x40c] sm:$0xf] }
  0x9b   :  { %1326 = vmatpush.bf16.msrb.mxu2 %v3842_v63  ;;  %v3638_v63 = vor.u32 %v4907_v55, %v3635_v57  ;;  %v4887_v55 = vld [vmem:[#allocation2 + $0x20c] sm:$0xf]  ;;  %v3830_v57 = vor.u32 %v4955_v47, %v3827_v48  ;;  %v3811_v61 = vld [vmem:[#allocation2 + $0x418] sm:$0xf0]  ;;  %v4073_v47 = vld [vmem:[#allocation7 + $0x120] sm:$0xf] }
  0x9c   :  { %1339 = vmatpush.bf16.msrb.mxu3 %v3334_v3  ;;  %v4903_v3 = vld [vmem:[#allocation2 + $0x28c] sm:$0xf]  ;;  %v5020_v48 = vld [vmem:[#allocation7 + $0x12c] sm:$0xf0] }
  0x9d   :  { %1301 = vmatpush.bf16.msrb.mxu0 %v3570_v10  ;;  %v3875_v10 = vld [vmem:[#allocation2 + $0x498] sm:$0xf0]  ;;  %v3622_v12 = vor.u32 %v4903_v3, %v3619_v5  ;;  %v3814_v5 = vor.u32 %v4951_v60, %v3811_v61  ;;  %v4043_v60 = vld [vmem:[#allocation7 + $0xf0] sm:$0xf0]  ;;  %v4057_v61 = vld [vmem:[#allocation7 + $0x100] sm:$0xf] }
  0x9e   :  { %1314 = vmatpush.bf16.msrb.mxu1 %v3698_v13  ;;  %v4867_v13 = vld [vmem:[#allocation2 + $0x16c] sm:$0xf]  ;;  %v3878_v17 = vor.u32 %v4967_v8, %v3875_v10  ;;  %v5008_v8 = vld [vmem:[#allocation7 + $0xcc] sm:$0xf0]  ;;  %v4170_v10 = vor.u32 %v5044_v2, %v4169_v1  ;;  %v4171_v1 = vld [vmem:[#allocation7 + $0x1f0] sm:$0xf0] }
  0x9f   :  { %1327 = vmatpush.bf16.msrb.mxu2 %v3826_v14  ;;  %v3475_v14 = vld [vmem:[#allocation2 + $0x178] sm:$0xf0] }
  0xa0   :  { %1340 = vmatpush.bf16.msrb.mxu3 %v3318_v19  ;;  %v4931_v19 = vld [vmem:[#allocation2 + $0x36c] sm:$0xf]  ;;  %v3478_v23 = vor.u32 %v4867_v13, %v3475_v14  ;;  %v4009_v13 = vld [vmem:[#allocation7 + $0xa0] sm:$0xf]  ;;  %v5004_v14 = vld [vmem:[#allocation7 + $0xac] sm:$0xf0] }
  0xa1   :  { %1302 = vmatpush.bf16.msrb.mxu0 %v3554_v27  ;;  %v3734_v26 = vor.u32 %v4931_v19, %v3731_v20  ;;  %v4863_v27 = vld [vmem:[#allocation2 + $0x14c] sm:$0xf]  ;;  %v4010_v19 = vor.u32 %v5004_v14, %v4009_v13  ;;  %v3993_v20 = vld [vmem:[#allocation7 + $0x80] sm:$0xf]  ;;  %v5038_v14 = vld [vmem:[#allocation7 + $0x1c4] sm:$0xf] }
  0xa2   :  { %1315 = vmatpush.bf16.msrb.mxu1 %v3682_v32  ;;  %v3587_v32 = vld [vmem:[#allocation2 + $0x258] sm:$0xf0] }
  0xa3   :  { %1328 = vmatpush.bf16.msrb.mxu2 %v3810_v33  ;;  %v4927_v33 = vld [vmem:[#allocation2 + $0x34c] sm:$0xf] }
  0xa4   :  { %1341 = vmatpush.bf16.msrb.mxu3 %v3302_v36  ;;  %1303 = vmatmul.bf16.vlgmr.msrb.gmra.mxu0 %v5556_v9  ;;  %v3843_v36 = vld [vmem:[#allocation2 + $0x458] sm:$0xf0] }
  0xa5   :  { %1347 = vmatpush.bf16.msra.mxu0 %v3542_v37  ;;  %1316 = vmatmul.bf16.vlgmr.msrb.gmra.mxu1 %v5561_v15  ;;  %v3462_v37 = vor.u32 %v4863_v27, %v3459_v29  ;;  %v3977_v27 = vld [vmem:[#allocation7 + $0x60] sm:$0xf]  ;;  %v4996_v29 = vld [vmem:[#allocation7 + $0x6c] sm:$0xf0] }
  0xa6   :  { %1360 = vmatpush.bf16.msra.mxu1 %v3670_v38  ;;  %1329 = vmatmul.bf16.vlgmr.msrb.gmra.mxu2 %v5574_v28  ;;  %v3590_v38 = vor.u32 %v4895_v30, %v3587_v32  ;;  %v5028_v30 = vld [vmem:[#allocation7 + $0x16c] sm:$0xf0] }
  0xa7   :  { %1373 = vmatpush.bf16.msra.mxu2 %v3798_v39  ;;  %1342 = vmatmul.bf16.vlgmr.msrb.gmra.mxu3 %v5550_v54  ;;  %v3750_v54 = vor.u32 %v4935_v6, %v3747_v7  ;;  %v3718_v39 = vor.u32 %v4927_v33, %v3715_v34  ;;  %v4025_v7 = vld [vmem:[#allocation7 + $0xc0] sm:$0xf]  ;;  %v4992_v32 = vld [vmem:[#allocation7 + $0x4c] sm:$0xf0] }
  0xa8   :  { %1386 = vmatpush.bf16.msra.mxu3 %v3926_v43  ;;  %v3846_v43 = vor.u32 %v4959_v35, %v3843_v36  ;;  %v4089_v34 = vld [vmem:[#allocation7 + $0x140] sm:$0xf]  ;;  %v5024_v35 = vld [vmem:[#allocation7 + $0x14c] sm:$0xf0]  ;;  %v5592_v36 = vld [vmem:[#allocation5] sm:$0xf] }
  0xa9   :  { %1348 = vmatpush.bf16.msra.mxu0 %v3526_v49  ;;  %v3446_v49 = vor.u32 %v4859_v40, %v3443_v41  ;;  %v4988_v41 = vld [vmem:[#allocation7 + $0x2c] sm:$0xf0]  ;;  %v331_v45 = vperm.slane %v5592_v36, 0 }
  0xaa   :  { %1361 = vmatpush.bf16.msra.mxu1 %v3654_v50  ;;  %v4855_v50 = vld [vmem:[#allocation2 + $0x10c] sm:$0xf] }
  0xab   :  { %1374 = vmatpush.bf16.msra.mxu2 %v3782_v51  ;;  %v3574_v51 = vor.u32 %v4891_v42, %v3571_v44  ;;  %v4090_v42 = vor.u32 %v5024_v35, %v4089_v34  ;;  %v5076_v44 = vld [vmem:[#allocation7 + $0x2ec] sm:$0xf0] }
  0xac   :  { %1387 = vmatpush.bf16.msra.mxu3 %v3910_v56  ;;  %v3555_v56 = vld [vmem:[#allocation2 + $0x218] sm:$0xf0]  ;;  %v5060_v34 = vld [vmem:[#allocation7 + $0x26c] sm:$0xf0] }
  0xad   :  { %1349 = vmatpush.bf16.msra.mxu0 %v3510_v62  ;;  %v4041_v62 = vld [vmem:[#allocation7 + $0xe0] sm:$0xf]  ;;  %v3558_v3 = vor.u32 %v4887_v55, %v3555_v56  ;;  %v5010_v55 = vld [vmem:[#allocation7 + $0xe4] sm:$0xf]  ;;  %v4074_v56 = vor.u32 %v5020_v48, %v4073_v47  ;;  %v5056_v47 = vld [vmem:[#allocation7 + $0x24c] sm:$0xf0] }
  0xae   :  { %1362 = vmatpush.bf16.msra.mxu1 %v3638_v63  ;;  %v5012_v63 = vld [vmem:[#allocation7 + $0xec] sm:$0xf0] }
  0xaf   :  { %1375 = vmatpush.bf16.msra.mxu2 %v3766_v0  ;;  %v3430_v0 = vor.u32 %v4855_v50, %v3427_v53  ;;  %v4042_v6 = vor.u32 %v5012_v63, %v4041_v62  ;;  %v4984_v53 = vld [vmem:[#allocation7 + $0xc] sm:$0xf0] }
  0xb0   :  { %1388 = vmatpush.bf16.msra.mxu3 %v3894_v4  ;;  %v3686_v4 = vor.u32 %v4919_v58, %v3683_v59  ;;  %v5072_v58 = vld [vmem:[#allocation7 + $0x2cc] sm:$0xf0] }
  0xb1   :  { %1350 = vmatpush.bf16.msra.mxu0 %v3494_v11  ;;  %v4153_v11 = vld [vmem:[#allocation7 + $0x1c0] sm:$0xf]  ;;  %v5016_v62 = vld [vmem:[#allocation7 + $0x10c] sm:$0xf0] }
  0xb2   :  { %1363 = vmatpush.bf16.msra.mxu1 %v3622_v12  ;;  %v5040_v12 = vld [vmem:[#allocation7 + $0x1cc] sm:$0xf0] }
  0xb3   :  { %1376 = vmatpush.bf16.msra.mxu2 %v3750_v54  ;;  %v4026_v54 = vor.u32 %v5008_v8, %v4025_v7  ;;  %v4154_v16 = vor.u32 %v5040_v12, %v4153_v11  ;;  %v4027_v7 = vld [vmem:[#allocation7 + $0xd0] sm:$0xf0]  ;;  %v4265_v12 = vld [vmem:[#allocation7 + $0x2a0] sm:$0xf] }
  0xb4   :  { %1389 = vmatpush.bf16.msra.mxu3 %v3878_v17  ;;  %v4137_v17 = vld [vmem:[#allocation7 + $0x1a0] sm:$0xf] }
  0xb5   :  { %1351 = vmatpush.bf16.msra.mxu0 %v3478_v23  ;;  %v4138_v22 = vor.u32 %v5036_v18, %v4137_v17  ;;  %v4121_v23 = vld [vmem:[#allocation7 + $0x180] sm:$0xf] }
  0xb6   :  { %1364 = vmatpush.bf16.msra.mxu1 %v3606_v24 }
  0xb7   :  { %1377 = vmatpush.bf16.msra.mxu2 %v3734_v26  ;;  %v3994_v26 = vor.u32 %v5000_v21, %v3993_v20  ;;  %v4011_v21 = vld [vmem:[#allocation7 + $0xb0] sm:$0xf0] }
  0xb8   :  { %1390 = vmatpush.bf16.msra.mxu3 %v3862_v31  ;;  %v3978_v31 = vor.u32 %v4996_v29, %v3977_v27 }
  0xb9   :  { %1352 = vmatpush.bf16.msra.mxu0 %v3462_v37 }
  0xba   :  { %1365 = vmatpush.bf16.msra.mxu1 %v3590_v38 }
  0xbb   :  { %1378 = vmatpush.bf16.msra.mxu2 %v3718_v39  ;;  %v3945_v39 = vld [vmem:[#allocation7 + $0x20] sm:$0xf] }
  0xbc   :  { %1391 = vmatpush.bf16.msra.mxu3 %v3846_v43  ;;  %v4297_v43 = vld [vmem:[#allocation7 + $0x2e0] sm:$0xf] }
  0xbd   :  { %1353 = vmatpush.bf16.msra.mxu0 %v3446_v49  ;;  %v4298_v49 = vor.u32 %v5076_v44, %v4297_v43  ;;  %v5026_v44 = vld [vmem:[#allocation7 + $0x164] sm:$0xf] }
  0xbe   :  { %1366 = vmatpush.bf16.msra.mxu1 %v3574_v51  ;;  %v3946_v51 = vor.u32 %v4988_v41, %v3945_v39  ;;  %v3979_v41 = vld [vmem:[#allocation7 + $0x70] sm:$0xf0] }
  0xbf   :  { %1379 = vmatpush.bf16.msra.mxu2 %v3702_v52  ;;  %v3929_v52 = vld [vmem:[#allocation7] sm:$0xf] }
  0xc0   :  { %1392 = vmatpush.bf16.msra.mxu3 %v3830_v57  ;;  %v4281_v57 = vld [vmem:[#allocation7 + $0x2c0] sm:$0xf]  ;;  %v3930_v2 = vor.u32 %v4984_v53, %v3929_v52  ;;  %v3963_v53 = vld [vmem:[#allocation7 + $0x50] sm:$0xf0] }
  0xc1   :  { %1354 = vmatpush.bf16.msra.mxu0 %v3430_v0  ;;  %v4282_v63 = vor.u32 %v5072_v58, %v4281_v57  ;;  %v5042_v0 = vld [vmem:[#allocation7 + $0x1e4] sm:$0xf]  ;;  %v5052_v57 = vld [vmem:[#allocation7 + $0x22c] sm:$0xf0] }
  0xc2   :  { %1367 = vmatpush.bf16.msra.mxu1 %v3558_v3  ;;  %v4174_v11 = vor.u32 %v5042_v0, %v4171_v1  ;;  %v5022_v58 = vld [vmem:[#allocation7 + $0x144] sm:$0xf]  ;;  %v3947_v0 = vld [vmem:[#allocation7 + $0x30] sm:$0xf0] }
  0xc3   :  { %1380 = vmatpush.bf16.msra.mxu2 %v3686_v4  ;;  %v4046_v4 = vor.u32 %v5010_v55, %v4043_v60 }
  0xc4   :  { %1393 = vmatpush.bf16.msra.mxu3 %v3814_v5  ;;  %1355 = vmatmul.bf16.vlgmr.msra.gmra.mxu0 %v5568_v25  ;;  %v5032_v25 = vld [vmem:[#allocation7 + $0x18c] sm:$0xf0]  ;;  %v1148_v24 = vpop.f32.mrf.mxu0  ;;  %v5006_v5 = vld [vmem:[#allocation7 + $0xc4] sm:$0xf] }
  0xc5   :  { %2185 = vmatpush.bf16.msrb.mxu0 %v4042_v6  ;;  %1368 = vmatmul.bf16.vlgmr.msra.gmra.mxu1 %v5556_v9  ;;  %v4122_v9 = vor.u32 %v5032_v25, %v4121_v23  ;;  %v1149_v59 = vadd.f32 %v1148_v24, %v331_v45  ;;  %v4058_v6 = vor.u32 %v5016_v62, %v4057_v61  ;;  %v4249_v23 = vld [vmem:[#allocation7 + $0x280] sm:$0xf]  ;;  %v5064_v25 = vld [vmem:[#allocation7 + $0x28c] sm:$0xf0]  ;;  %v5034_v24 = vld [vmem:[#allocation7 + $0x1a4] sm:$0xf] }
  0xc6   :  { %2198 = vmatpush.bf16.msrb.mxu1 %v4170_v10  ;;  %1381 = vmatmul.bf16.vlgmr.msra.gmra.mxu2 %v5561_v15  ;;  %v4105_v15 = vld [vmem:[#allocation7 + $0x160] sm:$0xf]  ;;  %v4030_v18 = vor.u32 %v5006_v5, %v4027_v7  ;;  %v4250_v27 = vor.u32 %v5064_v25, %v4249_v23  ;;  %v4107_v45 = vld [vmem:[#allocation7 + $0x170] sm:$0xf0]  ;;  %v5074_v7 = vld [vmem:[#allocation7 + $0x2e4] sm:$0xf] }
  0xc7   :  { %1394 = vmatmul.bf16.vlgmr.msra.gmra.mxu3 %v5574_v28  ;;  %v3961_v28 = vld [vmem:[#allocation7 + $0x40] sm:$0xf]  ;;  %v4106_v33 = vor.u32 %v5028_v30, %v4105_v15  ;;  %2211 = vmatpush.bf16.msrb.mxu2 %v4298_v49  ;;  %v4998_v15 = vld [vmem:[#allocation7 + $0x84] sm:$0xf]  ;;  %v3995_v30 = vld [vmem:[#allocation7 + $0x90] sm:$0xf0]  ;;  %v4110_v55 = vor.u32 %v5026_v44, %v4107_v45 }
  0xc8   :  { %v3962_v38 = vor.u32 %v4992_v32, %v3961_v28  ;;  %v1161_v40 = vpop.f32.mrf.mxu1  ;;  %v5030_v28 = vld [vmem:[#allocation7 + $0x184] sm:$0xf]  ;;  %v4123_v32 = vld [vmem:[#allocation7 + $0x190] sm:$0xf0]  ;;  %v4185_v5 = vld [vmem:[#allocation7 + $0x200] sm:$0xf] }
  0xc9   :  { %2186 = vmatpush.bf16.msrb.mxu0 %v4026_v54  ;;  %v1162_v8 = vadd.f32 %v1161_v40, %v1149_v59  ;;  %v5068_v54 = vld [vmem:[#allocation7 + $0x2ac] sm:$0xf0]  ;;  %v4994_v40 = vld [vmem:[#allocation7 + $0x64] sm:$0xf]  ;;  %v4126_v43 = vor.u32 %v5030_v28, %v4123_v32  ;;  %v4091_v59 = vld [vmem:[#allocation7 + $0x150] sm:$0xf0] }
  0xca   :  { %2199 = vmatpush.bf16.msrb.mxu1 %v4154_v16  ;;  %v4155_v16 = vld [vmem:[#allocation7 + $0x1d0] sm:$0xf0]  ;;  %v4266_v17 = vor.u32 %v5068_v54, %v4265_v12  ;;  %v4982_v54 = vld [vmem:[#allocation7 + $0x4] sm:$0xf]  ;;  %v4409_v32 = vld [vmem:[#allocation7 + $0x3c0] sm:$0xf] }
  0xcb   :  { %v1174_v46 = vpop.f32.mrf.mxu2  ;;  %2212 = vmatpush.bf16.msrb.mxu2 %v4282_v63  ;;  %v4986_v63 = vld [vmem:[#allocation7 + $0x24] sm:$0xf]  ;;  %v4299_v12 = vld [vmem:[#allocation7 + $0x2f0] sm:$0xf0]  ;;  %v4393_v44 = vld [vmem:[#allocation7 + $0x3a0] sm:$0xf] }
  0xcc   :  { %v1150_v37 = vpop.f32.mrf.mxu0  ;;  %v1187_v50 = vpop.f32.mrf.mxu3  ;;  %v1175_v20 = vadd.f32 %v1174_v46, %v1162_v8  ;;  %v4217_v46 = vld [vmem:[#allocation7 + $0x240] sm:$0xf]  ;;  %v5018_v8 = vld [vmem:[#allocation7 + $0x124] sm:$0xf]  ;;  %v4059_v25 = vld [vmem:[#allocation7 + $0x110] sm:$0xf0] }
  0xcd   :  { %2187 = vmatpush.bf16.msrb.mxu0 %v4010_v19  ;;  %v5002_v19 = vld [vmem:[#allocation7 + $0xa4] sm:$0xf]  ;;  %v4218_v49 = vor.u32 %v5056_v47, %v4217_v46  ;;  %v5100_v45 = vld [vmem:[#allocation7 + $0x3ac] sm:$0xf0]  ;;  %v4017_v46 = vld [vmem:[#allocation7 + $0xa8] sm:$0xf] }
  0xce   :  { %2200 = vmatpush.bf16.msrb.mxu1 %v4138_v22  ;;  %v4158_v22 = vor.u32 %v5038_v14, %v4155_v16  ;;  %v4014_v29 = vor.u32 %v5002_v19, %v4011_v21  ;;  %v3950_v14 = vor.u32 %v4986_v63, %v3947_v0  ;;  %v3931_v16 = vld [vmem:[#allocation7 + $0x10] sm:$0xf0]  ;;  %v5108_v21 = vld [vmem:[#allocation7 + $0x3ec] sm:$0xf0]  ;;  %v5014_v23 = vld [vmem:[#allocation7 + $0x104] sm:$0xf] }
  0xcf   :  { %2213 = vmatpush.bf16.msrb.mxu2 %v4266_v17  ;;  %v4049_v17 = vld [vmem:[#allocation7 + $0xe8] sm:$0xf]  ;;  %v4062_v28 = vor.u32 %v5014_v23, %v4059_v25  ;;  %v5005_v47 = vld [vmem:[#allocation7 + $0xb4] sm:$0xf0]  ;;  %v5050_v23 = vld [vmem:[#allocation7 + $0x224] sm:$0xf] }
  0xd0   :  { %v1163_v3 = vpop.f32.mrf.mxu1  ;;  %v4203_v25 = vld [vmem:[#allocation7 + $0x230] sm:$0xf0] }
  0xd1   :  { %2188 = vmatpush.bf16.msrb.mxu0 %v3994_v26  ;;  %v4139_v26 = vld [vmem:[#allocation7 + $0x1b0] sm:$0xf0] }
  0xd2   :  { %2201 = vmatpush.bf16.msrb.mxu1 %v4122_v9  ;;  %v1188_v9 = vadd.f32 %v1187_v50, %v1175_v20  ;;  %v3982_v50 = vor.u32 %v4994_v40, %v3979_v41  ;;  %v4425_v20 = vld [vmem:[#allocation7 + $0x3e0] sm:$0xf]  ;;  %v4267_v40 = vld [vmem:[#allocation7 + $0x2b0] sm:$0xf0] }
  0xd3   :  { %v1176_v10 = vpop.f32.mrf.mxu2  ;;  %2214 = vmatpush.bf16.msrb.mxu2 %v4250_v27  ;;  %v332_v27 = vperm.slane %v5592_v36, 1 }
  0xd4   :  { %v1189_v13 = vpop.f32.mrf.mxu3  ;;  %v4075_v10 = vld [vmem:[#allocation7 + $0x130] sm:$0xf0] }
  0xd5   :  { %2189 = vmatpush.bf16.msrb.mxu0 %v3978_v31  ;;  %v4142_v31 = vor.u32 %v5034_v24, %v4139_v26  ;;  %v4302_v13 = vor.u32 %v5074_v7, %v4299_v12  ;;  %v4078_v19 = vor.u32 %v5018_v8, %v4075_v10  ;;  %v4426_v24 = vor.u32 %v5108_v21, %v4425_v20  ;;  %v4283_v26 = vld [vmem:[#allocation7 + $0x2d0] sm:$0xf0]  ;;  %v4993_v20 = vld [vmem:[#allocation7 + $0x54] sm:$0xf0] }
  0xd6   :  { %2202 = vmatpush.bf16.msrb.mxu1 %v4106_v33  ;;  %v4233_v33 = vld [vmem:[#allocation7 + $0x260] sm:$0xf]  ;;  %v4219_v12 = vld [vmem:[#allocation7 + $0x250] sm:$0xf0] }
  0xd7   :  { %v4234_v35 = vor.u32 %v5060_v34, %v4233_v33  ;;  %2224 = vmatpush.bf16.msrb.mxu3 %v4426_v24  ;;  %v5104_v33 = vld [vmem:[#allocation7 + $0x3cc] sm:$0xf0]  ;;  %v4033_v34 = vld [vmem:[#allocation7 + $0xc8] sm:$0xf] }
  0xd9   :  { %2190 = vmatpush.bf16.msrb.mxu0 %v3962_v38  ;;  %v3998_v38 = vor.u32 %v4998_v15, %v3995_v30  ;;  %2215 = vmatpush.bf16.msrb.mxu2 %v4234_v35  ;;  %v3934_v15 = vor.u32 %v4982_v54, %v3931_v16  ;;  %v5009_v35 = vld [vmem:[#allocation7 + $0xd4] sm:$0xf0]  ;;  %v4177_v54 = vld [vmem:[#allocation7 + $0x1e8] sm:$0xf] }
  0xda   :  { %2203 = vmatpush.bf16.msrb.mxu1 %v4090_v42  ;;  %v5045_v16 = vld [vmem:[#allocation7 + $0x1f4] sm:$0xf0] }
  0xdb   :  { %v4178_v24 = vor.u32 %v5045_v16, %v4177_v54  ;;  %v5098_v54 = vld [vmem:[#allocation7 + $0x3a4] sm:$0xf] }
  0xdd   :  { %2191 = vmatpush.bf16.msrb.mxu0 %v3946_v51  ;;  %v4990_v51 = vld [vmem:[#allocation7 + $0x44] sm:$0xf]  ;;  %2216 = vmatpush.bf16.msrb.mxu2 %v4218_v49 }
  0xde   :  { %2204 = vmatpush.bf16.msrb.mxu1 %v4074_v56  ;;  %v4201_v56 = vld [vmem:[#allocation7 + $0x220] sm:$0xf]  ;;  %v3966_v62 = vor.u32 %v4990_v51, %v3963_v53  ;;  %v4018_v53 = vor.u32 %v5005_v47, %v4017_v46  ;;  %v4985_v46 = vld [vmem:[#allocation7 + $0x14] sm:$0xf0]  ;;  %v4145_v47 = vld [vmem:[#allocation7 + $0x1a8] sm:$0xf] }
  0xdf   :  { %v4202_v60 = vor.u32 %v5052_v57, %v4201_v56  ;;  %v4377_v56 = vld [vmem:[#allocation7 + $0x380] sm:$0xf]  ;;  %v5096_v57 = vld [vmem:[#allocation7 + $0x38c] sm:$0xf0] }
  0xe1   :  { %2192 = vmatpush.bf16.msrb.mxu0 %v3930_v2  ;;  %v1200_v37 = vpop.f32.mrf.mxu0  ;;  %2217 = vmatpush.bf16.msrb.mxu2 %v4202_v60  ;;  %v5058_v60 = vld [vmem:[#allocation7 + $0x264] sm:$0xf] }
  0xe2   :  { %2205 = vmatpush.bf16.msrb.mxu1 %v4058_v6  ;;  %v1201_v39 = vadd.f32 %v1200_v37, %v1188_v9  ;;  %v5595_v42 = vpop.f32.mrf.mxu1  ;;  %v5048_v6 = vld [vmem:[#allocation7 + $0x20c] sm:$0xf0]  ;;  %v4410_v37 = vor.u32 %v5104_v33, %v4409_v32 }
  0xe4   :  { %v1399_v48 = vmax.f32 %v1201_v39, 0.0  ;;  %v5066_v39 = vld [vmem:[#allocation7 + $0x2a4] sm:$0xf]  ;;  %2225 = vmatpush.bf16.msrb.mxu3 %v4410_v37 }
  0xe5   :  { %2237 = vmatpush.bf16.msra.mxu0 %v4046_v4  ;;  %v4094_v4 = vor.u32 %v5022_v58, %v4091_v59  ;;  %v4270_v41 = vor.u32 %v5066_v39, %v4267_v40  ;;  %v5001_v58 = vld [vmem:[#allocation7 + $0x94] sm:$0xf0]  ;;  %v4378_v59 = vor.u32 %v5096_v57, %v4377_v56  ;;  %v5046_v39 = vld [vmem:[#allocation7 + $0x204] sm:$0xf]  ;;  %v4187_v40 = vld [vmem:[#allocation7 + $0x210] sm:$0xf0] }
  0xe6   :  { %2250 = vmatpush.bf16.msra.mxu1 %v4174_v11  ;;  %v5597_v52 = vpack.c.bf16 %v1399_v48, %v1399_v48  ;;  %v4186_v11 = vor.u32 %v5048_v6, %v4185_v5  ;;  %v4394_v48 = vor.u32 %v5100_v45, %v4393_v44  ;;  %v3985_v5 = vld [vmem:[#allocation7 + $0x68] sm:$0xf]  ;;  %v4997_v6 = vld [vmem:[#allocation7 + $0x74] sm:$0xf0]  ;;  %v4190_v44 = vor.u32 %v5046_v39, %v4187_v40  ;;  %v4427_v56 = vld [vmem:[#allocation7 + $0x3f0] sm:$0xf0] }
  0xe8   :  { %2193 = vmatmul.bf16.vlgmr.msrb.gmra.mxu0 %v5597_v52  ;;  %2218 = vmatpush.bf16.msrb.mxu2 %v4186_v11  ;;  %v5054_v11 = vld [vmem:[#allocation7 + $0x244] sm:$0xf] }
  0xe9   :  { %2238 = vmatpush.bf16.msra.mxu0 %v4030_v18  ;;  %v5600_v61 = vpop.f32.mrf.mxu2  ;;  %v1202_v1 = vpop.f32.mrf.mxu0  ;;  %v5013_v18 = vld [vmem:[#allocation7 + $0xf4] sm:$0xf0]  ;;  %2226 = vmatpush.bf16.msrb.mxu3 %v4394_v48 }
  0xea   :  { %2251 = vmatpush.bf16.msra.mxu1 %v4158_v22  ;;  %v5602_v2 = vpop.f32.mrf.mxu3  ;;  %v1215_v3 = vpop.f32.mrf.mxu1  ;;  %v5070_v22 = vld [vmem:[#allocation7 + $0x2c4] sm:$0xf]  ;;  %v4361_v1 = vld [vmem:[#allocation7 + $0x360] sm:$0xf]  ;;  %v5037_v48 = vld [vmem:[#allocation7 + $0x1b4] sm:$0xf0] }
  0xeb   :  { %v4286_v9 = vor.u32 %v5070_v22, %v4283_v26  ;;  %v5092_v3 = vld [vmem:[#allocation7 + $0x36c] sm:$0xf0]  ;;  %v4206_v26 = vor.u32 %v5050_v23, %v4203_v25  ;;  %v4146_v57 = vor.u32 %v5037_v48, %v4145_v47  ;;  %v4379_v23 = vld [vmem:[#allocation7 + $0x390] sm:$0xf0]  ;;  %v4999_v25 = vld [vmem:[#allocation7 + $0x8c] sm:$0xf] }
  0xec   :  { %2263 = vmatpush.bf16.msra.mxu2 %v4302_v13  ;;  %v4362_v7 = vor.u32 %v5092_v3, %v4361_v1  ;;  %v4222_v13 = vor.u32 %v5054_v11, %v4219_v12  ;;  %v5102_v1 = vld [vmem:[#allocation7 + $0x3c4] sm:$0xf]  ;;  %v4411_v3 = vld [vmem:[#allocation7 + $0x3d0] sm:$0xf0]  ;;  %v333_v11 = vperm.slane %v5592_v36, 2 }
  0xed   :  { %2239 = vmatpush.bf16.msra.mxu0 %v4014_v29  ;;  %2227 = vmatpush.bf16.msrb.mxu3 %v4378_v59  ;;  %v4179_v47 = vld [vmem:[#allocation7 + $0x1f8] sm:$0xf0]  ;;  %v4347_v48 = vld [vmem:[#allocation7 + $0x350] sm:$0xf0] }
  0xee   :  { %2252 = vmatpush.bf16.msra.mxu1 %v4142_v31  ;;  %v4050_v31 = vor.u32 %v5013_v18, %v4049_v17  ;;  %v4345_v17 = vld [vmem:[#allocation7 + $0x340] sm:$0xf]  ;;  %v5088_v18 = vld [vmem:[#allocation7 + $0x34c] sm:$0xf0] }
  0xef   :  { %v4346_v21 = vor.u32 %v5088_v18, %v4345_v17  ;;  %v4097_v18 = vld [vmem:[#allocation7 + $0x148] sm:$0xf] }
  0xf0   :  { %2264 = vmatpush.bf16.msra.mxu2 %v4286_v9  ;;  %v3953_v9 = vld [vmem:[#allocation7 + $0x28] sm:$0xf] }
  0xf1   :  { %2240 = vmatpush.bf16.msra.mxu0 %v3998_v38  ;;  %v1228_v29 = vpop.f32.mrf.mxu2  ;;  %v1214_v38 = vadd.f32 %v5595_v42, %v332_v27  ;;  %v4251_v42 = vld [vmem:[#allocation7 + $0x290] sm:$0xf0]  ;;  %2228 = vmatpush.bf16.msrb.mxu3 %v4362_v7 }
  0xf2   :  { %2253 = vmatpush.bf16.msra.mxu1 %v4126_v43  ;;  %v1241_v30 = vpop.f32.mrf.mxu3  ;;  %v4034_v43 = vor.u32 %v5009_v35, %v4033_v34  ;;  %v4329_v34 = vld [vmem:[#allocation7 + $0x320] sm:$0xf]  ;;  %v5084_v35 = vld [vmem:[#allocation7 + $0x32c] sm:$0xf0] }
  0xf3   :  { %v1227_v49 = vadd.f32 %v5600_v61, %v1214_v38  ;;  %v5041_v30 = vld [vmem:[#allocation7 + $0x1d4] sm:$0xf0]  ;;  %v4330_v38 = vor.u32 %v5084_v35, %v4329_v34  ;;  %v4995_v34 = vld [vmem:[#allocation7 + $0x6c] sm:$0xf]  ;;  %v3987_v35 = vld [vmem:[#allocation7 + $0x78] sm:$0xf0] }
  0xf4   :  { %2265 = vmatpush.bf16.msra.mxu2 %v4270_v41 }
  0xf5   :  { %2241 = vmatpush.bf16.msra.mxu0 %v3982_v50  ;;  %v5062_v50 = vld [vmem:[#allocation7 + $0x284] sm:$0xf]  ;;  %v1240_v63 = vadd.f32 %v5602_v2, %v1227_v49  ;;  %2229 = vmatpush.bf16.msrb.mxu3 %v4346_v21  ;;  %v4313_v49 = vld [vmem:[#allocation7 + $0x300] sm:$0xf] }
  0xf6   :  { %2254 = vmatpush.bf16.msra.mxu1 %v4110_v55  ;;  %v4254_v51 = vor.u32 %v5062_v50, %v4251_v42  ;;  %v4001_v55 = vld [vmem:[#allocation7 + $0x88] sm:$0xf]  ;;  %v5080_v50 = vld [vmem:[#allocation7 + $0x30c] sm:$0xf0]  ;;  %v5106_v42 = vld [vmem:[#allocation7 + $0x3e4] sm:$0xf] }
  0xf7   :  { %v4002_v61 = vor.u32 %v5001_v58, %v4001_v55  ;;  %v4314_v55 = vor.u32 %v5080_v50, %v4313_v49  ;;  %v4430_v58 = vor.u32 %v5106_v42, %v4427_v56  ;;  %v4991_v49 = vld [vmem:[#allocation7 + $0x4c] sm:$0xf]  ;;  %v3971_v50 = vld [vmem:[#allocation7 + $0x58] sm:$0xf0]  ;;  %v4305_v56 = vld [vmem:[#allocation7 + $0x2e8] sm:$0xf] }
  0xf8   :  { %2266 = vmatpush.bf16.msra.mxu2 %v4254_v51  ;;  %v5011_v51 = vld [vmem:[#allocation7 + $0xec] sm:$0xf] }
  0xf9   :  { %2242 = vmatpush.bf16.msra.mxu0 %v3966_v62  ;;  %v4235_v62 = vld [vmem:[#allocation7 + $0x270] sm:$0xf0]  ;;  %2230 = vmatpush.bf16.msrb.mxu3 %v4330_v38 }
  0xfa   :  { %2255 = vmatpush.bf16.msra.mxu1 %v4094_v4  ;;  %v4238_v0 = vor.u32 %v5058_v60, %v4235_v62  ;;  %v4129_v60 = vld [vmem:[#allocation7 + $0x188] sm:$0xf]  ;;  %v5033_v62 = vld [vmem:[#allocation7 + $0x194] sm:$0xf0] }
  0xfb   :  { %v4130_v7 = vor.u32 %v5033_v62, %v4129_v60  ;;  %v4163_v60 = vld [vmem:[#allocation7 + $0x1d8] sm:$0xf0]  ;;  %v5082_v62 = vld [vmem:[#allocation7 + $0x324] sm:$0xf] }
  0xfc   :  { %2267 = vmatpush.bf16.msra.mxu2 %v4238_v0 }
  0xfd   :  { %2243 = vmatpush.bf16.msra.mxu0 %v3950_v14  ;;  %v3986_v14 = vor.u32 %v4997_v6, %v3985_v5  ;;  %2231 = vmatpush.bf16.msrb.mxu3 %v4314_v55  ;;  %v4035_v5 = vld [vmem:[#allocation7 + $0xd8] sm:$0xf0]  ;;  %v4414_v6 = vor.u32 %v5102_v1, %v4411_v3  ;;  %v4987_v1 = vld [vmem:[#allocation7 + $0x2c] sm:$0xf] }
  0xfe   :  { %2256 = vmatpush.bf16.msra.mxu1 %v4078_v19  ;;  %v3969_v19 = vld [vmem:[#allocation7 + $0x48] sm:$0xf]  ;;  %v3955_v3 = vld [vmem:[#allocation7 + $0x38] sm:$0xf0] }
  0xff   :  { %v3970_v29 = vor.u32 %v4993_v20, %v3969_v19  ;;  %v5025_v19 = vld [vmem:[#allocation7 + $0x154] sm:$0xf0] }
 0x100   :  { %2268 = vmatpush.bf16.msra.mxu2 %v4222_v13  ;;  %v4395_v13 = vld [vmem:[#allocation7 + $0x3b0] sm:$0xf0] }
 0x101   :  { %2244 = vmatpush.bf16.msra.mxu0 %v3934_v15  ;;  %v1252_v4 = vpop.f32.mrf.mxu0  ;;  %v4161_v15 = vld [vmem:[#allocation7 + $0x1c8] sm:$0xf]  ;;  %2276 = vmatpush.bf16.msra.mxu3 %v4430_v58  ;;  %v4398_v16 = vor.u32 %v5098_v54, %v4395_v13  ;;  %v3958_v13 = vor.u32 %v4987_v1, %v3955_v3  ;;  %v5075_v3 = vld [vmem:[#allocation7 + $0x2ec] sm:$0xf] }
 0x102   :  { %2257 = vmatpush.bf16.msra.mxu1 %v4062_v28  ;;  %v1253_v8 = vadd.f32 %v1252_v4, %v1240_v63  ;;  %v1265_v10 = vpop.f32.mrf.mxu1  ;;  %v4989_v28 = vld [vmem:[#allocation7 + $0x34] sm:$0xf0]  ;;  %v4162_v41 = vor.u32 %v5041_v30, %v4161_v15  ;;  %v5007_v4 = vld [vmem:[#allocation7 + $0xcc] sm:$0xf] }
 0x103   :  { %v3954_v45 = vor.u32 %v4989_v28, %v3953_v9  ;;  %v4038_v12 = vor.u32 %v5007_v4, %v4035_v5  ;;  %v4081_v9 = vld [vmem:[#allocation7 + $0x128] sm:$0xf]  ;;  %v5021_v15 = vld [vmem:[#allocation7 + $0x134] sm:$0xf0] }
 0x104   :  { %2245 = vmatmul.bf16.vlgmr.msra.gmra.mxu0 %v5597_v52  ;;  %v1266_v2 = vadd.f32 %v1265_v10, %v1253_v8  ;;  %2269 = vmatpush.bf16.msra.mxu2 %v4206_v26  ;;  %v4113_v8 = vld [vmem:[#allocation7 + $0x168] sm:$0xf]  ;;  %v5029_v10 = vld [vmem:[#allocation7 + $0x174] sm:$0xf0]  ;;  %v4082_v38 = vor.u32 %v5021_v15, %v4081_v9 }
 0x105   :  { %2289 = vmatpush.bf16.msrb.mxu0 %v4050_v31  ;;  %2277 = vmatpush.bf16.msra.mxu3 %v4414_v6  ;;  %v4114_v17 = vor.u32 %v5029_v10, %v4113_v8  ;;  %v4273_v9 = vld [vmem:[#allocation7 + $0x2a8] sm:$0xf]  ;;  %v5069_v15 = vld [vmem:[#allocation7 + $0x2b4] sm:$0xf0] }
 0x106   :  { %v1400_v22 = vmax.f32 %v1266_v2, 0.0  ;;  %v5003_v2 = vld [vmem:[#allocation7 + $0xac] sm:$0xf] }
 0x108   :  { %v5609_v27 = vpack.c.bf16 %v1400_v22, %v1400_v22  ;;  %2270 = vmatpush.bf16.msra.mxu2 %v4190_v44  ;;  %v5094_v22 = vld [vmem:[#allocation7 + $0x384] sm:$0xf]  ;;  %v5043_v44 = vld [vmem:[#allocation7 + $0x1ec] sm:$0xf] }
 0x109   :  { %2290 = vmatpush.bf16.msrb.mxu0 %v4034_v43  ;;  %v5611_v31 = vpop.f32.mrf.mxu2  ;;  %v1254_v32 = vpop.f32.mrf.mxu0  ;;  %v3937_v43 = vld [vmem:[#allocation7 + $0x8] sm:$0xf]  ;;  %2278 = vmatpush.bf16.msra.mxu3 %v4398_v16  ;;  %v4382_v26 = vor.u32 %v5094_v22, %v4379_v23  ;;  %v4182_v55 = vor.u32 %v5043_v44, %v4179_v47  ;;  %v4315_v16 = vld [vmem:[#allocation7 + $0x310] sm:$0xf0]  ;;  %v5061_v44 = vld [vmem:[#allocation7 + $0x274] sm:$0xf0] }
 0x10a   :  { %v5613_v33 = vpop.f32.mrf.mxu3  ;;  %2206 = vmatmul.bf16.vlgmr.msrb.gmra.mxu1 %v5609_v27  ;;  %v1267_v37 = vpop.f32.mrf.mxu1  ;;  %v3938_v59 = vor.u32 %v4985_v46, %v3937_v43  ;;  %v1279_v20 = vadd.f32 %v5611_v31, %v333_v11  ;;  %v5090_v31 = vld [vmem:[#allocation7 + $0x364] sm:$0xf]  ;;  %v4363_v32 = vld [vmem:[#allocation7 + $0x370] sm:$0xf0]  ;;  %v5017_v43 = vld [vmem:[#allocation7 + $0x114] sm:$0xf0]  ;;  %v3990_v46 = vor.u32 %v4995_v34, %v3987_v35 }
 0x10b   :  { %2302 = vmatpush.bf16.msrb.mxu1 %v4178_v24  ;;  %v4003_v24 = vld [vmem:[#allocation7 + $0x98] sm:$0xf0]  ;;  %v4366_v37 = vor.u32 %v5090_v31, %v4363_v32  ;;  %v4289_v11 = vld [vmem:[#allocation7 + $0x2c8] sm:$0xf]  ;;  %v4274_v31 = vor.u32 %v5069_v15, %v4273_v9  ;;  %v5027_v32 = vld [vmem:[#allocation7 + $0x16c] sm:$0xf] }
 0x10c   :  { %v1292_v30 = vadd.f32 %v5613_v33, %v1279_v20  ;;  %v4006_v28 = vor.u32 %v4999_v25, %v4003_v24  ;;  %v5086_v33 = vld [vmem:[#allocation7 + $0x344] sm:$0xf]  ;;  %v3939_v20 = vld [vmem:[#allocation7 + $0x18] sm:$0xf0]  ;;  %v4257_v35 = vld [vmem:[#allocation7 + $0x288] sm:$0xf] }
 0x10d   :  { %2291 = vmatpush.bf16.msrb.mxu0 %v4018_v53  ;;  %v4051_v53 = vld [vmem:[#allocation7 + $0xf8] sm:$0xf0]  ;;  %2279 = vmatpush.bf16.msra.mxu3 %v4382_v26  ;;  %v4350_v42 = vor.u32 %v5086_v33, %v4347_v48  ;;  %v5031_v26 = vld [vmem:[#allocation7 + $0x18c] sm:$0xf]  ;;  %v4401_v9 = vld [vmem:[#allocation7 + $0x3a8] sm:$0xf] }
 0x10e   :  { %v4054_v0 = vor.u32 %v5011_v51, %v4051_v53  ;;  %v4115_v34 = vld [vmem:[#allocation7 + $0x178] sm:$0xf0]  ;;  %v5019_v33 = vld [vmem:[#allocation7 + $0x12c] sm:$0xf]  ;;  %v5101_v15 = vld [vmem:[#allocation7 + $0x3b4] sm:$0xf0] }
 0x10f   :  { %2303 = vmatpush.bf16.msrb.mxu1 %v4162_v41  ;;  %v4065_v41 = vld [vmem:[#allocation7 + $0x108] sm:$0xf]  ;;  %v4083_v48 = vld [vmem:[#allocation7 + $0x138] sm:$0xf0] }
 0x110   :  { %v4066_v53 = vor.u32 %v5017_v43, %v4065_v41  ;;  %v4099_v41 = vld [vmem:[#allocation7 + $0x158] sm:$0xf0]  ;;  %v4241_v43 = vld [vmem:[#allocation7 + $0x268] sm:$0xf] }
 0x111   :  { %2292 = vmatpush.bf16.msrb.mxu0 %v4002_v61  ;;  %v1280_v63 = vpop.f32.mrf.mxu2  ;;  %2280 = vmatpush.bf16.msra.mxu3 %v4366_v37  ;;  %v5065_v37 = vld [vmem:[#allocation7 + $0x294] sm:$0xf0]  ;;  %v4242_v47 = vor.u32 %v5061_v44, %v4241_v43  ;;  %v5055_v44 = vld [vmem:[#allocation7 + $0x24c] sm:$0xf] }
 0x112   :  { %v1293_v61 = vpop.f32.mrf.mxu3  ;;  %v4331_v63 = vld [vmem:[#allocation7 + $0x330] sm:$0xf0]  ;;  %v5093_v43 = vld [vmem:[#allocation7 + $0x374] sm:$0xf0] }
 0x113   :  { %2304 = vmatpush.bf16.msrb.mxu1 %v4146_v57  ;;  %v5039_v57 = vld [vmem:[#allocation7 + $0x1cc] sm:$0xf]  ;;  %v5077_v61 = vld [vmem:[#allocation7 + $0x2f4] sm:$0xf0]  ;;  %v4334_v4 = vor.u32 %v5082_v62, %v4331_v63 }
 0x114   :  { %v4306_v54 = vor.u32 %v5077_v61, %v4305_v56  ;;  %v5015_v56 = vld [vmem:[#allocation7 + $0x10c] sm:$0xf]  ;;  %v5049_v61 = vld [vmem:[#allocation7 + $0x214] sm:$0xf0] }
 0x115   :  { %2293 = vmatpush.bf16.msrb.mxu0 %v3986_v14  ;;  %v4019_v14 = vld [vmem:[#allocation7 + $0xb8] sm:$0xf0]  ;;  %2281 = vmatpush.bf16.msra.mxu3 %v4350_v42 }
 0x116   :  { %v4022_v21 = vor.u32 %v5003_v2, %v4019_v14  ;;  %v4147_v2 = vld [vmem:[#allocation7 + $0x1b8] sm:$0xf0]  ;;  %v5078_v14 = vld [vmem:[#allocation7 + $0x304] sm:$0xf] }
 0x117   :  { %2305 = vmatpush.bf16.msrb.mxu1 %v4130_v7  ;;  %v4166_v7 = vor.u32 %v5039_v57, %v4163_v60  ;;  %v4067_v57 = vld [vmem:[#allocation7 + $0x118] sm:$0xf0] }
 0x118   :  { %v4070_v60 = vor.u32 %v5015_v56, %v4067_v57  ;;  %v4195_v56 = vld [vmem:[#allocation7 + $0x218] sm:$0xf0] }
 0x119   :  { %2294 = vmatpush.bf16.msrb.mxu0 %v3970_v29  ;;  %v4098_v29 = vor.u32 %v5025_v19, %v4097_v18  ;;  %2282 = vmatpush.bf16.msra.mxu3 %v4334_v4  ;;  %v5073_v18 = vld [vmem:[#allocation7 + $0x2d4] sm:$0xf0]  ;;  %v4983_v19 = vld [vmem:[#allocation7 + $0xc] sm:$0xf]  ;;  %v4307_v4 = vld [vmem:[#allocation7 + $0x2f8] sm:$0xf0] }
 0x11a   :  { %2258 = vmatmul.bf16.vlgmr.msra.gmra.mxu1 %v5609_v27  ;;  %v4290_v23 = vor.u32 %v5073_v18, %v4289_v11  ;;  %v3942_v25 = vor.u32 %v4983_v19, %v3939_v20 }
 0x11b   :  { %2306 = vmatpush.bf16.msrb.mxu1 %v4114_v17 }
 0x11d   :  { %2295 = vmatpush.bf16.msrb.mxu0 %v3954_v45 }
 0x11f   :  { %2307 = vmatpush.bf16.msrb.mxu1 %v4098_v29  ;;  %v4131_v29 = vld [vmem:[#allocation7 + $0x198] sm:$0xf0] }
 0x121   :  { %2296 = vmatpush.bf16.msrb.mxu0 %v3938_v59  ;;  %v1304_v39 = vpop.f32.mrf.mxu0  ;;  %v3974_v59 = vor.u32 %v4991_v49, %v3971_v50  ;;  %v4225_v49 = vld [vmem:[#allocation7 + $0x248] sm:$0xf]  ;;  %v5057_v50 = vld [vmem:[#allocation7 + $0x254] sm:$0xf0] }
 0x122   :  { %v1317_v40 = vpop.f32.mrf.mxu1  ;;  %v1305_v45 = vadd.f32 %v1304_v39, %v1292_v30  ;;  %v4258_v39 = vor.u32 %v5065_v37, %v4257_v35  ;;  %v5097_v35 = vld [vmem:[#allocation7 + $0x394] sm:$0xf0]  ;;  %v5059_v37 = vld [vmem:[#allocation7 + $0x26c] sm:$0xf] }
 0x123   :  { %2308 = vmatpush.bf16.msrb.mxu1 %v4082_v38  ;;  %v4118_v38 = vor.u32 %v5027_v32, %v4115_v34  ;;  %v4385_v34 = vld [vmem:[#allocation7 + $0x388] sm:$0xf] }
 0x124   :  { %2297 = vmatmul.bf16.vlgmr.msrb.gmra.mxu0 %v5597_v52  ;;  %v1318_v51 = vadd.f32 %v1317_v40, %v1305_v45  ;;  %v5023_v40 = vld [vmem:[#allocation7 + $0x14c] sm:$0xf]  ;;  %v334_v45 = vperm.slane %v5592_v36, 3 }
 0x125   :  { %2341 = vmatpush.bf16.msra.mxu0 %v4054_v0 }
 0x127   :  { %2309 = vmatpush.bf16.msrb.mxu1 %v4066_v53 }
 0x129   :  { %2342 = vmatpush.bf16.msra.mxu0 %v4038_v12  ;;  %v1330_v58 = vpop.f32.mrf.mxu2  ;;  %v1306_v8 = vpop.f32.mrf.mxu0  ;;  %v5035_v12 = vld [vmem:[#allocation7 + $0x1ac] sm:$0xf] }
 0x12a   :  { %v1331_v0 = vadd.f32 %v1330_v58, %v1318_v51  ;;  %v1343_v5 = vpop.f32.mrf.mxu3  ;;  %v1319_v10 = vpop.f32.mrf.mxu1  ;;  %2310 = vmatmul.bf16.vlgmr.msrb.gmra.mxu1 %v5609_v27  ;;  %v4150_v22 = vor.u32 %v5035_v12, %v4147_v2  ;;  %v4086_v51 = vor.u32 %v5019_v33, %v4083_v48  ;;  %v4209_v58 = vld [vmem:[#allocation7 + $0x228] sm:$0xf]  ;;  %v4310_v12 = vor.u32 %v5075_v3, %v4307_v4  ;;  %v5071_v2 = vld [vmem:[#allocation7 + $0x2cc] sm:$0xf]  ;;  %v5089_v48 = vld [vmem:[#allocation7 + $0x354] sm:$0xf0] }
 0x12b   :  { %2354 = vmatpush.bf16.msra.mxu1 %v4182_v55  ;;  %v1344_v42 = vadd.f32 %v1343_v5, %v334_v45  ;;  %v4226_v55 = vor.u32 %v5057_v50, %v4225_v49  ;;  %v4227_v45 = vld [vmem:[#allocation7 + $0x258] sm:$0xf0]  ;;  %v4353_v33 = vld [vmem:[#allocation7 + $0x348] sm:$0xf]  ;;  %v5051_v49 = vld [vmem:[#allocation7 + $0x22c] sm:$0xf] }
 0x12c   :  { %v1401_v6 = vmax.f32 %v1331_v0, 0.0  ;;  %v4193_v0 = vld [vmem:[#allocation7 + $0x208] sm:$0xf]  ;;  %v4211_v50 = vld [vmem:[#allocation7 + $0x238] sm:$0xf0] }
 0x12d   :  { %2343 = vmatpush.bf16.msra.mxu0 %v4022_v21  ;;  %v4318_v21 = vor.u32 %v5078_v14, %v4315_v16  ;;  %v4194_v10 = vor.u32 %v5049_v61, %v4193_v0  ;;  %v4291_v14 = vld [vmem:[#allocation7 + $0x2d8] sm:$0xf0] }
 0x12e   :  { %v5621_v17 = vpack.c.bf16 %v1401_v6, %v1401_v6  ;;  %v4294_v20 = vor.u32 %v5071_v2, %v4291_v14  ;;  %v4419_v3 = vld [vmem:[#allocation7 + $0x3d8] sm:$0xf0] }
 0x12f   :  { %2355 = vmatpush.bf16.msra.mxu1 %v4166_v7  ;;  %2283 = vmatpush.bf16.msra.mxu3 %v4318_v21  ;;  %v4417_v21 = vld [vmem:[#allocation7 + $0x3c8] sm:$0xf] }
 0x130   :  { %2219 = vmatmul.bf16.vlgmr.msrb.gmra.mxu2 %v5621_v17 }
 0x131   :  { %2344 = vmatpush.bf16.msra.mxu0 %v4006_v28  ;;  %2315 = vmatpush.bf16.msrb.mxu2 %v4306_v54  ;;  %v1332_v24 = vpop.f32.mrf.mxu2  ;;  %v4134_v28 = vor.u32 %v5031_v26, %v4131_v29  ;;  %v4433_v54 = vld [vmem:[#allocation7 + $0x3e8] sm:$0xf] }
 0x132   :  { %v1345_v30 = vpop.f32.mrf.mxu3  ;;  %v4275_v24 = vld [vmem:[#allocation7 + $0x2b8] sm:$0xf0] }
 0x133   :  { %2356 = vmatpush.bf16.msra.mxu1 %v4150_v22  ;;  %v5105_v22 = vld [vmem:[#allocation7 + $0x3d4] sm:$0xf0]  ;;  %v5063_v30 = vld [vmem:[#allocation7 + $0x28c] sm:$0xf] }
 0x135   :  { %2345 = vmatpush.bf16.msra.mxu0 %v3990_v46  ;;  %2316 = vmatpush.bf16.msrb.mxu2 %v4290_v23  ;;  %v4102_v46 = vor.u32 %v5023_v40, %v4099_v41  ;;  %v4369_v41 = vld [vmem:[#allocation7 + $0x368] sm:$0xf] }
 0x137   :  { %2357 = vmatpush.bf16.msra.mxu1 %v4134_v28  ;;  %v4259_v28 = vld [vmem:[#allocation7 + $0x298] sm:$0xf0] }
 0x138   :  { %v4262_v32 = vor.u32 %v5063_v30, %v4259_v28  ;;  %v4497_v28 = vld [vmem:[#allocation10 + $0x70] sm:$0xf] }
 0x139   :  { %2346 = vmatpush.bf16.msra.mxu0 %v3974_v59  ;;  %2317 = vmatpush.bf16.msrb.mxu2 %v4274_v31  ;;  %v5053_v59 = vld [vmem:[#allocation7 + $0x234] sm:$0xf0]  ;;  %v4402_v31 = vor.u32 %v5101_v15, %v4401_v9 }
 0x13a   :  { %v4210_v62 = vor.u32 %v5053_v59, %v4209_v58  ;;  %v4321_v58 = vld [vmem:[#allocation7 + $0x308] sm:$0xf]  ;;  %v5081_v59 = vld [vmem:[#allocation7 + $0x314] sm:$0xf0] }
 0x13b   :  { %2358 = vmatpush.bf16.msra.mxu1 %v4118_v38  ;;  %v4243_v38 = vld [vmem:[#allocation7 + $0x278] sm:$0xf0] }
 0x13c   :  { %v4246_v40 = vor.u32 %v5059_v37, %v4243_v38 }
 0x13d   :  { %2347 = vmatpush.bf16.msra.mxu0 %v3958_v13  ;;  %2318 = vmatpush.bf16.msrb.mxu2 %v4258_v39  ;;  %v5109_v13 = vld [vmem:[#allocation7 + $0x3f4] sm:$0xf0]  ;;  %v4386_v39 = vor.u32 %v5097_v35, %v4385_v34  ;;  %v5123_v35 = vld [vmem:[#allocation10 + $0x64] sm:$0xf0] }
 0x13e   :  { %v4434_v18 = vor.u32 %v5109_v13, %v4433_v54  ;;  %v5091_v54 = vld [vmem:[#allocation7 + $0x36c] sm:$0xf]  ;;  %v4371_v13 = vld [vmem:[#allocation7 + $0x378] sm:$0xf0] }
 0x13f   :  { %2359 = vmatpush.bf16.msra.mxu1 %v4102_v46  ;;  %v4370_v46 = vor.u32 %v5093_v43, %v4369_v41  ;;  %v4374_v2 = vor.u32 %v5091_v54, %v4371_v13  ;;  %v4499_v54 = vld [vmem:[#allocation10 + $0x78] sm:$0xf0] }
 0x140   :  { %2271 = vmatmul.bf16.vlgmr.msra.gmra.mxu2 %v5621_v17 }
 0x141   :  { %2348 = vmatpush.bf16.msra.mxu0 %v3942_v25  ;;  %2319 = vmatpush.bf16.msrb.mxu2 %v4242_v47  ;;  %v5067_v25 = vld [vmem:[#allocation7 + $0x2ac] sm:$0xf]  ;;  %v4230_v47 = vor.u32 %v5055_v44, %v4227_v45  ;;  %v4473_v44 = vld [vmem:[#allocation10 + $0x40] sm:$0xf] }
 0x142   :  { %v1369_v53 = vpop.f32.mrf.mxu1  ;;  %v4278_v29 = vor.u32 %v5067_v25, %v4275_v24  ;;  %v5079_v24 = vld [vmem:[#allocation7 + $0x30c] sm:$0xf] }
 0x143   :  { %2360 = vmatpush.bf16.msra.mxu1 %v4086_v51  ;;  %v4337_v51 = vld [vmem:[#allocation7 + $0x328] sm:$0xf]  ;;  %v5119_v45 = vld [vmem:[#allocation10 + $0x44] sm:$0xf0] }
 0x144   :  { %2349 = vmatmul.bf16.vlgmr.msra.gmra.mxu0 %v5597_v52  ;;  %v1356_v52 = vpop.f32.mrf.mxu0 }
 0x145   :  { %v1357_v36 = vadd.f32 %v1356_v52, %v1344_v42  ;;  %2320 = vmatpush.bf16.msrb.mxu2 %v4226_v55  ;;  %v4354_v42 = vor.u32 %v5089_v48, %v4353_v33  ;;  %v4214_v52 = vor.u32 %v5051_v49, %v4211_v50  ;;  %v5047_v55 = vld [vmem:[#allocation7 + $0x20c] sm:$0xf]  ;;  %v4465_v49 = vld [vmem:[#allocation10 + $0x30] sm:$0xf]  ;;  %v5117_v50 = vld [vmem:[#allocation10 + $0x34] sm:$0xf0] }
 0x147   :  { %v1370_v63 = vadd.f32 %v1369_v53, %v1357_v36  ;;  %2361 = vmatpush.bf16.msra.mxu1 %v4070_v60  ;;  %v5085_v53 = vld [vmem:[#allocation7 + $0x334] sm:$0xf0]  ;;  %v4198_v36 = vor.u32 %v5047_v55, %v4195_v56  ;;  %v5107_v60 = vld [vmem:[#allocation7 + $0x3ec] sm:$0xf] }
 0x148   :  { %v4338_v57 = vor.u32 %v5085_v53, %v4337_v51  ;;  %v5141_v51 = vld [vmem:[#allocation10 + $0xf4] sm:$0xf0]  ;;  %v4457_v53 = vld [vmem:[#allocation10 + $0x20] sm:$0xf]  ;;  %v5115_v55 = vld [vmem:[#allocation10 + $0x24] sm:$0xf0] }
 0x149   :  { %v1382_v1 = vpop.f32.mrf.mxu2  ;;  %2321 = vmatpush.bf16.msrb.mxu2 %v4210_v62  ;;  %v4435_v62 = vld [vmem:[#allocation7 + $0x3f8] sm:$0xf0] }
 0x14a   :  { %v1383_v5 = vadd.f32 %v1382_v1, %v1370_v63  ;;  %v1395_v6 = vpop.f32.mrf.mxu3  ;;  %v1371_v8 = vpop.f32.mrf.mxu1  ;;  %2362 = vmatmul.bf16.vlgmr.msra.gmra.mxu1 %v5609_v27  ;;  %v4418_v27 = vor.u32 %v5105_v22, %v4417_v21  ;;  %v4322_v63 = vor.u32 %v5081_v59, %v4321_v58  ;;  %v4438_v0 = vor.u32 %v5107_v60, %v4435_v62  ;;  %v5103_v1 = vld [vmem:[#allocation7 + $0x3cc] sm:$0xf]  ;;  %v4339_v21 = vld [vmem:[#allocation7 + $0x338] sm:$0xf0] }
 0x14b   :  { %v4422_v4 = vor.u32 %v5103_v1, %v4419_v3  ;;  %v4458_v58 = vor.u32 %v5115_v55, %v4457_v53  ;;  %v5137_v3 = vld [vmem:[#allocation10 + $0xd4] sm:$0xf0]  ;;  %v5151_v55 = vld [vmem:[#allocation10 + $0x144] sm:$0xf0] }
 0x14c   :  { %v1358_v7 = vpop.f32.mrf.mxu0  ;;  %v1396_v11 = vadd.f32 %v1395_v6, %v1383_v5  ;;  %v5099_v5 = vld [vmem:[#allocation7 + $0x3ac] sm:$0xf]  ;;  %v4403_v6 = vld [vmem:[#allocation7 + $0x3b8] sm:$0xf0] }
 0x14d   :  { %2322 = vmatpush.bf16.msrb.mxu2 %v4194_v10  ;;  %v4406_v7 = vor.u32 %v5099_v5, %v4403_v6  ;;  %v5095_v10 = vld [vmem:[#allocation7 + $0x38c] sm:$0xf]  ;;  %v4441_v6 = vld [vmem:[#allocation10] sm:$0xf] }
 0x14e   :  { %v1402_v16 = vmax.f32 %v1396_v11, 0.0  ;;  %v4387_v11 = vld [vmem:[#allocation7 + $0x398] sm:$0xf0] }
 0x150   :  { %v5629_v19 = vpack.c.bf16 %v1402_v16, %v1402_v16  ;;  %2323 = vmatmul.bf16.vlgmr.msrb.gmra.mxu2 %v5621_v17  ;;  %v5087_v16 = vld [vmem:[#allocation7 + $0x34c] sm:$0xf] }
 0x151   :  { %2367 = vmatpush.bf16.msra.mxu2 %v4310_v12  ;;  %v1384_v23 = vpop.f32.mrf.mxu2  ;;  %v4390_v12 = vor.u32 %v5095_v10, %v4387_v11  ;;  %v5135_v11 = vld [vmem:[#allocation10 + $0xc4] sm:$0xf0] }
 0x152   :  { %v1397_v26 = vpop.f32.mrf.mxu3  ;;  %2232 = vmatmul.bf16.vlgmr.msrb.gmra.mxu3 %v5629_v19  ;;  %v5636_v23 = vld [vmem:[#allocation8] sm:$0xf] }
 0x153   :  { %2328 = vmatpush.bf16.msrb.mxu3 %v4434_v18  ;;  %v4323_v26 = vld [vmem:[#allocation7 + $0x318] sm:$0xf0]  ;;  %v1538_v43 = vperm.slane %v5636_v23, 1 }
 0x155   :  { %2368 = vmatpush.bf16.msra.mxu2 %v4294_v20  ;;  %v5083_v20 = vld [vmem:[#allocation7 + $0x32c] sm:$0xf] }
 0x156   :  { %v4342_v22 = vor.u32 %v5083_v20, %v4339_v21  ;;  %v4625_v20 = vld [vmem:[#allocation10 + $0x170] sm:$0xf] }
 0x157   :  { %2329 = vmatpush.bf16.msrb.mxu3 %v4418_v27  ;;  %v1537_v27 = vperm.slane %v5636_v23, 0 }
 0x159   :  { %2369 = vmatpush.bf16.msra.mxu2 %v4278_v29  ;;  %v4326_v29 = vor.u32 %v5079_v24, %v4323_v26  ;;  %v5122_v24 = vld [vmem:[#allocation10 + $0x64] sm:$0xf]  ;;  %v4491_v26 = vld [vmem:[#allocation10 + $0x68] sm:$0xf0] }
 0x15b   :  { %2330 = vmatpush.bf16.msrb.mxu3 %v4402_v31  ;;  %v5125_v31 = vld [vmem:[#allocation10 + $0x74] sm:$0xf0] }
 0x15c   :  { %v4498_v34 = vor.u32 %v5125_v31, %v4497_v28  ;;  %v4617_v28 = vld [vmem:[#allocation10 + $0x160] sm:$0xf] }
 0x15d   :  { %2370 = vmatpush.bf16.msra.mxu2 %v4262_v32  ;;  %v4489_v32 = vld [vmem:[#allocation10 + $0x60] sm:$0xf] }
 0x15e   :  { %2791 = vmatpush.bf16.msrb.mxu0 %v4498_v34  ;;  %v4490_v37 = vor.u32 %v5123_v35, %v4489_v32  ;;  %v5155_v32 = vld [vmem:[#allocation10 + $0x164] sm:$0xf0]  ;;  %v5120_v34 = vld [vmem:[#allocation10 + $0x54] sm:$0xf]  ;;  %v4483_v35 = vld [vmem:[#allocation10 + $0x58] sm:$0xf0] }
 0x15f   :  { %2331 = vmatpush.bf16.msrb.mxu3 %v4386_v39  ;;  %v4481_v39 = vld [vmem:[#allocation10 + $0x50] sm:$0xf] }
 0x161   :  { %2371 = vmatpush.bf16.msra.mxu2 %v4246_v40  ;;  %v5121_v40 = vld [vmem:[#allocation10 + $0x54] sm:$0xf0] }
 0x162   :  { %2284 = vmatmul.bf16.vlgmr.msra.gmra.mxu3 %v5629_v19  ;;  %2792 = vmatpush.bf16.msrb.mxu0 %v4490_v37  ;;  %v4482_v41 = vor.u32 %v5121_v40, %v4481_v39  ;;  %v4618_v37 = vor.u32 %v5155_v32, %v4617_v28  ;;  %v4539_v28 = vld [vmem:[#allocation10 + $0xc8] sm:$0xf0] }
 0x163   :  { %2332 = vmatpush.bf16.msrb.mxu3 %v4370_v46  ;;  %v4474_v46 = vor.u32 %v5119_v45, %v4473_v44  ;;  %v4609_v44 = vld [vmem:[#allocation10 + $0x150] sm:$0xf] }
 0x165   :  { %2372 = vmatpush.bf16.msra.mxu2 %v4230_v47  ;;  %v2194_v61 = vpop.f32.mrf.mxu0 }
 0x166   :  { %v2195_v9 = vadd.f32 %v2194_v61, %v1537_v27  ;;  %2793 = vmatpush.bf16.msrb.mxu0 %v4482_v41  ;;  %v4545_v61 = vld [vmem:[#allocation10 + $0xd0] sm:$0xf] }
 0x167   :  { %2333 = vmatpush.bf16.msrb.mxu3 %v4354_v42  ;;  %v4561_v42 = vld [vmem:[#allocation10 + $0xf0] sm:$0xf]  ;;  %v4546_v5 = vor.u32 %v5137_v3, %v4545_v61  ;;  %v5149_v61 = vld [vmem:[#allocation10 + $0x134] sm:$0xf0] }
 0x168   :  { %v4562_v56 = vor.u32 %v5141_v51, %v4561_v42  ;;  %v4513_v41 = vld [vmem:[#allocation10 + $0x90] sm:$0xf]  ;;  %v4505_v42 = vld [vmem:[#allocation10 + $0x80] sm:$0xf] }
 0x169   :  { %2373 = vmatpush.bf16.msra.mxu2 %v4214_v52  ;;  %v4466_v52 = vor.u32 %v5117_v50, %v4465_v49  ;;  %v4601_v51 = vld [vmem:[#allocation10 + $0x140] sm:$0xf] }
 0x16a   :  { %2794 = vmatpush.bf16.msrb.mxu0 %v4474_v46  ;;  %2804 = vmatpush.bf16.msrb.mxu1 %v4562_v56  ;;  %v5116_v56 = vld [vmem:[#allocation10 + $0x34] sm:$0xf] }
 0x16b   :  { %2334 = vmatpush.bf16.msrb.mxu3 %v4338_v57  ;;  %v4553_v57 = vld [vmem:[#allocation10 + $0xe0] sm:$0xf] }
 0x16d   :  { %2374 = vmatpush.bf16.msra.mxu2 %v4198_v36  ;;  %v2196_v8 = vpop.f32.mrf.mxu0  ;;  %v5139_v36 = vld [vmem:[#allocation10 + $0xe4] sm:$0xf0] }
 0x16e   :  { %2795 = vmatpush.bf16.msrb.mxu0 %v4466_v52  ;;  %v4554_v60 = vor.u32 %v5139_v36, %v4553_v57  ;;  %v4537_v8 = vld [vmem:[#allocation10 + $0xc0] sm:$0xf]  ;;  %v5127_v52 = vld [vmem:[#allocation10 + $0x84] sm:$0xf0]  ;;  %v4467_v57 = vld [vmem:[#allocation10 + $0x38] sm:$0xf0]  ;;  %v4602_v36 = vor.u32 %v5151_v55, %v4601_v51 }
 0x16f   :  { %2335 = vmatpush.bf16.msrb.mxu3 %v4322_v63  ;;  %v4449_v63 = vld [vmem:[#allocation10 + $0x10] sm:$0xf]  ;;  %v4506_v53 = vor.u32 %v5127_v52, %v4505_v42  ;;  %v5171_v42 = vld [vmem:[#allocation10 + $0x1e4] sm:$0xf0]  ;;  %v5130_v52 = vld [vmem:[#allocation10 + $0xa4] sm:$0xf] }
 0x170   :  { %2375 = vmatmul.bf16.vlgmr.msra.gmra.mxu2 %v5621_v17  ;;  %v4355_v17 = vld [vmem:[#allocation7 + $0x358] sm:$0xf0]  ;;  %2805 = vmatpush.bf16.msrb.mxu1 %v4554_v60  ;;  %v4563_v60 = vld [vmem:[#allocation10 + $0xf8] sm:$0xf0]  ;;  %v5154_v55 = vld [vmem:[#allocation10 + $0x164] sm:$0xf] }
 0x171   :  { %v4358_v18 = vor.u32 %v5087_v16, %v4355_v17  ;;  %v4529_v17 = vld [vmem:[#allocation10 + $0xb0] sm:$0xf] }
 0x172   :  { %2336 = vmatmul.bf16.vlgmr.msrb.gmra.mxu3 %v5629_v19  ;;  %2796 = vmatpush.bf16.msrb.mxu0 %v4458_v58  ;;  %v4470_v58 = vor.u32 %v5116_v56, %v4467_v57  ;;  %v4619_v56 = vld [vmem:[#allocation10 + $0x168] sm:$0xf0] }
 0x173   :  { %2380 = vmatpush.bf16.msra.mxu3 %v4438_v0  ;;  %v5113_v0 = vld [vmem:[#allocation10 + $0x14] sm:$0xf0] }
 0x174   :  { %v4450_v1 = vor.u32 %v5113_v0, %v4449_v63  ;;  %2806 = vmatpush.bf16.msrb.mxu1 %v4546_v5  ;;  %v4593_v0 = vld [vmem:[#allocation10 + $0x130] sm:$0xf]  ;;  %v5138_v5 = vld [vmem:[#allocation10 + $0xe4] sm:$0xf] }
 0x175   :  { %v4594_v3 = vor.u32 %v5149_v61, %v4593_v0  ;;  %v4515_v0 = vld [vmem:[#allocation10 + $0x98] sm:$0xf0]  ;;  %v5152_v61 = vld [vmem:[#allocation10 + $0x154] sm:$0xf] }
 0x176   :  { %2797 = vmatpush.bf16.msrb.mxu0 %v4450_v1  ;;  %v5114_v1 = vld [vmem:[#allocation10 + $0x24] sm:$0xf] }
 0x177   :  { %2381 = vmatpush.bf16.msra.mxu3 %v4422_v4  ;;  %v1539_v4 = vperm.slane %v5636_v23, 2 }
 0x17b   :  { %2382 = vmatpush.bf16.msra.mxu3 %v4406_v7  ;;  %v5111_v7 = vld [vmem:[#allocation10 + $0x4] sm:$0xf0] }
 0x17c   :  { %v4442_v10 = vor.u32 %v5111_v7, %v4441_v6  ;;  %v4555_v6 = vld [vmem:[#allocation10 + $0xe8] sm:$0xf0] }
 0x17e   :  { %2798 = vmatpush.bf16.msrb.mxu0 %v4442_v10  ;;  %v4558_v10 = vor.u32 %v5138_v5, %v4555_v6 }
 0x17f   :  { %2383 = vmatpush.bf16.msra.mxu3 %v4390_v12  ;;  %v5124_v12 = vld [vmem:[#allocation10 + $0x74] sm:$0xf] }
 0x181   :  { %v2246_v14 = vpop.f32.mrf.mxu0 }
 0x182   :  { %v2247_v33 = vadd.f32 %v2246_v14, %v1538_v43  ;;  %v4502_v14 = vor.u32 %v5124_v12, %v4499_v54  ;;  %v5129_v43 = vld [vmem:[#allocation10 + $0x94] sm:$0xf0]  ;;  %v5147_v12 = vld [vmem:[#allocation10 + $0x124] sm:$0xf0] }
 0x183   :  { %2384 = vmatpush.bf16.msra.mxu3 %v4374_v2  ;;  %v4538_v2 = vor.u32 %v5135_v11, %v4537_v8  ;;  %v4514_v46 = vor.u32 %v5129_v43, %v4513_v41  ;;  %v4585_v11 = vld [vmem:[#allocation10 + $0x120] sm:$0xf]  ;;  %v5173_v41 = vld [vmem:[#allocation10 + $0x1f4] sm:$0xf0]  ;;  %v5132_v43 = vld [vmem:[#allocation10 + $0xb4] sm:$0xf] }
 0x184   :  { %2843 = vmatpush.bf16.msra.mxu0 %v4502_v14  ;;  %v4586_v54 = vor.u32 %v5147_v12, %v4585_v11  ;;  %v5136_v14 = vld [vmem:[#allocation10 + $0xd4] sm:$0xf]  ;;  %v5167_v11 = vld [vmem:[#allocation10 + $0x1c4] sm:$0xf0] }
 0x185   :  { %2807 = vmatpush.bf16.msrb.mxu1 %v4538_v2  ;;  %v4451_v2 = vld [vmem:[#allocation10 + $0x18] sm:$0xf0] }
 0x187   :  { %2385 = vmatpush.bf16.msra.mxu3 %v4358_v18  ;;  %v2207_v15 = vpop.f32.mrf.mxu1  ;;  %v5133_v18 = vld [vmem:[#allocation10 + $0xb4] sm:$0xf0] }
 0x188   :  { %v5639_v30 = vadd.f32 %v2207_v15, %v2195_v9  ;;  %v4521_v9 = vld [vmem:[#allocation10 + $0xa0] sm:$0xf]  ;;  %v5131_v15 = vld [vmem:[#allocation10 + $0xa4] sm:$0xf0] }
 0x189   :  { %v2248_v25 = vpop.f32.mrf.mxu0  ;;  %v4522_v31 = vor.u32 %v5131_v15, %v4521_v9  ;;  %v5134_v9 = vld [vmem:[#allocation10 + $0xc4] sm:$0xf] }
 0x18a   :  { %v5157_v25 = vld [vmem:[#allocation10 + $0x174] sm:$0xf0]  ;;  %v4542_v32 = vor.u32 %v5134_v9, %v4539_v28  ;;  %v5163_v28 = vld [vmem:[#allocation10 + $0x1a4] sm:$0xf0] }
 0x18b   :  { %2386 = vmatpush.bf16.msra.mxu3 %v4342_v22  ;;  %v4530_v22 = vor.u32 %v5133_v18, %v4529_v17  ;;  %v4626_v27 = vor.u32 %v5157_v25, %v4625_v20  ;;  %v4547_v17 = vld [vmem:[#allocation10 + $0xd8] sm:$0xf0]  ;;  %v1540_v18 = vperm.slane %v5636_v23, 3  ;;  %v4577_v25 = vld [vmem:[#allocation10 + $0x110] sm:$0xf] }
 0x18c   :  { %v4569_v23 = vld [vmem:[#allocation10 + $0x100] sm:$0xf] }
 0x18d   :  { %2817 = vmatpush.bf16.msrb.mxu2 %v4626_v27  ;;  %2808 = vmatpush.bf16.msrb.mxu1 %v4530_v22  ;;  %v4550_v22 = vor.u32 %v5136_v14, %v4547_v17  ;;  %v5110_v27 = vld [vmem:[#allocation10 + $0x4] sm:$0xf]  ;;  %v4603_v17 = vld [vmem:[#allocation10 + $0x148] sm:$0xf0] }
 0x18f   :  { %2387 = vmatpush.bf16.msra.mxu3 %v4326_v29  ;;  %v2209_v38 = vpop.f32.mrf.mxu1  ;;  %v4494_v29 = vor.u32 %v5122_v24, %v4491_v26  ;;  %v5145_v24 = vld [vmem:[#allocation10 + $0x114] sm:$0xf0] }
 0x190   :  { %v4486_v38 = vor.u32 %v5120_v34, %v4483_v35  ;;  %v4578_v26 = vor.u32 %v5145_v24, %v4577_v25  ;;  %v5143_v35 = vld [vmem:[#allocation10 + $0x104] sm:$0xf0]  ;;  %v5148_v24 = vld [vmem:[#allocation10 + $0x134] sm:$0xf] }
 0x191   :  { %2844 = vmatpush.bf16.msra.mxu0 %v4494_v29  ;;  %2809 = vmatpush.bf16.msrb.mxu1 %v4522_v31  ;;  %v4443_v29 = vld [vmem:[#allocation10 + $0x8] sm:$0xf0] }
 0x192   :  { %2388 = vmatmul.bf16.vlgmr.msra.gmra.mxu3 %v5629_v19  ;;  %2818 = vmatpush.bf16.msrb.mxu2 %v4618_v37  ;;  %v4446_v15 = vor.u32 %v5110_v27, %v4443_v29  ;;  %v4689_v37 = vld [vmem:[#allocation10 + $0x1f0] sm:$0xf] }
 0x195   :  { %2845 = vmatpush.bf16.msra.mxu0 %v4486_v38  ;;  %2810 = vmatpush.bf16.msrb.mxu1 %v4514_v46  ;;  %v4690_v46 = vor.u32 %v5173_v41, %v4689_v37  ;;  %v5161_v37 = vld [vmem:[#allocation10 + $0x194] sm:$0xf0]  ;;  %v4579_v41 = vld [vmem:[#allocation10 + $0x118] sm:$0xf0] }
 0x197   :  { %v2259_v48 = vpop.f32.mrf.mxu1  ;;  %2830 = vmatpush.bf16.msrb.mxu3 %v4690_v46  ;;  %v4633_v46 = vld [vmem:[#allocation10 + $0x180] sm:$0xf] }
 0x198   :  { %v5643_v19 = vadd.f32 %v2259_v48, %v2247_v33  ;;  %v5118_v33 = vld [vmem:[#allocation10 + $0x44] sm:$0xf]  ;;  %v4475_v48 = vld [vmem:[#allocation10 + $0x48] sm:$0xf0] }
 0x199   :  { %v4478_v50 = vor.u32 %v5118_v33, %v4475_v48  ;;  %2811 = vmatpush.bf16.msrb.mxu1 %v4506_v53  ;;  %v5156_v33 = vld [vmem:[#allocation10 + $0x174] sm:$0xf]  ;;  %v4627_v48 = vld [vmem:[#allocation10 + $0x178] sm:$0xf0]  ;;  %v4523_v53 = vld [vmem:[#allocation10 + $0xa8] sm:$0xf0] }
 0x19a   :  { %v4526_v57 = vor.u32 %v5130_v52, %v4523_v53 }
 0x19b   :  { %2846 = vmatpush.bf16.msra.mxu0 %v4478_v50  ;;  %v4681_v50 = vld [vmem:[#allocation10 + $0x1e0] sm:$0xf] }
 0x19c   :  { %v4682_v51 = vor.u32 %v5171_v42, %v4681_v50  ;;  %v4691_v50 = vld [vmem:[#allocation10 + $0x1f8] sm:$0xf0] }
 0x19e   :  { %2831 = vmatpush.bf16.msrb.mxu3 %v4682_v51 }
 0x19f   :  { %v2261_v62 = vpop.f32.mrf.mxu1  ;;  %2847 = vmatpush.bf16.msra.mxu0 %v4470_v58 }
 0x1a1   :  { %v2298_v47 = vpop.f32.mrf.mxu0 }
 0x1a2   :  { %v2299_v13 = vadd.f32 %v2298_v47, %v1539_v4  ;;  %v5153_v47 = vld [vmem:[#allocation10 + $0x154] sm:$0xf0]  ;;  %v4459_v4 = vld [vmem:[#allocation10 + $0x28] sm:$0xf0] }
 0x1a3   :  { %v4610_v49 = vor.u32 %v5153_v47, %v4609_v44  ;;  %v4462_v8 = vor.u32 %v5114_v1, %v4459_v4  ;;  %v4531_v44 = vld [vmem:[#allocation10 + $0xb8] sm:$0xf0] }
 0x1a4   :  { %v4534_v47 = vor.u32 %v5132_v43, %v4531_v44  ;;  %v4611_v4 = vld [vmem:[#allocation10 + $0x158] sm:$0xf0] }
 0x1a5   :  { %2819 = vmatpush.bf16.msrb.mxu2 %v4610_v49  ;;  %2848 = vmatpush.bf16.msra.mxu0 %v4462_v8 }
 0x1a7   :  { %v2311_v16 = vpop.f32.mrf.mxu1 }
 0x1a8   :  { %v5646_v21 = vadd.f32 %v2311_v16, %v2299_v13  ;;  %v5112_v13 = vld [vmem:[#allocation10 + $0x14] sm:$0xf] }
 0x1a9   :  { %v2300_v59 = vpop.f32.mrf.mxu0  ;;  %2820 = vmatpush.bf16.msrb.mxu2 %v4602_v36  ;;  %v4454_v16 = vor.u32 %v5112_v13, %v4451_v2  ;;  %v4622_v36 = vor.u32 %v5154_v55, %v4619_v56  ;;  %v4507_v13 = vld [vmem:[#allocation10 + $0x88] sm:$0xf0]  ;;  %v5150_v2 = vld [vmem:[#allocation10 + $0x144] sm:$0xf] }
 0x1aa   :  { %v5140_v59 = vld [vmem:[#allocation10 + $0xf4] sm:$0xf] }
 0x1ab   :  { %v4566_v63 = vor.u32 %v5140_v59, %v4563_v60  ;;  %2849 = vmatpush.bf16.msra.mxu0 %v4454_v16  ;;  %v4673_v59 = vld [vmem:[#allocation10 + $0x1d0] sm:$0xf]  ;;  %v5169_v60 = vld [vmem:[#allocation10 + $0x1d4] sm:$0xf0] }
 0x1ad   :  { %2856 = vmatpush.bf16.msra.mxu1 %v4566_v63  ;;  %2821 = vmatpush.bf16.msrb.mxu2 %v4594_v3  ;;  %v5128_v63 = vld [vmem:[#allocation10 + $0x94] sm:$0xf] }
 0x1ae   :  { %v4518_v3 = vor.u32 %v5128_v63, %v4515_v0  ;;  %v5166_v0 = vld [vmem:[#allocation10 + $0x1c4] sm:$0xf] }
 0x1af   :  { %v2313_v40 = vpop.f32.mrf.mxu1  ;;  %2850 = vmatpush.bf16.msra.mxu0 %v4446_v15  ;;  %v4649_v15 = vld [vmem:[#allocation10 + $0x1a0] sm:$0xf] }
 0x1b0   :  { %v4570_v40 = vor.u32 %v5143_v35, %v4569_v23  ;;  %v4641_v35 = vld [vmem:[#allocation10 + $0x190] sm:$0xf] }
 0x1b1   :  { %2857 = vmatpush.bf16.msra.mxu1 %v4558_v10  ;;  %2822 = vmatpush.bf16.msrb.mxu2 %v4586_v54  ;;  %v4665_v10 = vld [vmem:[#allocation10 + $0x1c0] sm:$0xf]  ;;  %v5126_v54 = vld [vmem:[#allocation10 + $0x84] sm:$0xf]  ;;  %v4642_v43 = vor.u32 %v5161_v37, %v4641_v35  ;;  %v5177_v35 = vld [vmem:[%s5782_s7 + $0x18] sm:$0xff] }
 0x1b2   :  { %v4666_v12 = vor.u32 %v5167_v11, %v4665_v10  ;;  %v4510_v16 = vor.u32 %v5126_v54, %v4507_v13  ;;  %v5162_v13 = vld [vmem:[#allocation10 + $0x1a4] sm:$0xf]  ;;  %v5189_v37 = vld [vmem:[%s5782_s7 + $0x78] sm:$0xff] }
 0x1b3   :  { %v5648_v39 = vpop.f32.mrf.mxu2 }
 0x1b4   :  { %v2221_v1 = vadd.f32 %v5648_v39, %v5639_v30  ;;  %v4606_v30 = vor.u32 %v5150_v2, %v4603_v17  ;;  %v4651_v2 = vld [vmem:[#allocation10 + $0x1a8] sm:$0xf0]  ;;  %v4643_v17 = vld [vmem:[#allocation10 + $0x198] sm:$0xf0] }
 0x1b5   :  { %2858 = vmatpush.bf16.msra.mxu1 %v4550_v22  ;;  %2823 = vmatpush.bf16.msrb.mxu2 %v4578_v26  ;;  %v5165_v22 = vld [vmem:[#allocation10 + $0x1b4] sm:$0xf0]  ;;  %v4595_v26 = vld [vmem:[#allocation10 + $0x138] sm:$0xf0] }
 0x1b6   :  { %v4598_v27 = vor.u32 %v5148_v24, %v4595_v26 }
 0x1b9   :  { %2859 = vmatpush.bf16.msra.mxu1 %v4542_v32  ;;  %2824 = vmatpush.bf16.msrb.mxu2 %v4570_v40  ;;  %v4650_v32 = vor.u32 %v5163_v28, %v4649_v15  ;;  %v5144_v40 = vld [vmem:[#allocation10 + $0x114] sm:$0xf] }
 0x1ba   :  { %v4582_v44 = vor.u32 %v5144_v40, %v4579_v41  ;;  %v5181_v28 = vld [vmem:[%s5782_s7 + $0x38] sm:$0xff] }
 0x1bb   :  { %v2222_v62 = vpop.f32.mrf.mxu2 }
 0x1bc   :  { %v4674_v62 = vor.u32 %v5169_v60, %v4673_v59  ;;  %v5168_v59 = vld [vmem:[#allocation10 + $0x1d4] sm:$0xf]  ;;  %v4675_v60 = vld [vmem:[#allocation10 + $0x1d8] sm:$0xf0] }
 0x1bd   :  { %2860 = vmatpush.bf16.msra.mxu1 %v4534_v47  ;;  %v5159_v47 = vld [vmem:[#allocation10 + $0x184] sm:$0xf0] }
 0x1be   :  { %2832 = vmatpush.bf16.msrb.mxu3 %v4674_v62  ;;  %v4634_v51 = vor.u32 %v5159_v47, %v4633_v46  ;;  %v4678_v62 = vor.u32 %v5168_v59, %v4675_v60  ;;  %v5175_v47 = vld [vmem:[%s5782_s7 + $0x8] sm:$0xff] }
 0x1c1   :  { %v5650_v45 = vpop.f32.mrf.mxu0  ;;  %2861 = vmatpush.bf16.msra.mxu1 %v4526_v57 }
 0x1c2   :  { %v2351_v31 = vadd.f32 %v5650_v45, %v1540_v18  ;;  %v4630_v45 = vor.u32 %v5156_v33, %v4627_v48  ;;  %2833 = vmatpush.bf16.msrb.mxu3 %v4666_v12  ;;  %v4657_v18 = vld [vmem:[#allocation10 + $0x1b0] sm:$0xf]  ;;  %v5142_v33 = vld [vmem:[#allocation10 + $0x104] sm:$0xf] }
 0x1c3   :  { %v5653_v20 = vpop.f32.mrf.mxu2  ;;  %v4658_v25 = vor.u32 %v5165_v22, %v4657_v18 }
 0x1c4   :  { %2869 = vmatpush.bf16.msra.mxu2 %v4630_v45  ;;  %v2273_v48 = vadd.f32 %v5653_v20, %v5643_v19  ;;  %v5172_v45 = vld [vmem:[#allocation10 + $0x1f4] sm:$0xf] }
 0x1c5   :  { %2862 = vmatpush.bf16.msra.mxu1 %v4518_v3  ;;  %v4694_v55 = vor.u32 %v5172_v45, %v4691_v50 }
 0x1c6   :  { %2834 = vmatpush.bf16.msrb.mxu3 %v4658_v25 }
 0x1c7   :  { %v2363_v34 = vpop.f32.mrf.mxu1 }
 0x1c8   :  { %v5656_v38 = vadd.f32 %v2363_v34, %v2351_v31  ;;  %2870 = vmatpush.bf16.msra.mxu2 %v4622_v36  ;;  %v5146_v31 = vld [vmem:[#allocation10 + $0x124] sm:$0xf]  ;;  %v4587_v34 = vld [vmem:[#allocation10 + $0x128] sm:$0xf0] }
 0x1c9   :  { %v2352_v7 = vpop.f32.mrf.mxu0  ;;  %2863 = vmatpush.bf16.msra.mxu1 %v4510_v16  ;;  %v4590_v23 = vor.u32 %v5146_v31, %v4587_v34  ;;  %v5170_v36 = vld [vmem:[#allocation10 + $0x1e4] sm:$0xf]  ;;  %v5160_v16 = vld [vmem:[#allocation10 + $0x194] sm:$0xf]  ;;  %v5180_v31 = vld [vmem:[%s5782_s7 + $0x30] sm:$0xff] }
 0x1ca   :  { %v4614_v7 = vor.u32 %v5152_v61, %v4611_v4  ;;  %2835 = vmatpush.bf16.msrb.mxu3 %v4650_v32  ;;  %v4667_v61 = vld [vmem:[#allocation10 + $0x1c8] sm:$0xf0] }
 0x1cb   :  { %v2274_v49 = vpop.f32.mrf.mxu2  ;;  %v4670_v3 = vor.u32 %v5166_v0, %v4667_v61 }
 0x1cc   :  { %2871 = vmatpush.bf16.msra.mxu2 %v4614_v7  ;;  %v4571_v49 = vld [vmem:[#allocation10 + $0x108] sm:$0xf0]  ;;  %v5164_v7 = vld [vmem:[#allocation10 + $0x1b4] sm:$0xf] }
 0x1cd   :  { %v4574_v53 = vor.u32 %v5142_v33, %v4571_v49  ;;  %v5187_v33 = vld [vmem:[%s5782_s7 + $0x68] sm:$0xff]  ;;  %v5186_v49 = vld [vmem:[%s5782_s7 + $0x60] sm:$0xff] }
 0x1ce   :  { %2836 = vmatpush.bf16.msrb.mxu3 %v4642_v43  ;;  %v5176_v43 = vld [vmem:[%s5782_s7 + $0x10] sm:$0xff] }
 0x1cf   :  { %v2365_v58 = vpop.f32.mrf.mxu1 }
 0x1d0   :  { %2872 = vmatpush.bf16.msra.mxu2 %v4606_v30  ;;  %v4683_v58 = vld [vmem:[#allocation10 + $0x1e8] sm:$0xf0] }
 0x1d1   :  { %v4686_v19 = vor.u32 %v5170_v36, %v4683_v58  ;;  %v5197_v58 = vld [vmem:[%s5784_s9 + $0x38] sm:$0xff] }
 0x1d2   :  { %2837 = vmatpush.bf16.msrb.mxu3 %v4634_v51 }
 0x1d3   :  { %v5660_v6 = vpop.f32.mrf.mxu2 }
 0x1d4   :  { %2873 = vmatpush.bf16.msra.mxu2 %v4598_v27 }
 0x1d5   :  { %v2233_v5 = vpop.f32.mrf.mxu3 }
 0x1d6   :  { %v2234_v8 = vadd.f32 %v2233_v5, %v2221_v1  ;;  %2882 = vmatpush.bf16.msra.mxu3 %v4694_v55  ;;  %v2325_v1 = vadd.f32 %v5660_v6, %v5646_v21  ;;  %v4646_v21 = vor.u32 %v5160_v16, %v4643_v17  ;;  %v5158_v6 = vld [vmem:[#allocation10 + $0x184] sm:$0xf]  ;;  %v5182_v55 = vld [vmem:[%s5782_s7 + $0x40] sm:$0xff]  ;;  %v5193_v16 = vld [vmem:[%s5784_s9 + $0x18] sm:$0xff] }
 0x1d7   :  { %v5192_v17 = vld [vmem:[%s5784_s9 + $0x10] sm:$0xff] }
 0x1d8   :  { %v2393_v14 = vmax.f32 %v2234_v8, 0.0  ;;  %2874 = vmatpush.bf16.msra.mxu2 %v4590_v23  ;;  %v4659_v8 = vld [vmem:[#allocation10 + $0x1b8] sm:$0xf0] }
 0x1d9   :  { %v4662_v11 = vor.u32 %v5164_v7, %v4659_v8  ;;  %v5178_v23 = vld [vmem:[%s5782_s7 + $0x20] sm:$0xff] }
 0x1da   :  { %v2462_v39 = vpack.c.bf16 %v2393_v14, %v2393_v14  ;;  %2883 = vmatpush.bf16.msra.mxu3 %v4686_v19  ;;  %v4654_v14 = vor.u32 %v5162_v13, %v4651_v2  ;;  %v5196_v19 = vld [vmem:[%s5784_s9 + $0x30] sm:$0xff]  ;;  %v5195_v2 = vld [vmem:[%s5784_s9 + $0x28] sm:$0xff] }
 0x1db   :  { %v2326_v9 = vpop.f32.mrf.mxu2 }
 0x1dc   :  { %2799 = vmatmul.bf16.vlgmr.msrb.gmra.mxu0 %v2462_v39  ;;  %2875 = vmatpush.bf16.msra.mxu2 %v4582_v44  ;;  %v5188_v44 = vld [vmem:[%s5782_s7 + $0x70] sm:$0xff] }
 0x1dd   :  { %v2235_v29 = vpop.f32.mrf.mxu3  ;;  %3031 = vmatpush.bf16.msrb.mxu0 %v5181_v28 }
 0x1de   :  { %2884 = vmatpush.bf16.msra.mxu3 %v4678_v62 }
 0x1e0   :  { %2876 = vmatpush.bf16.msra.mxu2 %v4574_v53  ;;  %v5183_v53 = vld [vmem:[%s5782_s7 + $0x48] sm:$0xff] }
 0x1e1   :  { %3032 = vmatpush.bf16.msrb.mxu0 %v5180_v31  ;;  %v5198_v31 = vld [vmem:[%s5786_s11] sm:$0xff] }
 0x1e2   :  { %2885 = vmatpush.bf16.msra.mxu3 %v4670_v3 }
 0x1e5   :  { %v2285_v42 = vpop.f32.mrf.mxu3 }
 0x1e6   :  { %v2286_v52 = vadd.f32 %v2285_v42, %v2273_v48  ;;  %2886 = vmatpush.bf16.msra.mxu3 %v4662_v11  ;;  %v5174_v48 = vld [vmem:[%s5782_s7] sm:$0xff]  ;;  %v5185_v42 = vld [vmem:[%s5782_s7 + $0x58] sm:$0xff] }
 0x1e8   :  { %v2394_v56 = vmax.f32 %v2286_v52, 0.0  ;;  %v5184_v52 = vld [vmem:[%s5782_s7 + $0x50] sm:$0xff] }
 0x1ea   :  { %v2463_v57 = vpack.c.bf16 %v2394_v56, %v2394_v56  ;;  %2887 = vmatpush.bf16.msra.mxu3 %v4654_v14  ;;  %v5194_v14 = vld [vmem:[%s5784_s9 + $0x20] sm:$0xff] }
 0x1ec   :  { %2812 = vmatmul.bf16.vlgmr.msrb.gmra.mxu1 %v2463_v57  ;;  %2851 = vmatmul.bf16.vlgmr.msra.gmra.mxu0 %v2462_v39  ;;  %v4635_v39 = vld [vmem:[#allocation10 + $0x188] sm:$0xf0] }
 0x1ed   :  { %v2287_v20 = vpop.f32.mrf.mxu3  ;;  %v4638_v18 = vor.u32 %v5158_v6, %v4635_v39  ;;  %3044 = vmatpush.bf16.msrb.mxu1 %v5189_v37  ;;  %v5201_v6 = vld [vmem:[%s5786_s11 + $0x18] sm:$0xff]  ;;  %v5200_v39 = vld [vmem:[%s5786_s11 + $0x10] sm:$0xff] }
 0x1ee   :  { %2888 = vmatpush.bf16.msra.mxu3 %v4646_v21  ;;  %v5190_v21 = vld [vmem:[%s5784_s9] sm:$0xff] }
 0x1f1   :  { %3045 = vmatpush.bf16.msrb.mxu1 %v5188_v44  ;;  %v5219_v44 = vld [vmem:[%s5787_s12] ss:$0 sm:$0xff] }
 0x1f2   :  { %2889 = vmatpush.bf16.msra.mxu3 %v4638_v18  ;;  %v5199_v18 = vld [vmem:[%s5786_s11 + $0x8] sm:$0xff] }
 0x1f3   :  { %v2376_v63 = vpop.f32.mrf.mxu2 }
 0x1f4   :  { %v2377_v22 = vadd.f32 %v2376_v63, %v5656_v38  ;;  %v5179_v38 = vld [vmem:[%s5782_s7 + $0x28] sm:$0xff] }
 0x1f5   :  { %v2337_v4 = vpop.f32.mrf.mxu3  ;;  %3033 = vmatpush.bf16.msrb.mxu0 %v5179_v38  ;;  %3046 = vmatpush.bf16.msrb.mxu1 %v5187_v33  ;;  %v5203_v38 = vld [vmem:[%s5788_s13 + $0x8] sm:$0xff] }
 0x1f6   :  { %v2338_v5 = vadd.f32 %v2337_v4, %v2325_v1 }
 0x1f8   :  { %v2395_v10 = vmax.f32 %v2338_v5, 0.0 }
 0x1f9   :  { %3034 = vmatpush.bf16.msrb.mxu0 %v5178_v23  ;;  %3047 = vmatpush.bf16.msrb.mxu1 %v5186_v49 }
 0x1fa   :  { %v2464_v12 = vpack.c.bf16 %v2395_v10, %v2395_v10 }
 0x1fb   :  { %v2378_v54 = vpop.f32.mrf.mxu2 }
 0x1fc   :  { %2825 = vmatmul.bf16.vlgmr.msrb.gmra.mxu2 %v2464_v12  ;;  %2864 = vmatmul.bf16.vlgmr.msra.gmra.mxu1 %v2463_v57  ;;  %v2461_v57 = vld [vmem:[#allocation11] sm:$0x3] }
 0x1fd   :  { %v2339_v30 = vpop.f32.mrf.mxu3  ;;  %3035 = vmatpush.bf16.msrb.mxu0 %v5177_v35  ;;  %3048 = vmatpush.bf16.msrb.mxu1 %v5185_v42  ;;  %v2467_v36 = vperm.slane %v2461_v57, 0  ;;  %v2468_v3 = vperm.slane %v2461_v57, 1 }
 0x1fe   :  { %3127 = vmatpush.bf16.msrb.mxu2 %v5197_v58  ;;  %v5191_v30 = vld [vmem:[%s5784_s9 + $0x8] sm:$0xff] }
 0x201   :  { %3036 = vmatpush.bf16.msrb.mxu0 %v5176_v43  ;;  %3049 = vmatpush.bf16.msrb.mxu1 %v5184_v52  ;;  %v5204_v43 = vld [vmem:[%s5790_s15] sm:$0xff] }
 0x202   :  { %3128 = vmatpush.bf16.msrb.mxu2 %v5196_v19 }
 0x205   :  { %3037 = vmatpush.bf16.msrb.mxu0 %v5175_v47  ;;  %3050 = vmatpush.bf16.msrb.mxu1 %v5183_v53 }
 0x206   :  { %3129 = vmatpush.bf16.msrb.mxu2 %v5195_v2 }
 0x209   :  { %3038 = vmatpush.bf16.msrb.mxu0 %v5174_v48  ;;  %3051 = vmatpush.bf16.msrb.mxu1 %v5182_v55  ;;  %v5221_v55 = vld [vmem:[%s5791_s16] ss:$0 sm:$0xff] }
 0x20a   :  { %3130 = vmatpush.bf16.msrb.mxu2 %v5194_v14 }
 0x20c   :  { %2877 = vmatmul.bf16.vlgmr.msra.gmra.mxu2 %v2464_v12 }
 0x20d   :  { %3259 = vmatpush.bf16.msra.mxu0 %v5204_v43 }
 0x20e   :  { %3131 = vmatpush.bf16.msrb.mxu2 %v5193_v16 }
 0x212   :  { %3132 = vmatpush.bf16.msrb.mxu2 %v5192_v17 }
 0x215   :  { %v2389_v25 = vpop.f32.mrf.mxu3 }
 0x216   :  { %v2390_v24 = vadd.f32 %v2389_v25, %v2377_v22  ;;  %3133 = vmatpush.bf16.msrb.mxu2 %v5191_v30 }
 0x218   :  { %v2396_v26 = vmax.f32 %v2390_v24, 0.0  ;;  %v5217_v24 = vld [vmem:[%s5783_s8] ss:$0 sm:$0xff] }
 0x21a   :  { %v2465_v27 = vpack.c.bf16 %v2396_v26, %v2396_v26  ;;  %3134 = vmatpush.bf16.msrb.mxu2 %v5190_v21 }
 0x21c   :  { %2838 = vmatmul.bf16.vlgmr.msrb.gmra.mxu3 %v2465_v27 }
 0x21d   :  { %v2391_v29 = vpop.f32.mrf.mxu3  ;;  %3186 = vmatpush.bf16.msrb.mxu3 %v5201_v6 }
 0x221   :  { %3187 = vmatpush.bf16.msrb.mxu3 %v5200_v39 }
 0x225   :  { %3188 = vmatpush.bf16.msrb.mxu3 %v5199_v18 }
 0x229   :  { %3189 = vmatpush.bf16.msrb.mxu3 %v5198_v31 }
 0x22c   :  { %2890 = vmatmul.bf16.vlgmr.msra.gmra.mxu3 %v2465_v27 }
 0x22d   :  { %3227 = vmatpush.bf16.msra.mxu3 %v5203_v38 }
 0x259   :  { %v2800_v9 = vpop.f32.mrf.mxu0 }
 0x25a   :  { %v2801_v20 = vadd.f32 %v2800_v9, %v2467_v36 }
 0x261   :  { %v2802_v15 = vpop.f32.mrf.mxu0 }
 0x269   :  { %v2813_v32 = vpop.f32.mrf.mxu1  ;;  %v2852_v34 = vpop.f32.mrf.mxu0 }
 0x26a   :  { %v2814_v60 = vadd.f32 %v2813_v32, %v2801_v20  ;;  %v2853_v5 = vadd.f32 %v2852_v34, %v2468_v3  ;;  %v5202_v32 = vld [vmem:[%s5788_s13] sm:$0xff]  ;;  %v5218_v34 = vld [vmem:[#allocation13] ss:$0 sm:$0xff] }
 0x26b   :  { %3228 = vmatpush.bf16.msra.mxu3 %v5202_v32 }
 0x271   :  { %v2815_v40 = vpop.f32.mrf.mxu1  ;;  %v2854_v41 = vpop.f32.mrf.mxu0 }
 0x279   :  { %v2865_v46 = vpop.f32.mrf.mxu1 }
 0x27a   :  { %v2866_v7 = vadd.f32 %v2865_v46, %v2853_v5 }
 0x27f   :  { %v2826_v45 = vpop.f32.mrf.mxu2 }
 0x280   :  { %v2827_v62 = vadd.f32 %v2826_v45, %v2814_v60  ;;  %v5220_v45 = vld [vmem:[%s5789_s14] ss:$0 sm:$0xff] }
 0x281   :  { %v2867_v50 = vpop.f32.mrf.mxu1 }
 0x287   :  { %v2828_v51 = vpop.f32.mrf.mxu2 }
 0x28f   :  { %v2878_v56 = vpop.f32.mrf.mxu2 }
 0x290   :  { %v2879_v8 = vadd.f32 %v2878_v56, %v2866_v7 }
 0x297   :  { %v2880_v59 = vpop.f32.mrf.mxu2 }
 0x29f   :  { %v2839_v63 = vpop.f32.mrf.mxu3 }
 0x2a0   :  { %v2840_v0 = vadd.f32 %v2839_v63, %v2827_v62 }
 0x2a2   :  { %v2895_v61 = vmax.f32 %v2840_v0, 0.0 }
 0x2a4   :  { %v2930_v1 = vpack.c.bf16 %v2895_v61, %v2895_v61 }
 0x2a6   :  { %3039 = vmatmul.bf16.vlgmr.msrb.gmra.mxu0 %v2930_v1 }
 0x2a7   :  { %v2841_v4 = vpop.f32.mrf.mxu3 }
 0x2af   :  { %v2891_v10 = vpop.f32.mrf.mxu3 }
 0x2b0   :  { %v2892_v11 = vadd.f32 %v2891_v10, %v2879_v8 }
 0x2b2   :  { %v2896_v12 = vmax.f32 %v2892_v11, 0.0 }
 0x2b4   :  { %v2931_v54 = vpack.c.bf16 %v2896_v12, %v2896_v12 }
 0x2b6   :  { %3052 = vmatmul.bf16.vlgmr.msrb.gmra.mxu1 %v2931_v54 }
 0x2b7   :  { %v2893_v13 = vpop.f32.mrf.mxu3 }
 0x323   :  { %v3040_v22 = vpop.f32.mrf.mxu0 }
 0x324   :  { %v3041_v26 = vadd.f32 %v5217_v24, %v3040_v22 }
 0x32b   :  { %v3042_v25 = vpop.f32.mrf.mxu0 }
 0x333   :  { %v3053_v27 = vpop.f32.mrf.mxu1 }
 0x334   :  { %v3054_v29 = vadd.f32 %v3053_v27, %v3041_v26 }
 0x336   :  { %v3057_v9 = vmax.f32 %v3054_v29, 0.0 }
 0x338   :  { %v3075_v15 = vpack.c.bf16 %v3057_v9, %v3057_v9 }
 0x33a   :  { %3135 = vmatmul.bf16.vlgmr.msrb.gmra.mxu2 %v3075_v15 }
 0x33b   :  { %v3055_v28 = vpop.f32.mrf.mxu1 }
 0x3bd   :  { %v3136_v23 = vpop.f32.mrf.mxu2 }
 0x3be   :  { %v3137_v35 = vadd.f32 %v5218_v34, %v3136_v23 }
 0x3c0   :  { %v3140_v37 = vmax.f32 %v3137_v35, 0.0 }
 0x3c2   :  { %v3150_v40 = vpack.c.bf16 %v3140_v37, %v3140_v37 }
 0x3c4   :  { %4807 = vmatmul.msk.bf16.vlgmr.msrb.gmra.mxu3 %vm3178_vm0, %v3150_v40 }
 0x3c5   :  { %v3138_v41 = vpop.f32.mrf.mxu2 }
 0x447   :  { %v3191_v46 = vpop.f32.mrf.mxu3 }
 0x448   :  { %v3192_v47 = vadd.f32 %v5219_v44, %v3191_v46 }
 0x44a   :  { %v3195_v33 = vmax.f32 %v3192_v47, 0.0 }
 0x44c   :  { %v3201_v48 = vpack.c.bf16 %v3195_v33, %v3195_v33 }
 0x44e   :  { %4816 = vmatmul.msk.bf16.vlgmr.msra.gmra.mxu3 %vm3217_vm1, %v3201_v48 }
 0x44f   :  { %v3193_v49 = vpop.f32.mrf.mxu3 }
 0x4d1   :  { %v3230_v50 = vpop.f32.mrf.mxu3 }
 0x4d2   :  { %v3231_v42 = vadd.f32 %v5220_v45, %v3230_v50 }
 0x4d4   :  { %v3234_v52 = vmax.f32 %v3231_v42, 0.0 }
 0x4d6   :  { %v3238_v51 = vpack.c.bf16 %v3234_v52, %v3234_v52 }
 0x4d8   :  { %4821 = vmatmul.msk.bf16.vlgmr.msra.gmra.mxu0 %vm3248_vm2, %v3238_v51 }
 0x4d9   :  { %v3232_v53 = vpop.f32.mrf.mxu3 }
 0x555   :  { %v3261_v56 = vpop.f32.mrf.mxu0 }
 0x556   :  { %v3262_v57 = vadd.f32 %v5221_v55, %v3261_v56 }
 0x558   :  { %v3265_v36 = vmax.f32 %v3262_v57, 0.0 }
 0x55a   :  { %3266 = vst [vmem:[#allocation14] sm:$0xff] %v3265_v36 }
 0x55b   :  { %3277 = dma.vmem_to_hbm [thread:$0]  %s3273_s2, 128, %s3275_s23, [#allocation4]  }
 0x55d   :  { %v3263_v58 = vpop.f32.mrf.mxu0 }
 0x55e   :  { %5422 = dma.done.wait [#allocation4], 128  }
 0x55f   :  { %5423 = vsyncadd [#allocation4], 4294967168 }
 0x560   :  { %3282 = vsyncpa [#allocation3], 1 }
 0x561   :  { %3283 = vsyncpa [#allocation6], 1 }
 0x562   :  { %3284 = vsyncpa [#allocation9], 1 }
 0x563   :  { %3285 = vsyncpa [#allocation12], 1 }
 0x564   :  { %3286 = vsyncpa [#allocation4], 1 }

// kernel: tpu_custom_call.1
= control target key start
LH: loop header
LB: loop body
LE: loop exit
PB: predicated region body
PF: predicated region fallthrough
CT: control target
= control target key end

     0   :  { %s5775_s0 = inlined_call_operand.vmem [shape: f32[8,640], index: 0, kind: input, shape index: {}]   ;;  %s5776_s1 = inlined_call_operand.hbm [shape: bf16[640,512], index: 1, kind: input, shape index: {}]   ;;  %s5777_s2 = inlined_call_operand.hbm [shape: f32[1,512], index: 2, kind: input, shape index: {}]   ;;  %s5778_s3 = inlined_call_operand.hbm [shape: bf16[512,512], index: 3, kind: input, shape index: {}]   ;;  %s5779_s4 = inlined_call_operand.hbm [shape: f32[1,512], index: 4, kind: input, shape index: {}]   ;;  %s5780_s5 = inlined_call_operand.hbm [shape: bf16[512,256], index: 5, kind: input, shape index: {}]   ;;  %s5781_s6 = inlined_call_operand.hbm [shape: f32[1,256], index: 6, kind: input, shape index: {}]   ;;  %s5782_s7 = inlined_call_operand.vmem [shape: bf16[256,128], index: 7, kind: input, shape index: {}]   ;;  %s5783_s8 = inlined_call_operand.vmem [shape: f32[1,128], index: 8, kind: input, shape index: {}]   ;;  %s5784_s9 = inlined_call_operand.vmem [shape: bf16[128,64], index: 9, kind: input, shape index: {}]   ;;  %s5785_s10 = inlined_call_operand.hbm [shape: f32[1,64], index: 10, kind: input, shape index: {}]   ;;  %s5786_s11 = inlined_call_operand.vmem [shape: bf16[64,32], index: 11, kind: input, shape index: {}]   ;;  %s5787_s12 = inlined_call_operand.vmem [shape: f32[1,32], index: 12, kind: input, shape index: {}]   ;;  %s5788_s13 = inlined_call_operand.vmem [shape: bf16[32,16], index: 13, kind: input, shape index: {}]   ;;  %s5789_s14 = inlined_call_operand.vmem [shape: f32[1,16], index: 14, kind: input, shape index: {}]   ;;  %s5790_s15 = inlined_call_operand.vmem [shape: bf16[16,128], index: 15, kind: input, shape index: {}]   ;;  %s5791_s16 = inlined_call_operand.vmem [shape: f32[1,128], index: 16, kind: input, shape index: {}]   ;;  %s5792_s17 = inlined_call_operand.hbm [shape: f32[8,128], index: 17, kind: output, shape index: {}]  }
   0x1   :  { %5794 = sst [smem:[#allocation20_spill]] %s5775_s0 }
   0x2   :  { %5795 = sst [smem:[#allocation21_spill]] %s5776_s1 }
   0x3   :  { %22 = vsyncpa [#allocation3], 0 }
   0x4   :  { %23 = vsyncpa [#allocation6], 0 }
   0x5   :  { %24 = vsyncpa [#allocation9], 0 }
   0x6   :  { %25 = vsyncpa [#allocation12], 0  ;;  %s47_s26 = sshll.u32 %s5777_s2, 4  ;;  %s48_s26 = int_to_ptr.hbm [resolvable:$true] %s47_s26 }
   0x7   :  { %26 = vsyncpa [#allocation4], 0  ;;  %s5424_s27 = smov [#allocation5]   ;;  %s71_s30 = sshll.u32 %s5779_s4, 4  ;;  %s72_s30 = int_to_ptr.hbm [resolvable:$true] %s71_s30 }
   0x8   :  { %s49_s28 = sshll.u32 %s5424_s27, 4  ;;  %s5425_s18 = smov [#allocation8]   ;;  %s50_s28 = int_to_ptr.vmem [resolvable:$true] %s49_s28 }
   0x9   :  { %52 = dma.hbm_to_vmem [thread:$0]  %s48_s26, 64, %s50_s28, [#allocation6]  }
   0xa   :  { %s73_s19 = sshll.u32 %s5425_s18, 4  ;;  %s95_s21 = sshll.u32 %s5781_s6, 4  ;;  %s74_s19 = int_to_ptr.vmem [resolvable:$true] %s73_s19  ;;  %s96_s21 = int_to_ptr.hbm [resolvable:$true] %s95_s21 }
   0xb   :  { %76 = dma.hbm_to_vmem [thread:$0]  %s72_s30, 64, %s74_s19, [#allocation9]  }
   0xc   :  { %s5796_s23 = sld [smem:[#allocation21_spill]]  ;;  %s5426_s25 = smov [#allocation11]  }
   0xd   :  { %s97_s27 = sshll.u32 %s5426_s25, 4  ;;  %s5427_s4 = smov [#allocation2]   ;;  %s98_s27 = int_to_ptr.vmem [resolvable:$true] %s97_s27 }
   0xe   :  { %100 = dma.hbm_to_vmem [thread:$0]  %s96_s21, 32, %s98_s27, [#allocation12]  }
   0xf   :  { %s35_s26 = sshll.u32 %s5427_s4, 4  ;;  %s5428_s28 = smov 256   ;;  %s36_s26 = int_to_ptr.vmem [resolvable:$true] %s35_s26 }
  0x10   :  { %s5429_s29 = smov 16   ;;  %s57_s18 = sshll.u32 %s5778_s3, 4  ;;  %s58_s18 = int_to_ptr.hbm [resolvable:$true] %s57_s18 }
  0x11   :  { %s5430_s30 = smov [#allocation7]   ;;  %s81_s2 = sshll.u32 %s5780_s5, 4  ;;  %s82_s2 = int_to_ptr.hbm [resolvable:$true] %s81_s2 }
  0x12   :  { %s33_s24 = sshll.u32 %s5796_s23, 4  ;;  %s59_s19 = sshll.u32 %s5430_s30, 4  ;;  %s34_s24 = int_to_ptr.hbm [resolvable:$true] %s33_s24  ;;  %s60_s19 = int_to_ptr.vmem [resolvable:$true] %s59_s19 }
  0x13   :  { %41 = dma.hbm_to_vmem [thread:$0]  %s34_s24, 20480, %s36_s26, [#allocation3], %s5428_s28, %s5428_s28, %s5429_s29  }
  0x14   :  { %65 = dma.hbm_to_vmem [thread:$0]  %s58_s18, 16384, %s60_s19, [#allocation6], %s5428_s28, %s5428_s28, %s5429_s29  }
  0x15   :  { %s5431_s21 = smov [#allocation10]   ;;  %s5432_s23 = smov 128  }
  0x16   :  { %s83_s22 = sshll.u32 %s5431_s21, 4  ;;  %s5433_s25 = smov 8   ;;  %s84_s22 = int_to_ptr.vmem [resolvable:$true] %s83_s22 }
  0x17   :  { %89 = dma.hbm_to_vmem [thread:$0]  %s82_s2, 8192, %s84_s22, [#allocation9], %s5432_s23, %s5432_s23, %s5433_s25  }
  0x18   :  { %s112_s3 = sshll.u32 %s5785_s10, 4  ;;  %s5434_s4 = smov [#allocation13]   ;;  %s113_s3 = int_to_ptr.hbm [resolvable:$true] %s112_s3 }
  0x19   :  { %s114_s26 = sshll.u32 %s5434_s4, 4  ;;  %s115_s26 = int_to_ptr.vmem [resolvable:$true] %s114_s26 }
  0x1a   :  { %117 = dma.hbm_to_vmem [thread:$0]  %s113_s3, 16, %s115_s26, [#allocation12]  }
  0x1b   :  { %5414 = dma.done.wait [#allocation3], 20480  }
  0x1c   :  { %5415 = vsyncadd [#allocation3], 4294946816 }
  0x1d   :  { %5416 = dma.done.wait [#allocation6], 16448  }
  0x1e   :  { %5417 = vsyncadd [#allocation6], 4294950848 }
  0x1f   :  { %5418 = dma.done.wait [#allocation9], 8256  }
  0x20   :  { %5419 = vsyncadd [#allocation9], 4294959040 }
  0x21   :  { %5420 = dma.done.wait [#allocation12], 48  }
  0x22   :  { %5421 = vsyncadd [#allocation12], 4294967248  ;;  %v3401_v0 = vld [vmem:[#allocation2 + $0xe0] sm:$0xf]  ;;  %v4852_v1 = vld [vmem:[#allocation2 + $0xec] sm:$0xf0] }
  0x23   :  { %v3529_v2 = vld [vmem:[#allocation2 + $0x1e0] sm:$0xf]  ;;  %v3402_v3 = vor.u32 %v4852_v1, %v3401_v0  ;;  %v4884_v4 = vld [vmem:[#allocation2 + $0x1ec] sm:$0xf0]  ;;  %s5797_s28 = sld [smem:[#allocation20_spill]]  ;;  %vm3178_vm0 = vcmask 523264  }
  0x24   :  { %v3657_v5 = vld [vmem:[#allocation2 + $0x2e0] sm:$0xf]  ;;  %v4916_v6 = vld [vmem:[#allocation2 + $0x2ec] sm:$0xf0]  ;;  %v3530_v7 = vor.u32 %v4884_v4, %v3529_v2  ;;  %vm3217_vm1 = vcmask 261120   ;;  %vm3248_vm2 = vcmask 130048  }
  0x25   :  { %v3658_v8 = vor.u32 %v4916_v6, %v3657_v5  ;;  %v3785_v9 = vld [vmem:[#allocation2 + $0x3e0] sm:$0xf]  ;;  %v4948_v10 = vld [vmem:[#allocation2 + $0x3ec] sm:$0xf0]  ;;  %1139 = vmatpush.bf16.msra.mxu0 %v3402_v3  ;;  %s5435_s20 = smov [#allocation14]   ;;  %s3274_s23 = sshll.u32 %s5792_s17, 4  ;;  %s3275_s23 = int_to_ptr.hbm [resolvable:$true] %s3274_s23 }
  0x26   :  { %v3385_v11 = vld [vmem:[#allocation2 + $0xc0] sm:$0xf]  ;;  %v3786_v12 = vor.u32 %v4948_v10, %v3785_v9  ;;  %v4848_v13 = vld [vmem:[#allocation2 + $0xcc] sm:$0xf0]  ;;  %1152 = vmatpush.bf16.msra.mxu1 %v3530_v7  ;;  %s3272_s2 = sshll.u32 %s5435_s20, 4  ;;  %s3273_s2 = int_to_ptr.vmem [resolvable:$true] %s3272_s2 }
  0x27   :  { %v3513_v14 = vld [vmem:[#allocation2 + $0x1c0] sm:$0xf]  ;;  %v4880_v15 = vld [vmem:[#allocation2 + $0x1cc] sm:$0xf0]  ;;  %1165 = vmatpush.bf16.msra.mxu2 %v3658_v8  ;;  %v3386_v16 = vor.u32 %v4848_v13, %v3385_v11 }
  0x28   :  { %v3514_v17 = vor.u32 %v4880_v15, %v3513_v14  ;;  %v3641_v18 = vld [vmem:[#allocation2 + $0x2c0] sm:$0xf]  ;;  %v4912_v19 = vld [vmem:[#allocation2 + $0x2cc] sm:$0xf0]  ;;  %1178 = vmatpush.bf16.msra.mxu3 %v3786_v12 }
  0x29   :  { %v3769_v20 = vld [vmem:[#allocation2 + $0x3c0] sm:$0xf]  ;;  %v3642_v21 = vor.u32 %v4912_v19, %v3641_v18  ;;  %v4944_v22 = vld [vmem:[#allocation2 + $0x3cc] sm:$0xf0]  ;;  %1140 = vmatpush.bf16.msra.mxu0 %v3386_v16 }
  0x2a   :  { %v3369_v23 = vld [vmem:[#allocation2 + $0xa0] sm:$0xf]  ;;  %v4844_v24 = vld [vmem:[#allocation2 + $0xac] sm:$0xf0]  ;;  %v3770_v25 = vor.u32 %v4944_v22, %v3769_v20  ;;  %1153 = vmatpush.bf16.msra.mxu1 %v3514_v17 }
  0x2b   :  { %v3497_v26 = vld [vmem:[#allocation2 + $0x1a0] sm:$0xf]  ;;  %v4876_v27 = vld [vmem:[#allocation2 + $0x1ac] sm:$0xf0]  ;;  %v3370_v29 = vor.u32 %v4844_v24, %v3369_v23  ;;  %1166 = vmatpush.bf16.msra.mxu2 %v3642_v21 }
  0x2c   :  { %v3625_v28 = vld [vmem:[#allocation2 + $0x2a0] sm:$0xf]  ;;  %v4908_v30 = vld [vmem:[#allocation2 + $0x2ac] sm:$0xf0]  ;;  %v3498_v33 = vor.u32 %v4876_v27, %v3497_v26  ;;  %1179 = vmatpush.bf16.msra.mxu3 %v3770_v25 }
  0x2d   :  { %v3753_v31 = vld [vmem:[#allocation2 + $0x3a0] sm:$0xf]  ;;  %v4940_v32 = vld [vmem:[#allocation2 + $0x3ac] sm:$0xf0]  ;;  %v3626_v34 = vor.u32 %v4908_v30, %v3625_v28  ;;  %1141 = vmatpush.bf16.msra.mxu0 %v3370_v29  ;;  %v4850_v30 = vld [vmem:[#allocation2 + $0xe4] sm:$0xf] }
  0x2e   :  { %v3353_v35 = vld [vmem:[#allocation2 + $0x80] sm:$0xf]  ;;  %v4840_v36 = vld [vmem:[#allocation2 + $0x8c] sm:$0xf0]  ;;  %v3754_v38 = vor.u32 %v4940_v32, %v3753_v31  ;;  %1154 = vmatpush.bf16.msra.mxu1 %v3498_v33  ;;  %v3403_v32 = vld [vmem:[#allocation2 + $0xf0] sm:$0xf0] }
  0x2f   :  { %v3481_v37 = vld [vmem:[#allocation2 + $0x180] sm:$0xf]  ;;  %v4872_v39 = vld [vmem:[#allocation2 + $0x18c] sm:$0xf0]  ;;  %v3354_v44 = vor.u32 %v4840_v36, %v3353_v35  ;;  %1167 = vmatpush.bf16.msra.mxu2 %v3626_v34  ;;  %v4882_v33 = vld [vmem:[#allocation2 + $0x1e4] sm:$0xf] }
  0x30   :  { %v3609_v40 = vld [vmem:[#allocation2 + $0x280] sm:$0xf]  ;;  %v4904_v41 = vld [vmem:[#allocation2 + $0x28c] sm:$0xf0]  ;;  %v3482_v45 = vor.u32 %v4872_v39, %v3481_v37  ;;  %1180 = vmatpush.bf16.msra.mxu3 %v3754_v38  ;;  %v3531_v34 = vld [vmem:[#allocation2 + $0x1f0] sm:$0xf0] }
  0x31   :  { %v3737_v42 = vld [vmem:[#allocation2 + $0x380] sm:$0xf]  ;;  %v4936_v43 = vld [vmem:[#allocation2 + $0x38c] sm:$0xf0]  ;;  %v3610_v46 = vor.u32 %v4904_v41, %v3609_v40  ;;  %1142 = vmatpush.bf16.msra.mxu0 %v3354_v44  ;;  %v4914_v37 = vld [vmem:[#allocation2 + $0x2e4] sm:$0xf]  ;;  %v3406_v41 = vor.u32 %v4850_v30, %v3403_v32 }
  0x32   :  { %v3337_v47 = vld [vmem:[#allocation2 + $0x60] sm:$0xf]  ;;  %v4836_v48 = vld [vmem:[#allocation2 + $0x6c] sm:$0xf0]  ;;  %v3738_v50 = vor.u32 %v4936_v43, %v3737_v42  ;;  %1155 = vmatpush.bf16.msra.mxu1 %v3482_v45  ;;  %v3659_v38 = vld [vmem:[#allocation2 + $0x2f0] sm:$0xf0]  ;;  %v3534_v42 = vor.u32 %v4882_v33, %v3531_v34 }
  0x33   :  { %v3465_v49 = vld [vmem:[#allocation2 + $0x160] sm:$0xf]  ;;  %v4868_v51 = vld [vmem:[#allocation2 + $0x16c] sm:$0xf0]  ;;  %v3338_v56 = vor.u32 %v4836_v48, %v3337_v47  ;;  %1168 = vmatpush.bf16.msra.mxu2 %v3610_v46  ;;  %v4846_v45 = vld [vmem:[#allocation2 + $0xc4] sm:$0xf]  ;;  %v3662_v46 = vor.u32 %v4914_v37, %v3659_v38 }
  0x34   :  { %v3593_v52 = vld [vmem:[#allocation2 + $0x260] sm:$0xf]  ;;  %v4900_v53 = vld [vmem:[#allocation2 + $0x26c] sm:$0xf0]  ;;  %v3466_v57 = vor.u32 %v4868_v51, %v3465_v49  ;;  %1181 = vmatpush.bf16.msra.mxu3 %v3738_v50  ;;  %v3387_v47 = vld [vmem:[#allocation2 + $0xd0] sm:$0xf0] }
  0x35   :  { %v3721_v54 = vld [vmem:[#allocation2 + $0x360] sm:$0xf]  ;;  %v4932_v55 = vld [vmem:[#allocation2 + $0x36c] sm:$0xf0]  ;;  %v3594_v58 = vor.u32 %v4900_v53, %v3593_v52  ;;  %1143 = vmatpush.bf16.msra.mxu0 %v3338_v56  ;;  %v4878_v48 = vld [vmem:[#allocation2 + $0x1c4] sm:$0xf] }
  0x36   :  { %v3321_v59 = vld [vmem:[#allocation2 + $0x40] sm:$0xf]  ;;  %v4832_v60 = vld [vmem:[#allocation2 + $0x4c] sm:$0xf0]  ;;  %v3722_v62 = vor.u32 %v4932_v55, %v3721_v54  ;;  %1156 = vmatpush.bf16.msra.mxu1 %v3466_v57  ;;  %v3515_v49 = vld [vmem:[#allocation2 + $0x1d0] sm:$0xf0]  ;;  %v3390_v55 = vor.u32 %v4846_v45, %v3387_v47 }
  0x37   :  { %v3449_v61 = vld [vmem:[#allocation2 + $0x140] sm:$0xf]  ;;  %v4864_v63 = vld [vmem:[#allocation2 + $0x14c] sm:$0xf0]  ;;  %v3322_v4 = vor.u32 %v4832_v60, %v3321_v59  ;;  %1169 = vmatpush.bf16.msra.mxu2 %v3594_v58  ;;  %v4910_v50 = vld [vmem:[#allocation2 + $0x2c4] sm:$0xf]  ;;  %v3518_v56 = vor.u32 %v4878_v48, %v3515_v49 }
  0x38   :  { %v3577_v0 = vld [vmem:[#allocation2 + $0x240] sm:$0xf]  ;;  %v4896_v1 = vld [vmem:[#allocation2 + $0x24c] sm:$0xf0]  ;;  %v3450_v5 = vor.u32 %v4864_v63, %v3449_v61  ;;  %1182 = vmatpush.bf16.msra.mxu3 %v3722_v62  ;;  %v3643_v51 = vld [vmem:[#allocation2 + $0x2d0] sm:$0xf0] }
  0x39   :  { %v3705_v2 = vld [vmem:[#allocation2 + $0x340] sm:$0xf]  ;;  %v4928_v3 = vld [vmem:[#allocation2 + $0x34c] sm:$0xf0]  ;;  %v3578_v6 = vor.u32 %v4896_v1, %v3577_v0  ;;  %1144 = vmatpush.bf16.msra.mxu0 %v3322_v4  ;;  %v4842_v59 = vld [vmem:[#allocation2 + $0xa4] sm:$0xf]  ;;  %v3646_v60 = vor.u32 %v4910_v50, %v3643_v51 }
  0x3a   :  { %v3305_v7 = vld [vmem:[#allocation2 + $0x20] sm:$0xf]  ;;  %v4828_v8 = vld [vmem:[#allocation2 + $0x2c] sm:$0xf0]  ;;  %v3706_v10 = vor.u32 %v4928_v3, %v3705_v2  ;;  %1157 = vmatpush.bf16.msra.mxu1 %v3450_v5  ;;  %v3371_v61 = vld [vmem:[#allocation2 + $0xb0] sm:$0xf0] }
  0x3b   :  { %v3433_v9 = vld [vmem:[#allocation2 + $0x120] sm:$0xf]  ;;  %v4860_v11 = vld [vmem:[#allocation2 + $0x12c] sm:$0xf0]  ;;  %v3306_v16 = vor.u32 %v4828_v8, %v3305_v7  ;;  %1170 = vmatpush.bf16.msra.mxu2 %v3578_v6  ;;  %v4874_v62 = vld [vmem:[#allocation2 + $0x1a4] sm:$0xf]  ;;  %v3374_v5 = vor.u32 %v4842_v59, %v3371_v61 }
  0x3c   :  { %v3561_v12 = vld [vmem:[#allocation2 + $0x220] sm:$0xf]  ;;  %v4892_v13 = vld [vmem:[#allocation2 + $0x22c] sm:$0xf0]  ;;  %v3434_v19 = vor.u32 %v4860_v11, %v3433_v9  ;;  %1183 = vmatpush.bf16.msra.mxu3 %v3706_v10  ;;  %v3499_v63 = vld [vmem:[#allocation2 + $0x1b0] sm:$0xf0] }
  0x3d   :  { %v3689_v14 = vld [vmem:[#allocation2 + $0x320] sm:$0xf]  ;;  %v4924_v15 = vld [vmem:[#allocation2 + $0x32c] sm:$0xf0]  ;;  %v3562_v20 = vor.u32 %v4892_v13, %v3561_v12  ;;  %1145 = vmatpush.bf16.msra.mxu0 %v3306_v16  ;;  %v4906_v0 = vld [vmem:[#allocation2 + $0x2a4] sm:$0xf]  ;;  %v3502_v6 = vor.u32 %v4874_v62, %v3499_v63 }
  0x3e   :  { %v3289_v17 = vld [vmem:[#allocation2] sm:$0xf]  ;;  %v4824_v18 = vld [vmem:[#allocation2 + $0xc] sm:$0xf0]  ;;  %v3690_v24 = vor.u32 %v4924_v15, %v3689_v14  ;;  %1158 = vmatpush.bf16.msra.mxu1 %v3434_v19  ;;  %v3627_v1 = vld [vmem:[#allocation2 + $0x2b0] sm:$0xf0] }
  0x3f   :  { %v3417_v21 = vld [vmem:[#allocation2 + $0x100] sm:$0xf]  ;;  %v4856_v22 = vld [vmem:[#allocation2 + $0x10c] sm:$0xf0]  ;;  %v3290_v31 = vor.u32 %v4824_v18, %v3289_v17  ;;  %1171 = vmatpush.bf16.msra.mxu2 %v3562_v20  ;;  %v4838_v8 = vld [vmem:[#allocation2 + $0x84] sm:$0xf]  ;;  %v3630_v11 = vor.u32 %v4906_v0, %v3627_v1 }
  0x40   :  { %v3545_v23 = vld [vmem:[#allocation2 + $0x200] sm:$0xf]  ;;  %v4888_v25 = vld [vmem:[#allocation2 + $0x20c] sm:$0xf0]  ;;  %v3418_v35 = vor.u32 %v4856_v22, %v3417_v21  ;;  %1184 = vmatpush.bf16.msra.mxu3 %v3690_v24  ;;  %v162_v10 = vld [vmem:[%s5797_s28 + $0x18] sm:$0xff] }
  0x41   :  { %v3673_v26 = vld [vmem:[#allocation2 + $0x300] sm:$0xf]  ;;  %v4920_v27 = vld [vmem:[#allocation2 + $0x30c] sm:$0xf0]  ;;  %v3546_v36 = vor.u32 %v4888_v25, %v3545_v23  ;;  %1146 = vmatpush.bf16.msra.mxu0 %v3290_v31  ;;  %v3355_v12 = vld [vmem:[#allocation2 + $0x90] sm:$0xf0]  ;;  %v5561_v15 = vpack.c.bf16 %v162_v10, %v162_v10 }
  0x42   :  { %v3913_v28 = vld [vmem:[#allocation2 + $0x4e0] sm:$0xf]  ;;  %v4980_v29 = vld [vmem:[#allocation2 + $0x4ec] sm:$0xf0]  ;;  %v3674_v39 = vor.u32 %v4920_v27, %v3673_v26  ;;  %1159 = vmatpush.bf16.msra.mxu1 %v3418_v35  ;;  %v4870_v13 = vld [vmem:[#allocation2 + $0x184] sm:$0xf]  ;;  %v3358_v20 = vor.u32 %v4838_v8, %v3355_v12 }
  0x43   :  { %v3914_v40 = vor.u32 %v4980_v29, %v3913_v28  ;;  %v3897_v43 = vld [vmem:[#allocation2 + $0x4c0] sm:$0xf]  ;;  %v4976_v44 = vld [vmem:[#allocation2 + $0x4cc] sm:$0xf0]  ;;  %1172 = vmatpush.bf16.msra.mxu2 %v3546_v36  ;;  %v3483_v14 = vld [vmem:[#allocation2 + $0x190] sm:$0xf0] }
  0x44   :  { %v159_v52 = vld [vmem:[%s5797_s28] sm:$0xff]  ;;  %1185 = vmatpush.bf16.msra.mxu3 %v3674_v39  ;;  %v3898_v53 = vor.u32 %v4976_v44, %v3897_v43  ;;  %v4972_v58 = vld [vmem:[#allocation2 + $0x4ac] sm:$0xf0]  ;;  %v3611_v17 = vld [vmem:[#allocation2 + $0x290] sm:$0xf0]  ;;  %v3486_v21 = vor.u32 %v4870_v13, %v3483_v14 }
  0x45   :  { %1191 = vmatpush.bf16.msrb.mxu0 %v3914_v40  ;;  %v5550_v54 = vpack.c.bf16 %v159_v52, %v159_v52  ;;  %v3881_v57 = vld [vmem:[#allocation2 + $0x4a0] sm:$0xf]  ;;  %v161_v4 = vld [vmem:[%s5797_s28 + $0x10] sm:$0xff]  ;;  %v4902_v16 = vld [vmem:[#allocation2 + $0x284] sm:$0xf] }
  0x46   :  { %1204 = vmatpush.bf16.msrb.mxu1 %v3406_v41  ;;  %v3882_v2 = vor.u32 %v4972_v58, %v3881_v57  ;;  %v3865_v3 = vld [vmem:[#allocation2 + $0x480] sm:$0xf]  ;;  %v4968_v7 = vld [vmem:[#allocation2 + $0x48c] sm:$0xf0]  ;;  %v5556_v9 = vpack.c.bf16 %v161_v4, %v161_v4  ;;  %v160_v19 = vld [vmem:[%s5797_s28 + $0x8] sm:$0xff]  ;;  %v3614_v26 = vor.u32 %v4902_v16, %v3611_v17 }
  0x47   :  { %1217 = vmatpush.bf16.msrb.mxu2 %v3534_v42  ;;  %1147 = vmatmul.bf16.vlgmr.msra.gmra.mxu0 %v5550_v54  ;;  %v3866_v18 = vor.u32 %v4968_v7, %v3865_v3  ;;  %v3849_v22 = vld [vmem:[#allocation2 + $0x460] sm:$0xf]  ;;  %v4964_v23 = vld [vmem:[#allocation2 + $0x46c] sm:$0xf0]  ;;  %v4834_v24 = vld [vmem:[#allocation2 + $0x64] sm:$0xf]  ;;  %v5568_v25 = vpack.c.bf16 %v160_v19, %v160_v19 }
  0x48   :  { %1230 = vmatpush.bf16.msrb.mxu3 %v3662_v46  ;;  %1173 = vmatmul.bf16.vlgmr.msra.gmra.mxu2 %v5556_v9  ;;  %v3339_v27 = vld [vmem:[#allocation2 + $0x70] sm:$0xf0]  ;;  %v4866_v28 = vld [vmem:[#allocation2 + $0x164] sm:$0xf]  ;;  %v3850_v32 = vor.u32 %v4964_v23, %v3849_v22  ;;  %v3833_v35 = vld [vmem:[#allocation2 + $0x440] sm:$0xf] }
  0x49   :  { %1192 = vmatpush.bf16.msrb.mxu0 %v3898_v53  ;;  %1186 = vmatmul.bf16.vlgmr.msra.gmra.mxu3 %v5561_v15  ;;  %v3467_v29 = vld [vmem:[#allocation2 + $0x170] sm:$0xf0]  ;;  %v4898_v30 = vld [vmem:[#allocation2 + $0x264] sm:$0xf]  ;;  %v3342_v33 = vor.u32 %v4834_v24, %v3339_v27  ;;  %v4960_v36 = vld [vmem:[#allocation2 + $0x44c] sm:$0xf0] }
  0x4a   :  { %1205 = vmatpush.bf16.msrb.mxu1 %v3390_v55  ;;  %v3595_v31 = vld [vmem:[#allocation2 + $0x270] sm:$0xf0]  ;;  %v3470_v34 = vor.u32 %v4866_v28, %v3467_v29  ;;  %v4830_v37 = vld [vmem:[#allocation2 + $0x44] sm:$0xf]  ;;  %v3834_v44 = vor.u32 %v4960_v36, %v3833_v35  ;;  %v3817_v47 = vld [vmem:[#allocation2 + $0x420] sm:$0xf] }
  0x4b   :  { %1218 = vmatpush.bf16.msrb.mxu2 %v3518_v56  ;;  %1160 = vmatmul.bf16.vlgmr.msra.gmra.mxu1 %v5568_v25  ;;  %v3598_v38 = vor.u32 %v4898_v30, %v3595_v31  ;;  %v3323_v39 = vld [vmem:[#allocation2 + $0x50] sm:$0xf0]  ;;  %v4862_v40 = vld [vmem:[#allocation2 + $0x144] sm:$0xf]  ;;  %v4956_v48 = vld [vmem:[#allocation2 + $0x42c] sm:$0xf0] }
  0x4c   :  { %1231 = vmatpush.bf16.msrb.mxu3 %v3646_v60  ;;  %v3451_v41 = vld [vmem:[#allocation2 + $0x150] sm:$0xf0]  ;;  %v4894_v42 = vld [vmem:[#allocation2 + $0x244] sm:$0xf]  ;;  %v3326_v45 = vor.u32 %v4830_v37, %v3323_v39  ;;  %v3818_v57 = vor.u32 %v4956_v48, %v3817_v47  ;;  %v3801_v58 = vld [vmem:[#allocation2 + $0x400] sm:$0xf] }
  0x4d   :  { %1193 = vmatpush.bf16.msrb.mxu0 %v3882_v2  ;;  %v3579_v43 = vld [vmem:[#allocation2 + $0x250] sm:$0xf0]  ;;  %v3454_v46 = vor.u32 %v4862_v40, %v3451_v41  ;;  %v4826_v49 = vld [vmem:[#allocation2 + $0x24] sm:$0xf]  ;;  %v4952_v59 = vld [vmem:[#allocation2 + $0x40c] sm:$0xf0] }
  0x4e   :  { %1206 = vmatpush.bf16.msrb.mxu1 %v3374_v5  ;;  %v3582_v50 = vor.u32 %v4894_v42, %v3579_v43  ;;  %v3307_v51 = vld [vmem:[#allocation2 + $0x30] sm:$0xf0]  ;;  %v4858_v52 = vld [vmem:[#allocation2 + $0x124] sm:$0xf]  ;;  %v3802_v8 = vor.u32 %v4952_v59, %v3801_v58  ;;  %v4853_v12 = vld [vmem:[#allocation2 + $0xf4] sm:$0xf0] }
  0x4f   :  { %1219 = vmatpush.bf16.msrb.mxu2 %v3502_v6  ;;  %v3435_v53 = vld [vmem:[#allocation2 + $0x130] sm:$0xf0]  ;;  %v4890_v55 = vld [vmem:[#allocation2 + $0x224] sm:$0xf]  ;;  %v3310_v60 = vor.u32 %v4826_v49, %v3307_v51  ;;  %v3537_v16 = vld [vmem:[#allocation2 + $0x1e8] sm:$0xf] }
  0x50   :  { %1232 = vmatpush.bf16.msrb.mxu3 %v3630_v11  ;;  %v3563_v56 = vld [vmem:[#allocation2 + $0x230] sm:$0xf0]  ;;  %v3438_v61 = vor.u32 %v4858_v52, %v3435_v53  ;;  %v4822_v62 = vld [vmem:[#allocation2 + $0x4] sm:$0xf]  ;;  %v3409_v11 = vld [vmem:[#allocation2 + $0xe8] sm:$0xf] }
  0x51   :  { %1194 = vmatpush.bf16.msrb.mxu0 %v3866_v18  ;;  %v3291_v63 = vld [vmem:[#allocation2 + $0x10] sm:$0xf0]  ;;  %v4854_v0 = vld [vmem:[#allocation2 + $0x104] sm:$0xf]  ;;  %v3566_v1 = vor.u32 %v4890_v55, %v3563_v56  ;;  %v4885_v17 = vld [vmem:[#allocation2 + $0x1f4] sm:$0xf0]  ;;  %v3410_v22 = vor.u32 %v4853_v12, %v3409_v11 }
  0x52   :  { %1207 = vmatpush.bf16.msrb.mxu1 %v3358_v20  ;;  %v3419_v2 = vld [vmem:[#allocation2 + $0x110] sm:$0xf0]  ;;  %v4886_v3 = vld [vmem:[#allocation2 + $0x204] sm:$0xf]  ;;  %v3294_v13 = vor.u32 %v4822_v62, %v3291_v63  ;;  %v3538_v27 = vor.u32 %v4885_v17, %v3537_v16  ;;  %v3393_v30 = vld [vmem:[#allocation2 + $0xc8] sm:$0xf] }
  0x53   :  { %1220 = vmatpush.bf16.msrb.mxu2 %v3486_v21  ;;  %v3547_v4 = vld [vmem:[#allocation2 + $0x210] sm:$0xf0]  ;;  %v4946_v5 = vld [vmem:[#allocation2 + $0x3e4] sm:$0xf]  ;;  %v3422_v14 = vor.u32 %v4854_v0, %v3419_v2  ;;  %v4849_v31 = vld [vmem:[#allocation2 + $0xd4] sm:$0xf0] }
  0x54   :  { %1233 = vmatpush.bf16.msrb.mxu3 %v3614_v26  ;;  %v3787_v6 = vld [vmem:[#allocation2 + $0x3f0] sm:$0xf0]  ;;  %v4978_v7 = vld [vmem:[#allocation2 + $0x4e4] sm:$0xf]  ;;  %v3550_v19 = vor.u32 %v4886_v3, %v3547_v4  ;;  %v3394_v36 = vor.u32 %v4849_v31, %v3393_v30  ;;  %v3377_v42 = vld [vmem:[#allocation2 + $0xa8] sm:$0xf] }
  0x55   :  { %1195 = vmatpush.bf16.msrb.mxu0 %v3850_v32  ;;  %v3915_v10 = vld [vmem:[#allocation2 + $0x4f0] sm:$0xf0]  ;;  %v163_v18 = vld [vmem:[%s5797_s28 + $0x20] sm:$0xff]  ;;  %v3790_v20 = vor.u32 %v4946_v5, %v3787_v6  ;;  %v3521_v32 = vld [vmem:[#allocation2 + $0x1c8] sm:$0xf] }
  0x56   :  { %1208 = vmatpush.bf16.msrb.mxu1 %v3342_v33  ;;  %v3918_v21 = vor.u32 %v4978_v7, %v3915_v10  ;;  %v4942_v23 = vld [vmem:[#allocation2 + $0x3c4] sm:$0xf]  ;;  %v3771_v24 = vld [vmem:[#allocation2 + $0x3d0] sm:$0xf0]  ;;  %v5574_v28 = vpack.c.bf16 %v163_v18, %v163_v18  ;;  %v4881_v33 = vld [vmem:[#allocation2 + $0x1d4] sm:$0xf0] }
  0x57   :  { %1221 = vmatpush.bf16.msrb.mxu2 %v3470_v34  ;;  %v4974_v26 = vld [vmem:[#allocation2 + $0x4c4] sm:$0xf]  ;;  %v3899_v29 = vld [vmem:[#allocation2 + $0x4d0] sm:$0xf0]  ;;  %v3774_v34 = vor.u32 %v4942_v23, %v3771_v24  ;;  %v3522_v40 = vor.u32 %v4881_v33, %v3521_v32  ;;  %v4845_v43 = vld [vmem:[#allocation2 + $0xb4] sm:$0xf0] }
  0x58   :  { %1234 = vmatpush.bf16.msrb.mxu3 %v3598_v38  ;;  %v3902_v35 = vor.u32 %v4974_v26, %v3899_v29  ;;  %v4938_v37 = vld [vmem:[#allocation2 + $0x3a4] sm:$0xf]  ;;  %v3755_v38 = vld [vmem:[#allocation2 + $0x3b0] sm:$0xf0]  ;;  %v3378_v48 = vor.u32 %v4845_v43, %v3377_v42  ;;  %v3361_v55 = vld [vmem:[#allocation2 + $0x88] sm:$0xf] }
  0x59   :  { %1196 = vmatpush.bf16.msrb.mxu0 %v3834_v44  ;;  %v4970_v39 = vld [vmem:[#allocation2 + $0x4a4] sm:$0xf]  ;;  %v3883_v41 = vld [vmem:[#allocation2 + $0x4b0] sm:$0xf0]  ;;  %v3505_v44 = vld [vmem:[#allocation2 + $0x1a8] sm:$0xf] }
  0x5a   :  { %1209 = vmatpush.bf16.msrb.mxu1 %v3326_v45  ;;  %v4877_v45 = vld [vmem:[#allocation2 + $0x1b4] sm:$0xf0]  ;;  %v3886_v47 = vor.u32 %v4970_v39, %v3883_v41  ;;  %v4934_v49 = vld [vmem:[#allocation2 + $0x384] sm:$0xf]  ;;  %v3867_v53 = vld [vmem:[#allocation2 + $0x490] sm:$0xf0] }
  0x5b   :  { %1222 = vmatpush.bf16.msrb.mxu2 %v3454_v46  ;;  %v3758_v46 = vor.u32 %v4938_v37, %v3755_v38  ;;  %v4966_v51 = vld [vmem:[#allocation2 + $0x484] sm:$0xf]  ;;  %v3506_v52 = vor.u32 %v4877_v45, %v3505_v44  ;;  %v4841_v56 = vld [vmem:[#allocation2 + $0x94] sm:$0xf0]  ;;  %v3723_v63 = vld [vmem:[#allocation2 + $0x370] sm:$0xf0] }
  0x5c   :  { %1235 = vmatpush.bf16.msrb.mxu3 %v3582_v50  ;;  %v3739_v50 = vld [vmem:[#allocation2 + $0x390] sm:$0xf0]  ;;  %v4873_v58 = vld [vmem:[#allocation2 + $0x194] sm:$0xf0]  ;;  %v4930_v62 = vld [vmem:[#allocation2 + $0x364] sm:$0xf] }
  0x5d   :  { %1197 = vmatpush.bf16.msrb.mxu0 %v3818_v57  ;;  %v3489_v57 = vld [vmem:[#allocation2 + $0x188] sm:$0xf]  ;;  %v3742_v59 = vor.u32 %v4934_v49, %v3739_v50  ;;  %v4962_v0 = vld [vmem:[#allocation2 + $0x464] sm:$0xf]  ;;  %v3851_v2 = vld [vmem:[#allocation2 + $0x470] sm:$0xf0]  ;;  %v3726_v7 = vor.u32 %v4930_v62, %v3723_v63 }
  0x5e   :  { %1210 = vmatpush.bf16.msrb.mxu1 %v3310_v60  ;;  %v3870_v60 = vor.u32 %v4966_v51, %v3867_v53  ;;  %v3345_v3 = vld [vmem:[#allocation2 + $0x68] sm:$0xf]  ;;  %v4837_v4 = vld [vmem:[#allocation2 + $0x74] sm:$0xf0]  ;;  %v4926_v11 = vld [vmem:[#allocation2 + $0x344] sm:$0xf] }
  0x5f   :  { %1223 = vmatpush.bf16.msrb.mxu2 %v3438_v61  ;;  %v3362_v61 = vor.u32 %v4841_v56, %v3361_v55  ;;  %v3473_v5 = vld [vmem:[#allocation2 + $0x168] sm:$0xf]  ;;  %v4869_v6 = vld [vmem:[#allocation2 + $0x174] sm:$0xf0]  ;;  %v3346_v10 = vor.u32 %v4837_v4, %v3345_v3  ;;  %v3707_v12 = vld [vmem:[#allocation2 + $0x350] sm:$0xf0] }
  0x60   :  { %1236 = vmatpush.bf16.msrb.mxu3 %v3566_v1  ;;  %v3490_v1 = vor.u32 %v4873_v58, %v3489_v57  ;;  %v3835_v16 = vld [vmem:[#allocation2 + $0x450] sm:$0xf0]  ;;  %v3329_v17 = vld [vmem:[#allocation2 + $0x48] sm:$0xf]  ;;  %v4833_v18 = vld [vmem:[#allocation2 + $0x54] sm:$0xf0] }
  0x61   :  { %1198 = vmatpush.bf16.msrb.mxu0 %v3802_v8  ;;  %v3854_v8 = vor.u32 %v4962_v0, %v3851_v2  ;;  %v3691_v23 = vld [vmem:[#allocation2 + $0x330] sm:$0xf0]  ;;  %v3330_v26 = vor.u32 %v4833_v18, %v3329_v17  ;;  %v3313_v30 = vld [vmem:[#allocation2 + $0x28] sm:$0xf]  ;;  %v4829_v32 = vld [vmem:[#allocation2 + $0x34] sm:$0xf0] }
  0x62   :  { %1211 = vmatpush.bf16.msrb.mxu1 %v3294_v13  ;;  %v4958_v13 = vld [vmem:[#allocation2 + $0x444] sm:$0xf]  ;;  %v3819_v29 = vld [vmem:[#allocation2 + $0x430] sm:$0xf0]  ;;  %v3441_v33 = vld [vmem:[#allocation2 + $0x128] sm:$0xf]  ;;  %v3314_v39 = vor.u32 %v4829_v32, %v3313_v30 }
  0x63   :  { %1224 = vmatpush.bf16.msrb.mxu2 %v3422_v14  ;;  %v3474_v14 = vor.u32 %v4869_v6, %v3473_v5  ;;  %v3838_v24 = vor.u32 %v4958_v13, %v3835_v16  ;;  %v3675_v37 = vld [vmem:[#allocation2 + $0x310] sm:$0xf0]  ;;  %v3297_v42 = vld [vmem:[#allocation2 + $0x8] sm:$0xf]  ;;  %v4825_v44 = vld [vmem:[#allocation2 + $0x14] sm:$0xf0] }
  0x64   :  { %1237 = vmatpush.bf16.msrb.mxu3 %v3550_v19  ;;  %1199 = vmatmul.bf16.vlgmr.msrb.gmra.mxu0 %v5574_v28  ;;  %v3457_v19 = vld [vmem:[#allocation2 + $0x148] sm:$0xf]  ;;  %v3803_v41 = vld [vmem:[#allocation2 + $0x410] sm:$0xf0]  ;;  %v4949_v51 = vld [vmem:[#allocation2 + $0x3f4] sm:$0xf0]  ;;  %v3298_v56 = vor.u32 %v4825_v44, %v3297_v42 }
  0x65   :  { %1243 = vmatpush.bf16.msra.mxu0 %v3790_v20  ;;  %1212 = vmatmul.bf16.vlgmr.msrb.gmra.mxu1 %v5550_v54  ;;  %v4865_v20 = vld [vmem:[#allocation2 + $0x154] sm:$0xf0]  ;;  %v3425_v45 = vld [vmem:[#allocation2 + $0x108] sm:$0xf]  ;;  %v4851_v57 = vld [vmem:[#allocation2 + $0xec] sm:$0xf] }
  0x66   :  { %1256 = vmatpush.bf16.msra.mxu1 %v3918_v21  ;;  %1225 = vmatmul.bf16.vlgmr.msrb.gmra.mxu2 %v5568_v25  ;;  %v3710_v21 = vor.u32 %v4926_v11, %v3707_v12  ;;  %v3458_v31 = vor.u32 %v4865_v20, %v3457_v19  ;;  %v3793_v49 = vld [vmem:[#allocation2 + $0x3e8] sm:$0xf]  ;;  %v4981_v53 = vld [vmem:[#allocation2 + $0x4f4] sm:$0xf0]  ;;  %v3411_v58 = vld [vmem:[#allocation2 + $0xf8] sm:$0xf0] }
  0x67   :  { %1269 = vmatpush.bf16.msra.mxu2 %v3410_v22  ;;  %1238 = vmatmul.bf16.vlgmr.msrb.gmra.mxu3 %v5556_v9  ;;  %v4922_v22 = vld [vmem:[#allocation2 + $0x324] sm:$0xf]  ;;  %v3649_v63 = vld [vmem:[#allocation2 + $0x2c8] sm:$0xf]  ;;  %v4913_v0 = vld [vmem:[#allocation2 + $0x2d4] sm:$0xf0]  ;;  %v3414_v2 = vor.u32 %v4851_v57, %v3411_v58 }
  0x68   :  { %1282 = vmatpush.bf16.msra.mxu3 %v3538_v27  ;;  %v4954_v27 = vld [vmem:[#allocation2 + $0x424] sm:$0xf]  ;;  %v4945_v3 = vld [vmem:[#allocation2 + $0x3d4] sm:$0xf0]  ;;  %v3905_v4 = vld [vmem:[#allocation2 + $0x4c8] sm:$0xf] }
  0x69   :  { %1244 = vmatpush.bf16.msra.mxu0 %v3774_v34  ;;  %v4861_v34 = vld [vmem:[#allocation2 + $0x134] sm:$0xf0]  ;;  %v3822_v38 = vor.u32 %v4954_v27, %v3819_v29  ;;  %v4847_v6 = vld [vmem:[#allocation2 + $0xcc] sm:$0xf]  ;;  %v3633_v12 = vld [vmem:[#allocation2 + $0x2a8] sm:$0xf] }
  0x6a   :  { %1257 = vmatpush.bf16.msra.mxu1 %v3902_v35  ;;  %v3694_v35 = vor.u32 %v4922_v22, %v3691_v23  ;;  %v3442_v43 = vor.u32 %v4861_v34, %v3441_v33  ;;  %v4977_v5 = vld [vmem:[#allocation2 + $0x4d4] sm:$0xf0]  ;;  %v3889_v18 = vld [vmem:[#allocation2 + $0x4a8] sm:$0xf]  ;;  %v4843_v20 = vld [vmem:[#allocation2 + $0xac] sm:$0xf] }
  0x6b   :  { %1270 = vmatpush.bf16.msra.mxu2 %v3394_v36  ;;  %v4918_v36 = vld [vmem:[#allocation2 + $0x304] sm:$0xf]  ;;  %v3906_v11 = vor.u32 %v4977_v5, %v3905_v4  ;;  %v4909_v13 = vld [vmem:[#allocation2 + $0x2b4] sm:$0xf0]  ;;  %v3745_v29 = vld [vmem:[#allocation2 + $0x388] sm:$0xf] }
  0x6c   :  { %1283 = vmatpush.bf16.msra.mxu3 %v3522_v40  ;;  %v4950_v40 = vld [vmem:[#allocation2 + $0x404] sm:$0xf]  ;;  %v3678_v50 = vor.u32 %v4918_v36, %v3675_v37  ;;  %v4941_v17 = vld [vmem:[#allocation2 + $0x3b4] sm:$0xf0]  ;;  %v3634_v22 = vor.u32 %v4909_v13, %v3633_v12  ;;  %v3873_v32 = vld [vmem:[#allocation2 + $0x488] sm:$0xf] }
  0x6d   :  { %1245 = vmatpush.bf16.msra.mxu0 %v3758_v46  ;;  %v4857_v46 = vld [vmem:[#allocation2 + $0x114] sm:$0xf0]  ;;  %v3806_v55 = vor.u32 %v4950_v40, %v3803_v41  ;;  %v4839_v34 = vld [vmem:[#allocation2 + $0x8c] sm:$0xf]  ;;  %v3729_v41 = vld [vmem:[#allocation2 + $0x368] sm:$0xf] }
  0x6e   :  { %1258 = vmatpush.bf16.msra.mxu1 %v3886_v47  ;;  %v3665_v47 = vld [vmem:[#allocation2 + $0x2e8] sm:$0xf]  ;;  %v4973_v19 = vld [vmem:[#allocation2 + $0x4b4] sm:$0xf0] }
  0x6f   :  { %1271 = vmatpush.bf16.msra.mxu2 %v3378_v48  ;;  %v4917_v48 = vld [vmem:[#allocation2 + $0x2f4] sm:$0xf0]  ;;  %v3857_v44 = vld [vmem:[#allocation2 + $0x468] sm:$0xf] }
  0x70   :  { %1284 = vmatpush.bf16.msra.mxu3 %v3506_v52  ;;  %v3921_v52 = vld [vmem:[#allocation2 + $0x4e8] sm:$0xf]  ;;  %v4905_v27 = vld [vmem:[#allocation2 + $0x294] sm:$0xf0] }
  0x71   :  { %1246 = vmatpush.bf16.msra.mxu0 %v3742_v59  ;;  %v3426_v59 = vor.u32 %v4857_v46, %v3425_v45  ;;  %v3922_v62 = vor.u32 %v4981_v53, %v3921_v52  ;;  %v4969_v33 = vld [vmem:[#allocation2 + $0x494] sm:$0xf0]  ;;  %v4835_v46 = vld [vmem:[#allocation2 + $0x6c] sm:$0xf]  ;;  %v3713_v53 = vld [vmem:[#allocation2 + $0x348] sm:$0xf] }
  0x72   :  { %1259 = vmatpush.bf16.msra.mxu1 %v3870_v60  ;;  %v3666_v60 = vor.u32 %v4917_v48, %v3665_v47  ;;  %v4901_v40 = vld [vmem:[#allocation2 + $0x274] sm:$0xf0]  ;;  %v3347_v47 = vld [vmem:[#allocation2 + $0x78] sm:$0xf0]  ;;  %v3841_v57 = vld [vmem:[#allocation2 + $0x448] sm:$0xf] }
  0x73   :  { %1272 = vmatpush.bf16.msra.mxu2 %v3362_v61  ;;  %v3794_v61 = vor.u32 %v4949_v51, %v3793_v49  ;;  %v4965_v45 = vld [vmem:[#allocation2 + $0x474] sm:$0xf0]  ;;  %v3585_v51 = vld [vmem:[#allocation2 + $0x248] sm:$0xf] }
  0x74   :  { %1285 = vmatpush.bf16.msra.mxu3 %v3490_v1  ;;  %v3777_v1 = vld [vmem:[#allocation2 + $0x3c8] sm:$0xf]  ;;  %v4897_v52 = vld [vmem:[#allocation2 + $0x254] sm:$0xf0] }
  0x75   :  { %1247 = vmatpush.bf16.msra.mxu0 %v3726_v7  ;;  %v3395_v7 = vld [vmem:[#allocation2 + $0xd8] sm:$0xf0]  ;;  %v4961_v58 = vld [vmem:[#allocation2 + $0x454] sm:$0xf0]  ;;  %v3825_v5 = vld [vmem:[#allocation2 + $0x428] sm:$0xf] }
  0x76   :  { %1260 = vmatpush.bf16.msra.mxu1 %v3854_v8  ;;  %v3650_v8 = vor.u32 %v4913_v0, %v3649_v63  ;;  %v3398_v16 = vor.u32 %v4847_v6, %v3395_v7  ;;  %v3842_v63 = vor.u32 %v4961_v58, %v3841_v57  ;;  %v3569_v0 = vld [vmem:[#allocation2 + $0x228] sm:$0xf]  ;;  %v4925_v4 = vld [vmem:[#allocation2 + $0x334] sm:$0xf0]  ;;  %v4827_v7 = vld [vmem:[#allocation2 + $0x2c] sm:$0xf] }
  0x77   :  { %1273 = vmatpush.bf16.msra.mxu2 %v3346_v10  ;;  %v3778_v10 = vor.u32 %v4945_v3, %v3777_v1  ;;  %v4893_v1 = vld [vmem:[#allocation2 + $0x234] sm:$0xf0]  ;;  %v3635_v57 = vld [vmem:[#allocation2 + $0x2b8] sm:$0xf0]  ;;  %v4939_v58 = vld [vmem:[#allocation2 + $0x3ac] sm:$0xf] }
  0x78   :  { %1286 = vmatpush.bf16.msra.mxu3 %v3474_v14  ;;  %v3761_v14 = vld [vmem:[#allocation2 + $0x3a8] sm:$0xf]  ;;  %v4957_v6 = vld [vmem:[#allocation2 + $0x434] sm:$0xf0] }
  0x79   :  { %1248 = vmatpush.bf16.msra.mxu0 %v3710_v21  ;;  %v3379_v21 = vld [vmem:[#allocation2 + $0xb8] sm:$0xf0]  ;;  %v3762_v23 = vor.u32 %v4941_v17, %v3761_v14  ;;  %v4889_v12 = vld [vmem:[#allocation2 + $0x214] sm:$0xf0]  ;;  %v3826_v14 = vor.u32 %v4957_v6, %v3825_v5  ;;  %v4935_v6 = vld [vmem:[#allocation2 + $0x38c] sm:$0xf] }
  0x7a   :  { %1261 = vmatpush.bf16.msra.mxu1 %v3838_v24  ;;  %v3890_v24 = vor.u32 %v4973_v19, %v3889_v18  ;;  %v3382_v30 = vor.u32 %v4843_v20, %v3379_v21  ;;  %v4921_v17 = vld [vmem:[#allocation2 + $0x314] sm:$0xf0]  ;;  %v3809_v18 = vld [vmem:[#allocation2 + $0x408] sm:$0xf]  ;;  %v4823_v21 = vld [vmem:[#allocation2 + $0xc] sm:$0xf] }
  0x7b   :  { %1274 = vmatpush.bf16.msra.mxu2 %v3330_v26  ;;  %v3617_v26 = vld [vmem:[#allocation2 + $0x288] sm:$0xf]  ;;  %v4953_v20 = vld [vmem:[#allocation2 + $0x414] sm:$0xf0]  ;;  %v3619_v5 = vld [vmem:[#allocation2 + $0x298] sm:$0xf0] }
  0x7c   :  { %1287 = vmatpush.bf16.msra.mxu3 %v3458_v31  ;;  %v4937_v31 = vld [vmem:[#allocation2 + $0x394] sm:$0xf0]  ;;  %v3618_v36 = vor.u32 %v4905_v27, %v3617_v26  ;;  %v4915_v26 = vld [vmem:[#allocation2 + $0x2ec] sm:$0xf] }
  0x7d   :  { %1249 = vmatpush.bf16.msra.mxu0 %v3694_v35  ;;  %v3363_v35 = vld [vmem:[#allocation2 + $0x98] sm:$0xf0]  ;;  %v3746_v37 = vor.u32 %v4937_v31, %v3745_v29 }
  0x7e   :  { %1262 = vmatpush.bf16.msra.mxu1 %v3822_v38  ;;  %v3874_v38 = vor.u32 %v4969_v33, %v3873_v32  ;;  %v3366_v42 = vor.u32 %v4839_v34, %v3363_v35  ;;  %v3667_v29 = vld [vmem:[#allocation2 + $0x2f8] sm:$0xf0]  ;;  %v3810_v33 = vor.u32 %v4953_v20, %v3809_v18  ;;  %v4979_v34 = vld [vmem:[#allocation2 + $0x4ec] sm:$0xf] }
  0x7f   :  { %1275 = vmatpush.bf16.msra.mxu2 %v3314_v39  ;;  %v3601_v39 = vld [vmem:[#allocation2 + $0x268] sm:$0xf]  ;;  %v3795_v31 = vld [vmem:[#allocation2 + $0x3f8] sm:$0xf0] }
  0x80   :  { %1288 = vmatpush.bf16.msra.mxu3 %v3442_v43  ;;  %v4933_v43 = vld [vmem:[#allocation2 + $0x374] sm:$0xf0]  ;;  %v3602_v48 = vor.u32 %v4901_v40, %v3601_v39  ;;  %v3923_v35 = vld [vmem:[#allocation2 + $0x4f8] sm:$0xf0]  ;;  %v4879_v40 = vld [vmem:[#allocation2 + $0x1cc] sm:$0xf] }
  0x81   :  { %1250 = vmatpush.bf16.msra.mxu0 %v3678_v50  ;;  %v3730_v49 = vor.u32 %v4933_v43, %v3729_v41  ;;  %v3858_v50 = vor.u32 %v4965_v45, %v3857_v44  ;;  %v3523_v41 = vld [vmem:[#allocation2 + $0x1d8] sm:$0xf0]  ;;  %v3926_v43 = vor.u32 %v4979_v34, %v3923_v35  ;;  %v4943_v45 = vld [vmem:[#allocation2 + $0x3cc] sm:$0xf] }
  0x82   :  { %1263 = vmatpush.bf16.msra.mxu1 %v3806_v55  ;;  %v3350_v55 = vor.u32 %v4835_v46, %v3347_v47  ;;  %v3651_v44 = vld [vmem:[#allocation2 + $0x2d8] sm:$0xf0]  ;;  %v4975_v47 = vld [vmem:[#allocation2 + $0x4cc] sm:$0xf] }
  0x83   :  { %1276 = vmatpush.bf16.msra.mxu2 %v3298_v56  ;;  %v4929_v56 = vld [vmem:[#allocation2 + $0x354] sm:$0xf0]  ;;  %v3779_v46 = vld [vmem:[#allocation2 + $0x3d8] sm:$0xf0]  ;;  %v4959_v35 = vld [vmem:[#allocation2 + $0x44c] sm:$0xf] }
  0x84   :  { %1289 = vmatpush.bf16.msra.mxu3 %v3426_v59  ;;  %1251 = vmatmul.bf16.vlgmr.msra.gmra.mxu0 %v5561_v15  ;;  %v4831_v59 = vld [vmem:[#allocation2 + $0x4c] sm:$0xf]  ;;  %v3603_v18 = vld [vmem:[#allocation2 + $0x278] sm:$0xf0] }
  0x85   :  { %1295 = vmatpush.bf16.msrb.mxu0 %v3666_v60  ;;  %1264 = vmatmul.bf16.vlgmr.msra.gmra.mxu1 %v5574_v28  ;;  %v3331_v60 = vld [vmem:[#allocation2 + $0x58] sm:$0xf0] }
  0x86   :  { %1308 = vmatpush.bf16.msrb.mxu1 %v3794_v61  ;;  %1277 = vmatmul.bf16.vlgmr.msra.gmra.mxu2 %v5550_v54  ;;  %v3586_v61 = vor.u32 %v4897_v52, %v3585_v51  ;;  %v3334_v3 = vor.u32 %v4831_v59, %v3331_v60  ;;  %v3782_v51 = vor.u32 %v4943_v45, %v3779_v46  ;;  %v4875_v52 = vld [vmem:[#allocation2 + $0x1ac] sm:$0xf]  ;;  %v3763_v59 = vld [vmem:[#allocation2 + $0x3b8] sm:$0xf0] }
  0x87   :  { %1321 = vmatpush.bf16.msrb.mxu2 %v3922_v62  ;;  %1290 = vmatmul.bf16.vlgmr.msra.gmra.mxu3 %v5568_v25  ;;  %v3714_v62 = vor.u32 %v4929_v56, %v3713_v53  ;;  %v3507_v53 = vld [vmem:[#allocation2 + $0x1b8] sm:$0xf0]  ;;  %v4971_v60 = vld [vmem:[#allocation2 + $0x4ac] sm:$0xf] }
  0x88   :  { %1334 = vmatpush.bf16.msrb.mxu3 %v3414_v2  ;;  %v3697_v2 = vld [vmem:[#allocation2 + $0x328] sm:$0xf]  ;;  %v3731_v20 = vld [vmem:[#allocation2 + $0x378] sm:$0xf0]  ;;  %v4923_v45 = vld [vmem:[#allocation2 + $0x32c] sm:$0xf] }
  0x89   :  { %1296 = vmatpush.bf16.msrb.mxu0 %v3650_v8  ;;  %v3315_v8 = vld [vmem:[#allocation2 + $0x38] sm:$0xf0]  ;;  %v3698_v13 = vor.u32 %v4925_v4, %v3697_v2 }
  0x8a   :  { %1309 = vmatpush.bf16.msrb.mxu1 %v3778_v10  ;;  %v3570_v10 = vor.u32 %v4893_v1, %v3569_v0  ;;  %v3318_v19 = vor.u32 %v4827_v7, %v3315_v8  ;;  %v3766_v0 = vor.u32 %v4939_v58, %v3763_v59  ;;  %v4871_v1 = vld [vmem:[#allocation2 + $0x18c] sm:$0xf]  ;;  %v3491_v2 = vld [vmem:[#allocation2 + $0x198] sm:$0xf0] }
  0x8b   :  { %1322 = vmatpush.bf16.msrb.mxu2 %v3906_v11  ;;  %v3553_v11 = vld [vmem:[#allocation2 + $0x208] sm:$0xf]  ;;  %v3747_v7 = vld [vmem:[#allocation2 + $0x398] sm:$0xf0]  ;;  %v4967_v8 = vld [vmem:[#allocation2 + $0x48c] sm:$0xf] }
  0x8c   :  { %1335 = vmatpush.bf16.msrb.mxu3 %v3398_v16  ;;  %v3681_v16 = vld [vmem:[#allocation2 + $0x308] sm:$0xf]  ;;  %v3554_v27 = vor.u32 %v4889_v12, %v3553_v11  ;;  %v3494_v11 = vor.u32 %v4871_v1, %v3491_v2  ;;  %v3715_v34 = vld [vmem:[#allocation2 + $0x358] sm:$0xf0]  ;;  %v4919_v58 = vld [vmem:[#allocation2 + $0x30c] sm:$0xf] }
  0x8d   :  { %1297 = vmatpush.bf16.msrb.mxu0 %v3634_v22  ;;  %v3299_v22 = vld [vmem:[#allocation2 + $0x18] sm:$0xf0]  ;;  %v3682_v32 = vor.u32 %v4921_v17, %v3681_v16  ;;  %v4899_v16 = vld [vmem:[#allocation2 + $0x26c] sm:$0xf]  ;;  %v4169_v1 = vld [vmem:[#allocation7 + $0x1e0] sm:$0xf] }
  0x8e   :  { %1310 = vmatpush.bf16.msrb.mxu1 %v3762_v23  ;;  %v4883_v23 = vld [vmem:[#allocation2 + $0x1ec] sm:$0xf]  ;;  %v3699_v46 = vld [vmem:[#allocation2 + $0x338] sm:$0xf0]  ;;  %v5044_v2 = vld [vmem:[#allocation7 + $0x1ec] sm:$0xf0] }
  0x8f   :  { %1323 = vmatpush.bf16.msrb.mxu2 %v3890_v24  ;;  %v3539_v24 = vld [vmem:[#allocation2 + $0x1f8] sm:$0xf0] }
  0x90   :  { %1336 = vmatpush.bf16.msrb.mxu3 %v3382_v30  ;;  %v4947_v30 = vld [vmem:[#allocation2 + $0x3ec] sm:$0xf]  ;;  %v3683_v59 = vld [vmem:[#allocation2 + $0x318] sm:$0xf0] }
  0x91   :  { %1298 = vmatpush.bf16.msrb.mxu0 %v3618_v36  ;;  %v3302_v36 = vor.u32 %v4823_v21, %v3299_v22  ;;  %v3798_v39 = vor.u32 %v4947_v30, %v3795_v31  ;;  %v4963_v21 = vld [vmem:[#allocation2 + $0x46c] sm:$0xf]  ;;  %v3859_v22 = vld [vmem:[#allocation2 + $0x478] sm:$0xf0] }
  0x92   :  { %1311 = vmatpush.bf16.msrb.mxu1 %v3746_v37  ;;  %v3542_v37 = vor.u32 %v4883_v23, %v3539_v24  ;;  %v3606_v24 = vor.u32 %v4899_v16, %v3603_v18  ;;  %v4895_v30 = vld [vmem:[#allocation2 + $0x24c] sm:$0xf]  ;;  %v3862_v31 = vor.u32 %v4963_v21, %v3859_v22  ;;  %v5036_v18 = vld [vmem:[#allocation7 + $0x1ac] sm:$0xf0] }
  0x93   :  { %1324 = vmatpush.bf16.msrb.mxu2 %v3874_v38  ;;  %v3670_v38 = vor.u32 %v4915_v26, %v3667_v29  ;;  %v3459_v29 = vld [vmem:[#allocation2 + $0x158] sm:$0xf0]  ;;  %v5000_v21 = vld [vmem:[#allocation7 + $0x8c] sm:$0xf0] }
  0x94   :  { %1337 = vmatpush.bf16.msrb.mxu3 %v3366_v42  ;;  %v4911_v42 = vld [vmem:[#allocation2 + $0x2cc] sm:$0xf] }
  0x95   :  { %1299 = vmatpush.bf16.msrb.mxu0 %v3602_v48  ;;  %v3907_v48 = vld [vmem:[#allocation2 + $0x4d8] sm:$0xf0] }
  0x96   :  { %1312 = vmatpush.bf16.msrb.mxu1 %v3730_v49  ;;  %v3526_v49 = vor.u32 %v4879_v40, %v3523_v41  ;;  %v3910_v56 = vor.u32 %v4975_v47, %v3907_v48  ;;  %v4859_v40 = vld [vmem:[#allocation2 + $0x12c] sm:$0xf]  ;;  %v3443_v41 = vld [vmem:[#allocation2 + $0x138] sm:$0xf0] }
  0x97   :  { %1325 = vmatpush.bf16.msrb.mxu2 %v3858_v50  ;;  %v3654_v50 = vor.u32 %v4911_v42, %v3651_v44  ;;  %v4891_v42 = vld [vmem:[#allocation2 + $0x22c] sm:$0xf]  ;;  %v3571_v44 = vld [vmem:[#allocation2 + $0x238] sm:$0xf0] }
  0x98   :  { %1338 = vmatpush.bf16.msrb.mxu3 %v3350_v55  ;;  %v4907_v55 = vld [vmem:[#allocation2 + $0x2ac] sm:$0xf]  ;;  %v3827_v48 = vld [vmem:[#allocation2 + $0x438] sm:$0xf0] }
  0x99   :  { %1300 = vmatpush.bf16.msrb.mxu0 %v3586_v61  ;;  %v3891_v61 = vld [vmem:[#allocation2 + $0x4b8] sm:$0xf0]  ;;  %v4955_v47 = vld [vmem:[#allocation2 + $0x42c] sm:$0xf] }
  0x9a   :  { %1313 = vmatpush.bf16.msrb.mxu1 %v3714_v62  ;;  %v3510_v62 = vor.u32 %v4875_v52, %v3507_v53  ;;  %v3894_v4 = vor.u32 %v4971_v60, %v3891_v61  ;;  %v3702_v52 = vor.u32 %v4923_v45, %v3699_v46  ;;  %v3427_v53 = vld [vmem:[#allocation2 + $0x118] sm:$0xf0]  ;;  %v4951_v60 = vld [vmem:[#allocation2 + $0x40c] sm:$0xf] }
  0x9b   :  { %1326 = vmatpush.bf16.msrb.mxu2 %v3842_v63  ;;  %v3638_v63 = vor.u32 %v4907_v55, %v3635_v57  ;;  %v4887_v55 = vld [vmem:[#allocation2 + $0x20c] sm:$0xf]  ;;  %v3830_v57 = vor.u32 %v4955_v47, %v3827_v48  ;;  %v3811_v61 = vld [vmem:[#allocation2 + $0x418] sm:$0xf0]  ;;  %v4073_v47 = vld [vmem:[#allocation7 + $0x120] sm:$0xf] }
  0x9c   :  { %1339 = vmatpush.bf16.msrb.mxu3 %v3334_v3  ;;  %v4903_v3 = vld [vmem:[#allocation2 + $0x28c] sm:$0xf]  ;;  %v5020_v48 = vld [vmem:[#allocation7 + $0x12c] sm:$0xf0] }
  0x9d   :  { %1301 = vmatpush.bf16.msrb.mxu0 %v3570_v10  ;;  %v3875_v10 = vld [vmem:[#allocation2 + $0x498] sm:$0xf0]  ;;  %v3622_v12 = vor.u32 %v4903_v3, %v3619_v5  ;;  %v3814_v5 = vor.u32 %v4951_v60, %v3811_v61  ;;  %v4043_v60 = vld [vmem:[#allocation7 + $0xf0] sm:$0xf0]  ;;  %v4057_v61 = vld [vmem:[#allocation7 + $0x100] sm:$0xf] }
  0x9e   :  { %1314 = vmatpush.bf16.msrb.mxu1 %v3698_v13  ;;  %v4867_v13 = vld [vmem:[#allocation2 + $0x16c] sm:$0xf]  ;;  %v3878_v17 = vor.u32 %v4967_v8, %v3875_v10  ;;  %v5008_v8 = vld [vmem:[#allocation7 + $0xcc] sm:$0xf0]  ;;  %v4170_v10 = vor.u32 %v5044_v2, %v4169_v1  ;;  %v4171_v1 = vld [vmem:[#allocation7 + $0x1f0] sm:$0xf0] }
  0x9f   :  { %1327 = vmatpush.bf16.msrb.mxu2 %v3826_v14  ;;  %v3475_v14 = vld [vmem:[#allocation2 + $0x178] sm:$0xf0] }
  0xa0   :  { %1340 = vmatpush.bf16.msrb.mxu3 %v3318_v19  ;;  %v4931_v19 = vld [vmem:[#allocation2 + $0x36c] sm:$0xf]  ;;  %v3478_v23 = vor.u32 %v4867_v13, %v3475_v14  ;;  %v4009_v13 = vld [vmem:[#allocation7 + $0xa0] sm:$0xf]  ;;  %v5004_v14 = vld [vmem:[#allocation7 + $0xac] sm:$0xf0] }
  0xa1   :  { %1302 = vmatpush.bf16.msrb.mxu0 %v3554_v27  ;;  %v3734_v26 = vor.u32 %v4931_v19, %v3731_v20  ;;  %v4863_v27 = vld [vmem:[#allocation2 + $0x14c] sm:$0xf]  ;;  %v4010_v19 = vor.u32 %v5004_v14, %v4009_v13  ;;  %v3993_v20 = vld [vmem:[#allocation7 + $0x80] sm:$0xf]  ;;  %v5038_v14 = vld [vmem:[#allocation7 + $0x1c4] sm:$0xf] }
  0xa2   :  { %1315 = vmatpush.bf16.msrb.mxu1 %v3682_v32  ;;  %v3587_v32 = vld [vmem:[#allocation2 + $0x258] sm:$0xf0] }
  0xa3   :  { %1328 = vmatpush.bf16.msrb.mxu2 %v3810_v33  ;;  %v4927_v33 = vld [vmem:[#allocation2 + $0x34c] sm:$0xf] }
  0xa4   :  { %1341 = vmatpush.bf16.msrb.mxu3 %v3302_v36  ;;  %1303 = vmatmul.bf16.vlgmr.msrb.gmra.mxu0 %v5556_v9  ;;  %v3843_v36 = vld [vmem:[#allocation2 + $0x458] sm:$0xf0] }
  0xa5   :  { %1347 = vmatpush.bf16.msra.mxu0 %v3542_v37  ;;  %1316 = vmatmul.bf16.vlgmr.msrb.gmra.mxu1 %v5561_v15  ;;  %v3462_v37 = vor.u32 %v4863_v27, %v3459_v29  ;;  %v3977_v27 = vld [vmem:[#allocation7 + $0x60] sm:$0xf]  ;;  %v4996_v29 = vld [vmem:[#allocation7 + $0x6c] sm:$0xf0] }
  0xa6   :  { %1360 = vmatpush.bf16.msra.mxu1 %v3670_v38  ;;  %1329 = vmatmul.bf16.vlgmr.msrb.gmra.mxu2 %v5574_v28  ;;  %v3590_v38 = vor.u32 %v4895_v30, %v3587_v32  ;;  %v5028_v30 = vld [vmem:[#allocation7 + $0x16c] sm:$0xf0] }
  0xa7   :  { %1373 = vmatpush.bf16.msra.mxu2 %v3798_v39  ;;  %1342 = vmatmul.bf16.vlgmr.msrb.gmra.mxu3 %v5550_v54  ;;  %v3750_v54 = vor.u32 %v4935_v6, %v3747_v7  ;;  %v3718_v39 = vor.u32 %v4927_v33, %v3715_v34  ;;  %v4025_v7 = vld [vmem:[#allocation7 + $0xc0] sm:$0xf]  ;;  %v4992_v32 = vld [vmem:[#allocation7 + $0x4c] sm:$0xf0] }
  0xa8   :  { %1386 = vmatpush.bf16.msra.mxu3 %v3926_v43  ;;  %v3846_v43 = vor.u32 %v4959_v35, %v3843_v36  ;;  %v4089_v34 = vld [vmem:[#allocation7 + $0x140] sm:$0xf]  ;;  %v5024_v35 = vld [vmem:[#allocation7 + $0x14c] sm:$0xf0]  ;;  %v5592_v36 = vld [vmem:[#allocation5] sm:$0xf] }
  0xa9   :  { %1348 = vmatpush.bf16.msra.mxu0 %v3526_v49  ;;  %v3446_v49 = vor.u32 %v4859_v40, %v3443_v41  ;;  %v4988_v41 = vld [vmem:[#allocation7 + $0x2c] sm:$0xf0]  ;;  %v331_v45 = vperm.slane %v5592_v36, 0 }
  0xaa   :  { %1361 = vmatpush.bf16.msra.mxu1 %v3654_v50  ;;  %v4855_v50 = vld [vmem:[#allocation2 + $0x10c] sm:$0xf] }
  0xab   :  { %1374 = vmatpush.bf16.msra.mxu2 %v3782_v51  ;;  %v3574_v51 = vor.u32 %v4891_v42, %v3571_v44  ;;  %v4090_v42 = vor.u32 %v5024_v35, %v4089_v34  ;;  %v5076_v44 = vld [vmem:[#allocation7 + $0x2ec] sm:$0xf0] }
  0xac   :  { %1387 = vmatpush.bf16.msra.mxu3 %v3910_v56  ;;  %v3555_v56 = vld [vmem:[#allocation2 + $0x218] sm:$0xf0]  ;;  %v5060_v34 = vld [vmem:[#allocation7 + $0x26c] sm:$0xf0] }
  0xad   :  { %1349 = vmatpush.bf16.msra.mxu0 %v3510_v62  ;;  %v4041_v62 = vld [vmem:[#allocation7 + $0xe0] sm:$0xf]  ;;  %v3558_v3 = vor.u32 %v4887_v55, %v3555_v56  ;;  %v5010_v55 = vld [vmem:[#allocation7 + $0xe4] sm:$0xf]  ;;  %v4074_v56 = vor.u32 %v5020_v48, %v4073_v47  ;;  %v5056_v47 = vld [vmem:[#allocation7 + $0x24c] sm:$0xf0] }
  0xae   :  { %1362 = vmatpush.bf16.msra.mxu1 %v3638_v63  ;;  %v5012_v63 = vld [vmem:[#allocation7 + $0xec] sm:$0xf0] }
  0xaf   :  { %1375 = vmatpush.bf16.msra.mxu2 %v3766_v0  ;;  %v3430_v0 = vor.u32 %v4855_v50, %v3427_v53  ;;  %v4042_v6 = vor.u32 %v5012_v63, %v4041_v62  ;;  %v4984_v53 = vld [vmem:[#allocation7 + $0xc] sm:$0xf0] }
  0xb0   :  { %1388 = vmatpush.bf16.msra.mxu3 %v3894_v4  ;;  %v3686_v4 = vor.u32 %v4919_v58, %v3683_v59  ;;  %v5072_v58 = vld [vmem:[#allocation7 + $0x2cc] sm:$0xf0] }
  0xb1   :  { %1350 = vmatpush.bf16.msra.mxu0 %v3494_v11  ;;  %v4153_v11 = vld [vmem:[#allocation7 + $0x1c0] sm:$0xf]  ;;  %v5016_v62 = vld [vmem:[#allocation7 + $0x10c] sm:$0xf0] }
  0xb2   :  { %1363 = vmatpush.bf16.msra.mxu1 %v3622_v12  ;;  %v5040_v12 = vld [vmem:[#allocation7 + $0x1cc] sm:$0xf0] }
  0xb3   :  { %1376 = vmatpush.bf16.msra.mxu2 %v3750_v54  ;;  %v4026_v54 = vor.u32 %v5008_v8, %v4025_v7  ;;  %v4154_v16 = vor.u32 %v5040_v12, %v4153_v11  ;;  %v4027_v7 = vld [vmem:[#allocation7 + $0xd0] sm:$0xf0]  ;;  %v4265_v12 = vld [vmem:[#allocation7 + $0x2a0] sm:$0xf] }
  0xb4   :  { %1389 = vmatpush.bf16.msra.mxu3 %v3878_v17  ;;  %v4137_v17 = vld [vmem:[#allocation7 + $0x1a0] sm:$0xf] }
  0xb5   :  { %1351 = vmatpush.bf16.msra.mxu0 %v3478_v23  ;;  %v4138_v22 = vor.u32 %v5036_v18, %v4137_v17  ;;  %v4121_v23 = vld [vmem:[#allocation7 + $0x180] sm:$0xf] }
  0xb6   :  { %1364 = vmatpush.bf16.msra.mxu1 %v3606_v24 }
  0xb7   :  { %1377 = vmatpush.bf16.msra.mxu2 %v3734_v26  ;;  %v3994_v26 = vor.u32 %v5000_v21, %v3993_v20  ;;  %v4011_v21 = vld [vmem:[#allocation7 + $0xb0] sm:$0xf0] }
  0xb8   :  { %1390 = vmatpush.bf16.msra.mxu3 %v3862_v31  ;;  %v3978_v31 = vor.u32 %v4996_v29, %v3977_v27 }
  0xb9   :  { %1352 = vmatpush.bf16.msra.mxu0 %v3462_v37 }
  0xba   :  { %1365 = vmatpush.bf16.msra.mxu1 %v3590_v38 }
  0xbb   :  { %1378 = vmatpush.bf16.msra.mxu2 %v3718_v39  ;;  %v3945_v39 = vld [vmem:[#allocation7 + $0x20] sm:$0xf] }
  0xbc   :  { %1391 = vmatpush.bf16.msra.mxu3 %v3846_v43  ;;  %v4297_v43 = vld [vmem:[#allocation7 + $0x2e0] sm:$0xf] }
  0xbd   :  { %1353 = vmatpush.bf16.msra.mxu0 %v3446_v49  ;;  %v4298_v49 = vor.u32 %v5076_v44, %v4297_v43  ;;  %v5026_v44 = vld [vmem:[#allocation7 + $0x164] sm:$0xf] }
  0xbe   :  { %1366 = vmatpush.bf16.msra.mxu1 %v3574_v51  ;;  %v3946_v51 = vor.u32 %v4988_v41, %v3945_v39  ;;  %v3979_v41 = vld [vmem:[#allocation7 + $0x70] sm:$0xf0] }
  0xbf   :  { %1379 = vmatpush.bf16.msra.mxu2 %v3702_v52  ;;  %v3929_v52 = vld [vmem:[#allocation7] sm:$0xf] }
  0xc0   :  { %1392 = vmatpush.bf16.msra.mxu3 %v3830_v57  ;;  %v4281_v57 = vld [vmem:[#allocation7 + $0x2c0] sm:$0xf]  ;;  %v3930_v2 = vor.u32 %v4984_v53, %v3929_v52  ;;  %v3963_v53 = vld [vmem:[#allocation7 + $0x50] sm:$0xf0] }
  0xc1   :  { %1354 = vmatpush.bf16.msra.mxu0 %v3430_v0  ;;  %v4282_v63 = vor.u32 %v5072_v58, %v4281_v57  ;;  %v5042_v0 = vld [vmem:[#allocation7 + $0x1e4] sm:$0xf]  ;;  %v5052_v57 = vld [vmem:[#allocation7 + $0x22c] sm:$0xf0] }
  0xc2   :  { %1367 = vmatpush.bf16.msra.mxu1 %v3558_v3  ;;  %v4174_v11 = vor.u32 %v5042_v0, %v4171_v1  ;;  %v5022_v58 = vld [vmem:[#allocation7 + $0x144] sm:$0xf]  ;;  %v3947_v0 = vld [vmem:[#allocation7 + $0x30] sm:$0xf0] }
  0xc3   :  { %1380 = vmatpush.bf16.msra.mxu2 %v3686_v4  ;;  %v4046_v4 = vor.u32 %v5010_v55, %v4043_v60 }
  0xc4   :  { %1393 = vmatpush.bf16.msra.mxu3 %v3814_v5  ;;  %1355 = vmatmul.bf16.vlgmr.msra.gmra.mxu0 %v5568_v25  ;;  %v5032_v25 = vld [vmem:[#allocation7 + $0x18c] sm:$0xf0]  ;;  %v1148_v24 = vpop.f32.mrf.mxu0  ;;  %v5006_v5 = vld [vmem:[#allocation7 + $0xc4] sm:$0xf] }
  0xc5   :  { %2185 = vmatpush.bf16.msrb.mxu0 %v4042_v6  ;;  %1368 = vmatmul.bf16.vlgmr.msra.gmra.mxu1 %v5556_v9  ;;  %v4122_v9 = vor.u32 %v5032_v25, %v4121_v23  ;;  %v1149_v59 = vadd.f32 %v1148_v24, %v331_v45  ;;  %v4058_v6 = vor.u32 %v5016_v62, %v4057_v61  ;;  %v4249_v23 = vld [vmem:[#allocation7 + $0x280] sm:$0xf]  ;;  %v5064_v25 = vld [vmem:[#allocation7 + $0x28c] sm:$0xf0]  ;;  %v5034_v24 = vld [vmem:[#allocation7 + $0x1a4] sm:$0xf] }
  0xc6   :  { %2198 = vmatpush.bf16.msrb.mxu1 %v4170_v10  ;;  %1381 = vmatmul.bf16.vlgmr.msra.gmra.mxu2 %v5561_v15  ;;  %v4105_v15 = vld [vmem:[#allocation7 + $0x160] sm:$0xf]  ;;  %v4030_v18 = vor.u32 %v5006_v5, %v4027_v7  ;;  %v4250_v27 = vor.u32 %v5064_v25, %v4249_v23  ;;  %v4107_v45 = vld [vmem:[#allocation7 + $0x170] sm:$0xf0]  ;;  %v5074_v7 = vld [vmem:[#allocation7 + $0x2e4] sm:$0xf] }
  0xc7   :  { %1394 = vmatmul.bf16.vlgmr.msra.gmra.mxu3 %v5574_v28  ;;  %v3961_v28 = vld [vmem:[#allocation7 + $0x40] sm:$0xf]  ;;  %v4106_v33 = vor.u32 %v5028_v30, %v4105_v15  ;;  %2211 = vmatpush.bf16.msrb.mxu2 %v4298_v49  ;;  %v4998_v15 = vld [vmem:[#allocation7 + $0x84] sm:$0xf]  ;;  %v3995_v30 = vld [vmem:[#allocation7 + $0x90] sm:$0xf0]  ;;  %v4110_v55 = vor.u32 %v5026_v44, %v4107_v45 }
  0xc8   :  { %v3962_v38 = vor.u32 %v4992_v32, %v3961_v28  ;;  %v1161_v40 = vpop.f32.mrf.mxu1  ;;  %v5030_v28 = vld [vmem:[#allocation7 + $0x184] sm:$0xf]  ;;  %v4123_v32 = vld [vmem:[#allocation7 + $0x190] sm:$0xf0]  ;;  %v4185_v5 = vld [vmem:[#allocation7 + $0x200] sm:$0xf] }
  0xc9   :  { %2186 = vmatpush.bf16.msrb.mxu0 %v4026_v54  ;;  %v1162_v8 = vadd.f32 %v1161_v40, %v1149_v59  ;;  %v5068_v54 = vld [vmem:[#allocation7 + $0x2ac] sm:$0xf0]  ;;  %v4994_v40 = vld [vmem:[#allocation7 + $0x64] sm:$0xf]  ;;  %v4126_v43 = vor.u32 %v5030_v28, %v4123_v32  ;;  %v4091_v59 = vld [vmem:[#allocation7 + $0x150] sm:$0xf0] }
  0xca   :  { %2199 = vmatpush.bf16.msrb.mxu1 %v4154_v16  ;;  %v4155_v16 = vld [vmem:[#allocation7 + $0x1d0] sm:$0xf0]  ;;  %v4266_v17 = vor.u32 %v5068_v54, %v4265_v12  ;;  %v4982_v54 = vld [vmem:[#allocation7 + $0x4] sm:$0xf]  ;;  %v4409_v32 = vld [vmem:[#allocation7 + $0x3c0] sm:$0xf] }
  0xcb   :  { %v1174_v46 = vpop.f32.mrf.mxu2  ;;  %2212 = vmatpush.bf16.msrb.mxu2 %v4282_v63  ;;  %v4986_v63 = vld [vmem:[#allocation7 + $0x24] sm:$0xf]  ;;  %v4299_v12 = vld [vmem:[#allocation7 + $0x2f0] sm:$0xf0]  ;;  %v4393_v44 = vld [vmem:[#allocation7 + $0x3a0] sm:$0xf] }
  0xcc   :  { %v1150_v37 = vpop.f32.mrf.mxu0  ;;  %v1187_v50 = vpop.f32.mrf.mxu3  ;;  %v1175_v20 = vadd.f32 %v1174_v46, %v1162_v8  ;;  %v4217_v46 = vld [vmem:[#allocation7 + $0x240] sm:$0xf]  ;;  %v5018_v8 = vld [vmem:[#allocation7 + $0x124] sm:$0xf]  ;;  %v4059_v25 = vld [vmem:[#allocation7 + $0x110] sm:$0xf0] }
  0xcd   :  { %2187 = vmatpush.bf16.msrb.mxu0 %v4010_v19  ;;  %v5002_v19 = vld [vmem:[#allocation7 + $0xa4] sm:$0xf]  ;;  %v4218_v49 = vor.u32 %v5056_v47, %v4217_v46  ;;  %v5100_v45 = vld [vmem:[#allocation7 + $0x3ac] sm:$0xf0]  ;;  %v4017_v46 = vld [vmem:[#allocation7 + $0xa8] sm:$0xf] }
  0xce   :  { %2200 = vmatpush.bf16.msrb.mxu1 %v4138_v22  ;;  %v4158_v22 = vor.u32 %v5038_v14, %v4155_v16  ;;  %v4014_v29 = vor.u32 %v5002_v19, %v4011_v21  ;;  %v3950_v14 = vor.u32 %v4986_v63, %v3947_v0  ;;  %v3931_v16 = vld [vmem:[#allocation7 + $0x10] sm:$0xf0]  ;;  %v5108_v21 = vld [vmem:[#allocation7 + $0x3ec] sm:$0xf0]  ;;  %v5014_v23 = vld [vmem:[#allocation7 + $0x104] sm:$0xf] }
  0xcf   :  { %2213 = vmatpush.bf16.msrb.mxu2 %v4266_v17  ;;  %v4049_v17 = vld [vmem:[#allocation7 + $0xe8] sm:$0xf]  ;;  %v4062_v28 = vor.u32 %v5014_v23, %v4059_v25  ;;  %v5005_v47 = vld [vmem:[#allocation7 + $0xb4] sm:$0xf0]  ;;  %v5050_v23 = vld [vmem:[#allocation7 + $0x224] sm:$0xf] }
  0xd0   :  { %v1163_v3 = vpop.f32.mrf.mxu1  ;;  %v4203_v25 = vld [vmem:[#allocation7 + $0x230] sm:$0xf0] }
  0xd1   :  { %2188 = vmatpush.bf16.msrb.mxu0 %v3994_v26  ;;  %v4139_v26 = vld [vmem:[#allocation7 + $0x1b0] sm:$0xf0] }
  0xd2   :  { %2201 = vmatpush.bf16.msrb.mxu1 %v4122_v9  ;;  %v1188_v9 = vadd.f32 %v1187_v50, %v1175_v20  ;;  %v3982_v50 = vor.u32 %v4994_v40, %v3979_v41  ;;  %v4425_v20 = vld [vmem:[#allocation7 + $0x3e0] sm:$0xf]  ;;  %v4267_v40 = vld [vmem:[#allocation7 + $0x2b0] sm:$0xf0] }
  0xd3   :  { %v1176_v10 = vpop.f32.mrf.mxu2  ;;  %2214 = vmatpush.bf16.msrb.mxu2 %v4250_v27  ;;  %v332_v27 = vperm.slane %v5592_v36, 1 }
  0xd4   :  { %v1189_v13 = vpop.f32.mrf.mxu3  ;;  %v4075_v10 = vld [vmem:[#allocation7 + $0x130] sm:$0xf0] }
  0xd5   :  { %2189 = vmatpush.bf16.msrb.mxu0 %v3978_v31  ;;  %v4142_v31 = vor.u32 %v5034_v24, %v4139_v26  ;;  %v4302_v13 = vor.u32 %v5074_v7, %v4299_v12  ;;  %v4078_v19 = vor.u32 %v5018_v8, %v4075_v10  ;;  %v4426_v24 = vor.u32 %v5108_v21, %v4425_v20  ;;  %v4283_v26 = vld [vmem:[#allocation7 + $0x2d0] sm:$0xf0]  ;;  %v4993_v20 = vld [vmem:[#allocation7 + $0x54] sm:$0xf0] }
  0xd6   :  { %2202 = vmatpush.bf16.msrb.mxu1 %v4106_v33  ;;  %v4233_v33 = vld [vmem:[#allocation7 + $0x260] sm:$0xf]  ;;  %v4219_v12 = vld [vmem:[#allocation7 + $0x250] sm:$0xf0] }
  0xd7   :  { %v4234_v35 = vor.u32 %v5060_v34, %v4233_v33  ;;  %2224 = vmatpush.bf16.msrb.mxu3 %v4426_v24  ;;  %v5104_v33 = vld [vmem:[#allocation7 + $0x3cc] sm:$0xf0]  ;;  %v4033_v34 = vld [vmem:[#allocation7 + $0xc8] sm:$0xf] }
  0xd9   :  { %2190 = vmatpush.bf16.msrb.mxu0 %v3962_v38  ;;  %v3998_v38 = vor.u32 %v4998_v15, %v3995_v30  ;;  %2215 = vmatpush.bf16.msrb.mxu2 %v4234_v35  ;;  %v3934_v15 = vor.u32 %v4982_v54, %v3931_v16  ;;  %v5009_v35 = vld [vmem:[#allocation7 + $0xd4] sm:$0xf0]  ;;  %v4177_v54 = vld [vmem:[#allocation7 + $0x1e8] sm:$0xf] }
  0xda   :  { %2203 = vmatpush.bf16.msrb.mxu1 %v4090_v42  ;;  %v5045_v16 = vld [vmem:[#allocation7 + $0x1f4] sm:$0xf0] }
  0xdb   :  { %v4178_v24 = vor.u32 %v5045_v16, %v4177_v54  ;;  %v5098_v54 = vld [vmem:[#allocation7 + $0x3a4] sm:$0xf] }
  0xdd   :  { %2191 = vmatpush.bf16.msrb.mxu0 %v3946_v51  ;;  %v4990_v51 = vld [vmem:[#allocation7 + $0x44] sm:$0xf]  ;;  %2216 = vmatpush.bf16.msrb.mxu2 %v4218_v49 }
  0xde   :  { %2204 = vmatpush.bf16.msrb.mxu1 %v4074_v56  ;;  %v4201_v56 = vld [vmem:[#allocation7 + $0x220] sm:$0xf]  ;;  %v3966_v62 = vor.u32 %v4990_v51, %v3963_v53  ;;  %v4018_v53 = vor.u32 %v5005_v47, %v4017_v46  ;;  %v4985_v46 = vld [vmem:[#allocation7 + $0x14] sm:$0xf0]  ;;  %v4145_v47 = vld [vmem:[#allocation7 + $0x1a8] sm:$0xf] }
  0xdf   :  { %v4202_v60 = vor.u32 %v5052_v57, %v4201_v56  ;;  %v4377_v56 = vld [vmem:[#allocation7 + $0x380] sm:$0xf]  ;;  %v5096_v57 = vld [vmem:[#allocation7 + $0x38c] sm:$0xf0] }
  0xe1   :  { %2192 = vmatpush.bf16.msrb.mxu0 %v3930_v2  ;;  %v1200_v37 = vpop.f32.mrf.mxu0  ;;  %2217 = vmatpush.bf16.msrb.mxu2 %v4202_v60  ;;  %v5058_v60 = vld [vmem:[#allocation7 + $0x264] sm:$0xf] }
  0xe2   :  { %2205 = vmatpush.bf16.msrb.mxu1 %v4058_v6  ;;  %v1201_v39 = vadd.f32 %v1200_v37, %v1188_v9  ;;  %v5595_v42 = vpop.f32.mrf.mxu1  ;;  %v5048_v6 = vld [vmem:[#allocation7 + $0x20c] sm:$0xf0]  ;;  %v4410_v37 = vor.u32 %v5104_v33, %v4409_v32 }
  0xe4   :  { %v1399_v48 = vmax.f32 %v1201_v39, 0.0  ;;  %v5066_v39 = vld [vmem:[#allocation7 + $0x2a4] sm:$0xf]  ;;  %2225 = vmatpush.bf16.msrb.mxu3 %v4410_v37 }
  0xe5   :  { %2237 = vmatpush.bf16.msra.mxu0 %v4046_v4  ;;  %v4094_v4 = vor.u32 %v5022_v58, %v4091_v59  ;;  %v4270_v41 = vor.u32 %v5066_v39, %v4267_v40  ;;  %v5001_v58 = vld [vmem:[#allocation7 + $0x94] sm:$0xf0]  ;;  %v4378_v59 = vor.u32 %v5096_v57, %v4377_v56  ;;  %v5046_v39 = vld [vmem:[#allocation7 + $0x204] sm:$0xf]  ;;  %v4187_v40 = vld [vmem:[#allocation7 + $0x210] sm:$0xf0] }
  0xe6   :  { %2250 = vmatpush.bf16.msra.mxu1 %v4174_v11  ;;  %v5597_v52 = vpack.c.bf16 %v1399_v48, %v1399_v48  ;;  %v4186_v11 = vor.u32 %v5048_v6, %v4185_v5  ;;  %v4394_v48 = vor.u32 %v5100_v45, %v4393_v44  ;;  %v3985_v5 = vld [vmem:[#allocation7 + $0x68] sm:$0xf]  ;;  %v4997_v6 = vld [vmem:[#allocation7 + $0x74] sm:$0xf0]  ;;  %v4190_v44 = vor.u32 %v5046_v39, %v4187_v40  ;;  %v4427_v56 = vld [vmem:[#allocation7 + $0x3f0] sm:$0xf0] }
  0xe8   :  { %2193 = vmatmul.bf16.vlgmr.msrb.gmra.mxu0 %v5597_v52  ;;  %2218 = vmatpush.bf16.msrb.mxu2 %v4186_v11  ;;  %v5054_v11 = vld [vmem:[#allocation7 + $0x244] sm:$0xf] }
  0xe9   :  { %2238 = vmatpush.bf16.msra.mxu0 %v4030_v18  ;;  %v5600_v61 = vpop.f32.mrf.mxu2  ;;  %v1202_v1 = vpop.f32.mrf.mxu0  ;;  %v5013_v18 = vld [vmem:[#allocation7 + $0xf4] sm:$0xf0]  ;;  %2226 = vmatpush.bf16.msrb.mxu3 %v4394_v48 }
  0xea   :  { %2251 = vmatpush.bf16.msra.mxu1 %v4158_v22  ;;  %v5602_v2 = vpop.f32.mrf.mxu3  ;;  %v1215_v3 = vpop.f32.mrf.mxu1  ;;  %v5070_v22 = vld [vmem:[#allocation7 + $0x2c4] sm:$0xf]  ;;  %v4361_v1 = vld [vmem:[#allocation7 + $0x360] sm:$0xf]  ;;  %v5037_v48 = vld [vmem:[#allocation7 + $0x1b4] sm:$0xf0] }
  0xeb   :  { %v4286_v9 = vor.u32 %v5070_v22, %v4283_v26  ;;  %v5092_v3 = vld [vmem:[#allocation7 + $0x36c] sm:$0xf0]  ;;  %v4206_v26 = vor.u32 %v5050_v23, %v4203_v25  ;;  %v4146_v57 = vor.u32 %v5037_v48, %v4145_v47  ;;  %v4379_v23 = vld [vmem:[#allocation7 + $0x390] sm:$0xf0]  ;;  %v4999_v25 = vld [vmem:[#allocation7 + $0x8c] sm:$0xf] }
  0xec   :  { %2263 = vmatpush.bf16.msra.mxu2 %v4302_v13  ;;  %v4362_v7 = vor.u32 %v5092_v3, %v4361_v1  ;;  %v4222_v13 = vor.u32 %v5054_v11, %v4219_v12  ;;  %v5102_v1 = vld [vmem:[#allocation7 + $0x3c4] sm:$0xf]  ;;  %v4411_v3 = vld [vmem:[#allocation7 + $0x3d0] sm:$0xf0]  ;;  %v333_v11 = vperm.slane %v5592_v36, 2 }
  0xed   :  { %2239 = vmatpush.bf16.msra.mxu0 %v4014_v29  ;;  %2227 = vmatpush.bf16.msrb.mxu3 %v4378_v59  ;;  %v4179_v47 = vld [vmem:[#allocation7 + $0x1f8] sm:$0xf0]  ;;  %v4347_v48 = vld [vmem:[#allocation7 + $0x350] sm:$0xf0] }
  0xee   :  { %2252 = vmatpush.bf16.msra.mxu1 %v4142_v31  ;;  %v4050_v31 = vor.u32 %v5013_v18, %v4049_v17  ;;  %v4345_v17 = vld [vmem:[#allocation7 + $0x340] sm:$0xf]  ;;  %v5088_v18 = vld [vmem:[#allocation7 + $0x34c] sm:$0xf0] }
  0xef   :  { %v4346_v21 = vor.u32 %v5088_v18, %v4345_v17  ;;  %v4097_v18 = vld [vmem:[#allocation7 + $0x148] sm:$0xf] }
  0xf0   :  { %2264 = vmatpush.bf16.msra.mxu2 %v4286_v9  ;;  %v3953_v9 = vld [vmem:[#allocation7 + $0x28] sm:$0xf] }
  0xf1   :  { %2240 = vmatpush.bf16.msra.mxu0 %v3998_v38  ;;  %v1228_v29 = vpop.f32.mrf.mxu2  ;;  %v1214_v38 = vadd.f32 %v5595_v42, %v332_v27  ;;  %v4251_v42 = vld [vmem:[#allocation7 + $0x290] sm:$0xf0]  ;;  %2228 = vmatpush.bf16.msrb.mxu3 %v4362_v7 }
  0xf2   :  { %2253 = vmatpush.bf16.msra.mxu1 %v4126_v43  ;;  %v1241_v30 = vpop.f32.mrf.mxu3  ;;  %v4034_v43 = vor.u32 %v5009_v35, %v4033_v34  ;;  %v4329_v34 = vld [vmem:[#allocation7 + $0x320] sm:$0xf]  ;;  %v5084_v35 = vld [vmem:[#allocation7 + $0x32c] sm:$0xf0] }
  0xf3   :  { %v1227_v49 = vadd.f32 %v5600_v61, %v1214_v38  ;;  %v5041_v30 = vld [vmem:[#allocation7 + $0x1d4] sm:$0xf0]  ;;  %v4330_v38 = vor.u32 %v5084_v35, %v4329_v34  ;;  %v4995_v34 = vld [vmem:[#allocation7 + $0x6c] sm:$0xf]  ;;  %v3987_v35 = vld [vmem:[#allocation7 + $0x78] sm:$0xf0] }
  0xf4   :  { %2265 = vmatpush.bf16.msra.mxu2 %v4270_v41 }
  0xf5   :  { %2241 = vmatpush.bf16.msra.mxu0 %v3982_v50  ;;  %v5062_v50 = vld [vmem:[#allocation7 + $0x284] sm:$0xf]  ;;  %v1240_v63 = vadd.f32 %v5602_v2, %v1227_v49  ;;  %2229 = vmatpush.bf16.msrb.mxu3 %v4346_v21  ;;  %v4313_v49 = vld [vmem:[#allocation7 + $0x300] sm:$0xf] }
  0xf6   :  { %2254 = vmatpush.bf16.msra.mxu1 %v4110_v55  ;;  %v4254_v51 = vor.u32 %v5062_v50, %v4251_v42  ;;  %v4001_v55 = vld [vmem:[#allocation7 + $0x88] sm:$0xf]  ;;  %v5080_v50 = vld [vmem:[#allocation7 + $0x30c] sm:$0xf0]  ;;  %v5106_v42 = vld [vmem:[#allocation7 + $0x3e4] sm:$0xf] }
  0xf7   :  { %v4002_v61 = vor.u32 %v5001_v58, %v4001_v55  ;;  %v4314_v55 = vor.u32 %v5080_v50, %v4313_v49  ;;  %v4430_v58 = vor.u32 %v5106_v42, %v4427_v56  ;;  %v4991_v49 = vld [vmem:[#allocation7 + $0x4c] sm:$0xf]  ;;  %v3971_v50 = vld [vmem:[#allocation7 + $0x58] sm:$0xf0]  ;;  %v4305_v56 = vld [vmem:[#allocation7 + $0x2e8] sm:$0xf] }
  0xf8   :  { %2266 = vmatpush.bf16.msra.mxu2 %v4254_v51  ;;  %v5011_v51 = vld [vmem:[#allocation7 + $0xec] sm:$0xf] }
  0xf9   :  { %2242 = vmatpush.bf16.msra.mxu0 %v3966_v62  ;;  %v4235_v62 = vld [vmem:[#allocation7 + $0x270] sm:$0xf0]  ;;  %2230 = vmatpush.bf16.msrb.mxu3 %v4330_v38 }
  0xfa   :  { %2255 = vmatpush.bf16.msra.mxu1 %v4094_v4  ;;  %v4238_v0 = vor.u32 %v5058_v60, %v4235_v62  ;;  %v4129_v60 = vld [vmem:[#allocation7 + $0x188] sm:$0xf]  ;;  %v5033_v62 = vld [vmem:[#allocation7 + $0x194] sm:$0xf0] }
  0xfb   :  { %v4130_v7 = vor.u32 %v5033_v62, %v4129_v60  ;;  %v4163_v60 = vld [vmem:[#allocation7 + $0x1d8] sm:$0xf0]  ;;  %v5082_v62 = vld [vmem:[#allocation7 + $0x324] sm:$0xf] }
  0xfc   :  { %2267 = vmatpush.bf16.msra.mxu2 %v4238_v0 }
  0xfd   :  { %2243 = vmatpush.bf16.msra.mxu0 %v3950_v14  ;;  %v3986_v14 = vor.u32 %v4997_v6, %v3985_v5  ;;  %2231 = vmatpush.bf16.msrb.mxu3 %v4314_v55  ;;  %v4035_v5 = vld [vmem:[#allocation7 + $0xd8] sm:$0xf0]  ;;  %v4414_v6 = vor.u32 %v5102_v1, %v4411_v3  ;;  %v4987_v1 = vld [vmem:[#allocation7 + $0x2c] sm:$0xf] }
  0xfe   :  { %2256 = vmatpush.bf16.msra.mxu1 %v4078_v19  ;;  %v3969_v19 = vld [vmem:[#allocation7 + $0x48] sm:$0xf]  ;;  %v3955_v3 = vld [vmem:[#allocation7 + $0x38] sm:$0xf0] }
  0xff   :  { %v3970_v29 = vor.u32 %v4993_v20, %v3969_v19  ;;  %v5025_v19 = vld [vmem:[#allocation7 + $0x154] sm:$0xf0] }
 0x100   :  { %2268 = vmatpush.bf16.msra.mxu2 %v4222_v13  ;;  %v4395_v13 = vld [vmem:[#allocation7 + $0x3b0] sm:$0xf0] }
 0x101   :  { %2244 = vmatpush.bf16.msra.mxu0 %v3934_v15  ;;  %v1252_v4 = vpop.f32.mrf.mxu0  ;;  %v4161_v15 = vld [vmem:[#allocation7 + $0x1c8] sm:$0xf]  ;;  %2276 = vmatpush.bf16.msra.mxu3 %v4430_v58  ;;  %v4398_v16 = vor.u32 %v5098_v54, %v4395_v13  ;;  %v3958_v13 = vor.u32 %v4987_v1, %v3955_v3  ;;  %v5075_v3 = vld [vmem:[#allocation7 + $0x2ec] sm:$0xf] }
 0x102   :  { %2257 = vmatpush.bf16.msra.mxu1 %v4062_v28  ;;  %v1253_v8 = vadd.f32 %v1252_v4, %v1240_v63  ;;  %v1265_v10 = vpop.f32.mrf.mxu1  ;;  %v4989_v28 = vld [vmem:[#allocation7 + $0x34] sm:$0xf0]  ;;  %v4162_v41 = vor.u32 %v5041_v30, %v4161_v15  ;;  %v5007_v4 = vld [vmem:[#allocation7 + $0xcc] sm:$0xf] }
 0x103   :  { %v3954_v45 = vor.u32 %v4989_v28, %v3953_v9  ;;  %v4038_v12 = vor.u32 %v5007_v4, %v4035_v5  ;;  %v4081_v9 = vld [vmem:[#allocation7 + $0x128] sm:$0xf]  ;;  %v5021_v15 = vld [vmem:[#allocation7 + $0x134] sm:$0xf0] }
 0x104   :  { %2245 = vmatmul.bf16.vlgmr.msra.gmra.mxu0 %v5597_v52  ;;  %v1266_v2 = vadd.f32 %v1265_v10, %v1253_v8  ;;  %2269 = vmatpush.bf16.msra.mxu2 %v4206_v26  ;;  %v4113_v8 = vld [vmem:[#allocation7 + $0x168] sm:$0xf]  ;;  %v5029_v10 = vld [vmem:[#allocation7 + $0x174] sm:$0xf0]  ;;  %v4082_v38 = vor.u32 %v5021_v15, %v4081_v9 }
 0x105   :  { %2289 = vmatpush.bf16.msrb.mxu0 %v4050_v31  ;;  %2277 = vmatpush.bf16.msra.mxu3 %v4414_v6  ;;  %v4114_v17 = vor.u32 %v5029_v10, %v4113_v8  ;;  %v4273_v9 = vld [vmem:[#allocation7 + $0x2a8] sm:$0xf]  ;;  %v5069_v15 = vld [vmem:[#allocation7 + $0x2b4] sm:$0xf0] }
 0x106   :  { %v1400_v22 = vmax.f32 %v1266_v2, 0.0  ;;  %v5003_v2 = vld [vmem:[#allocation7 + $0xac] sm:$0xf] }
 0x108   :  { %v5609_v27 = vpack.c.bf16 %v1400_v22, %v1400_v22  ;;  %2270 = vmatpush.bf16.msra.mxu2 %v4190_v44  ;;  %v5094_v22 = vld [vmem:[#allocation7 + $0x384] sm:$0xf]  ;;  %v5043_v44 = vld [vmem:[#allocation7 + $0x1ec] sm:$0xf] }
 0x109   :  { %2290 = vmatpush.bf16.msrb.mxu0 %v4034_v43  ;;  %v5611_v31 = vpop.f32.mrf.mxu2  ;;  %v1254_v32 = vpop.f32.mrf.mxu0  ;;  %v3937_v43 = vld [vmem:[#allocation7 + $0x8] sm:$0xf]  ;;  %2278 = vmatpush.bf16.msra.mxu3 %v4398_v16  ;;  %v4382_v26 = vor.u32 %v5094_v22, %v4379_v23  ;;  %v4182_v55 = vor.u32 %v5043_v44, %v4179_v47  ;;  %v4315_v16 = vld [vmem:[#allocation7 + $0x310] sm:$0xf0]  ;;  %v5061_v44 = vld [vmem:[#allocation7 + $0x274] sm:$0xf0] }
 0x10a   :  { %v5613_v33 = vpop.f32.mrf.mxu3  ;;  %2206 = vmatmul.bf16.vlgmr.msrb.gmra.mxu1 %v5609_v27  ;;  %v1267_v37 = vpop.f32.mrf.mxu1  ;;  %v3938_v59 = vor.u32 %v4985_v46, %v3937_v43  ;;  %v1279_v20 = vadd.f32 %v5611_v31, %v333_v11  ;;  %v5090_v31 = vld [vmem:[#allocation7 + $0x364] sm:$0xf]  ;;  %v4363_v32 = vld [vmem:[#allocation7 + $0x370] sm:$0xf0]  ;;  %v5017_v43 = vld [vmem:[#allocation7 + $0x114] sm:$0xf0]  ;;  %v3990_v46 = vor.u32 %v4995_v34, %v3987_v35 }
 0x10b   :  { %2302 = vmatpush.bf16.msrb.mxu1 %v4178_v24  ;;  %v4003_v24 = vld [vmem:[#allocation7 + $0x98] sm:$0xf0]  ;;  %v4366_v37 = vor.u32 %v5090_v31, %v4363_v32  ;;  %v4289_v11 = vld [vmem:[#allocation7 + $0x2c8] sm:$0xf]  ;;  %v4274_v31 = vor.u32 %v5069_v15, %v4273_v9  ;;  %v5027_v32 = vld [vmem:[#allocation7 + $0x16c] sm:$0xf] }
 0x10c   :  { %v1292_v30 = vadd.f32 %v5613_v33, %v1279_v20  ;;  %v4006_v28 = vor.u32 %v4999_v25, %v4003_v24  ;;  %v5086_v33 = vld [vmem:[#allocation7 + $0x344] sm:$0xf]  ;;  %v3939_v20 = vld [vmem:[#allocation7 + $0x18] sm:$0xf0]  ;;  %v4257_v35 = vld [vmem:[#allocation7 + $0x288] sm:$0xf] }
 0x10d   :  { %2291 = vmatpush.bf16.msrb.mxu0 %v4018_v53  ;;  %v4051_v53 = vld [vmem:[#allocation7 + $0xf8] sm:$0xf0]  ;;  %2279 = vmatpush.bf16.msra.mxu3 %v4382_v26  ;;  %v4350_v42 = vor.u32 %v5086_v33, %v4347_v48  ;;  %v5031_v26 = vld [vmem:[#allocation7 + $0x18c] sm:$0xf]  ;;  %v4401_v9 = vld [vmem:[#allocation7 + $0x3a8] sm:$0xf] }
 0x10e   :  { %v4054_v0 = vor.u32 %v5011_v51, %v4051_v53  ;;  %v4115_v34 = vld [vmem:[#allocation7 + $0x178] sm:$0xf0]  ;;  %v5019_v33 = vld [vmem:[#allocation7 + $0x12c] sm:$0xf]  ;;  %v5101_v15 = vld [vmem:[#allocation7 + $0x3b4] sm:$0xf0] }
 0x10f   :  { %2303 = vmatpush.bf16.msrb.mxu1 %v4162_v41  ;;  %v4065_v41 = vld [vmem:[#allocation7 + $0x108] sm:$0xf]  ;;  %v4083_v48 = vld [vmem:[#allocation7 + $0x138] sm:$0xf0] }
 0x110   :  { %v4066_v53 = vor.u32 %v5017_v43, %v4065_v41  ;;  %v4099_v41 = vld [vmem:[#allocation7 + $0x158] sm:$0xf0]  ;;  %v4241_v43 = vld [vmem:[#allocation7 + $0x268] sm:$0xf] }
 0x111   :  { %2292 = vmatpush.bf16.msrb.mxu0 %v4002_v61  ;;  %v1280_v63 = vpop.f32.mrf.mxu2  ;;  %2280 = vmatpush.bf16.msra.mxu3 %v4366_v37  ;;  %v5065_v37 = vld [vmem:[#allocation7 + $0x294] sm:$0xf0]  ;;  %v4242_v47 = vor.u32 %v5061_v44, %v4241_v43  ;;  %v5055_v44 = vld [vmem:[#allocation7 + $0x24c] sm:$0xf] }
 0x112   :  { %v1293_v61 = vpop.f32.mrf.mxu3  ;;  %v4331_v63 = vld [vmem:[#allocation7 + $0x330] sm:$0xf0]  ;;  %v5093_v43 = vld [vmem:[#allocation7 + $0x374] sm:$0xf0] }
 0x113   :  { %2304 = vmatpush.bf16.msrb.mxu1 %v4146_v57  ;;  %v5039_v57 = vld [vmem:[#allocation7 + $0x1cc] sm:$0xf]  ;;  %v5077_v61 = vld [vmem:[#allocation7 + $0x2f4] sm:$0xf0]  ;;  %v4334_v4 = vor.u32 %v5082_v62, %v4331_v63 }
 0x114   :  { %v4306_v54 = vor.u32 %v5077_v61, %v4305_v56  ;;  %v5015_v56 = vld [vmem:[#allocation7 + $0x10c] sm:$0xf]  ;;  %v5049_v61 = vld [vmem:[#allocation7 + $0x214] sm:$0xf0] }
 0x115   :  { %2293 = vmatpush.bf16.msrb.mxu0 %v3986_v14  ;;  %v4019_v14 = vld [vmem:[#allocation7 + $0xb8] sm:$0xf0]  ;;  %2281 = vmatpush.bf16.msra.mxu3 %v4350_v42 }
 0x116   :  { %v4022_v21 = vor.u32 %v5003_v2, %v4019_v14  ;;  %v4147_v2 = vld [vmem:[#allocation7 + $0x1b8] sm:$0xf0]  ;;  %v5078_v14 = vld [vmem:[#allocation7 + $0x304] sm:$0xf] }
 0x117   :  { %2305 = vmatpush.bf16.msrb.mxu1 %v4130_v7  ;;  %v4166_v7 = vor.u32 %v5039_v57, %v4163_v60  ;;  %v4067_v57 = vld [vmem:[#allocation7 + $0x118] sm:$0xf0] }
 0x118   :  { %v4070_v60 = vor.u32 %v5015_v56, %v4067_v57  ;;  %v4195_v56 = vld [vmem:[#allocation7 + $0x218] sm:$0xf0] }
 0x119   :  { %2294 = vmatpush.bf16.msrb.mxu0 %v3970_v29  ;;  %v4098_v29 = vor.u32 %v5025_v19, %v4097_v18  ;;  %2282 = vmatpush.bf16.msra.mxu3 %v4334_v4  ;;  %v5073_v18 = vld [vmem:[#allocation7 + $0x2d4] sm:$0xf0]  ;;  %v4983_v19 = vld [vmem:[#allocation7 + $0xc] sm:$0xf]  ;;  %v4307_v4 = vld [vmem:[#allocation7 + $0x2f8] sm:$0xf0] }
 0x11a   :  { %2258 = vmatmul.bf16.vlgmr.msra.gmra.mxu1 %v5609_v27  ;;  %v4290_v23 = vor.u32 %v5073_v18, %v4289_v11  ;;  %v3942_v25 = vor.u32 %v4983_v19, %v3939_v20 }
 0x11b   :  { %2306 = vmatpush.bf16.msrb.mxu1 %v4114_v17 }
 0x11d   :  { %2295 = vmatpush.bf16.msrb.mxu0 %v3954_v45 }
 0x11f   :  { %2307 = vmatpush.bf16.msrb.mxu1 %v4098_v29  ;;  %v4131_v29 = vld [vmem:[#allocation7 + $0x198] sm:$0xf0] }
 0x121   :  { %2296 = vmatpush.bf16.msrb.mxu0 %v3938_v59  ;;  %v1304_v39 = vpop.f32.mrf.mxu0  ;;  %v3974_v59 = vor.u32 %v4991_v49, %v3971_v50  ;;  %v4225_v49 = vld [vmem:[#allocation7 + $0x248] sm:$0xf]  ;;  %v5057_v50 = vld [vmem:[#allocation7 + $0x254] sm:$0xf0] }
 0x122   :  { %v1317_v40 = vpop.f32.mrf.mxu1  ;;  %v1305_v45 = vadd.f32 %v1304_v39, %v1292_v30  ;;  %v4258_v39 = vor.u32 %v5065_v37, %v4257_v35  ;;  %v5097_v35 = vld [vmem:[#allocation7 + $0x394] sm:$0xf0]  ;;  %v5059_v37 = vld [vmem:[#allocation7 + $0x26c] sm:$0xf] }
 0x123   :  { %2308 = vmatpush.bf16.msrb.mxu1 %v4082_v38  ;;  %v4118_v38 = vor.u32 %v5027_v32, %v4115_v34  ;;  %v4385_v34 = vld [vmem:[#allocation7 + $0x388] sm:$0xf] }
 0x124   :  { %2297 = vmatmul.bf16.vlgmr.msrb.gmra.mxu0 %v5597_v52  ;;  %v1318_v51 = vadd.f32 %v1317_v40, %v1305_v45  ;;  %v5023_v40 = vld [vmem:[#allocation7 + $0x14c] sm:$0xf]  ;;  %v334_v45 = vperm.slane %v5592_v36, 3 }
 0x125   :  { %2341 = vmatpush.bf16.msra.mxu0 %v4054_v0 }
 0x127   :  { %2309 = vmatpush.bf16.msrb.mxu1 %v4066_v53 }
 0x129   :  { %2342 = vmatpush.bf16.msra.mxu0 %v4038_v12  ;;  %v1330_v58 = vpop.f32.mrf.mxu2  ;;  %v1306_v8 = vpop.f32.mrf.mxu0  ;;  %v5035_v12 = vld [vmem:[#allocation7 + $0x1ac] sm:$0xf] }
 0x12a   :  { %v1331_v0 = vadd.f32 %v1330_v58, %v1318_v51  ;;  %v1343_v5 = vpop.f32.mrf.mxu3  ;;  %v1319_v10 = vpop.f32.mrf.mxu1  ;;  %2310 = vmatmul.bf16.vlgmr.msrb.gmra.mxu1 %v5609_v27  ;;  %v4150_v22 = vor.u32 %v5035_v12, %v4147_v2  ;;  %v4086_v51 = vor.u32 %v5019_v33, %v4083_v48  ;;  %v4209_v58 = vld [vmem:[#allocation7 + $0x228] sm:$0xf]  ;;  %v4310_v12 = vor.u32 %v5075_v3, %v4307_v4  ;;  %v5071_v2 = vld [vmem:[#allocation7 + $0x2cc] sm:$0xf]  ;;  %v5089_v48 = vld [vmem:[#allocation7 + $0x354] sm:$0xf0] }
 0x12b   :  { %2354 = vmatpush.bf16.msra.mxu1 %v4182_v55  ;;  %v1344_v42 = vadd.f32 %v1343_v5, %v334_v45  ;;  %v4226_v55 = vor.u32 %v5057_v50, %v4225_v49  ;;  %v4227_v45 = vld [vmem:[#allocation7 + $0x258] sm:$0xf0]  ;;  %v4353_v33 = vld [vmem:[#allocation7 + $0x348] sm:$0xf]  ;;  %v5051_v49 = vld [vmem:[#allocation7 + $0x22c] sm:$0xf] }
 0x12c   :  { %v1401_v6 = vmax.f32 %v1331_v0, 0.0  ;;  %v4193_v0 = vld [vmem:[#allocation7 + $0x208] sm:$0xf]  ;;  %v4211_v50 = vld [vmem:[#allocation7 + $0x238] sm:$0xf0] }
 0x12d   :  { %2343 = vmatpush.bf16.msra.mxu0 %v4022_v21  ;;  %v4318_v21 = vor.u32 %v5078_v14, %v4315_v16  ;;  %v4194_v10 = vor.u32 %v5049_v61, %v4193_v0  ;;  %v4291_v14 = vld [vmem:[#allocation7 + $0x2d8] sm:$0xf0] }
 0x12e   :  { %v5621_v17 = vpack.c.bf16 %v1401_v6, %v1401_v6  ;;  %v4294_v20 = vor.u32 %v5071_v2, %v4291_v14  ;;  %v4419_v3 = vld [vmem:[#allocation7 + $0x3d8] sm:$0xf0] }
 0x12f   :  { %2355 = vmatpush.bf16.msra.mxu1 %v4166_v7  ;;  %2283 = vmatpush.bf16.msra.mxu3 %v4318_v21  ;;  %v4417_v21 = vld [vmem:[#allocation7 + $0x3c8] sm:$0xf] }
 0x130   :  { %2219 = vmatmul.bf16.vlgmr.msrb.gmra.mxu2 %v5621_v17 }
 0x131   :  { %2344 = vmatpush.bf16.msra.mxu0 %v4006_v28  ;;  %2315 = vmatpush.bf16.msrb.mxu2 %v4306_v54  ;;  %v1332_v24 = vpop.f32.mrf.mxu2  ;;  %v4134_v28 = vor.u32 %v5031_v26, %v4131_v29  ;;  %v4433_v54 = vld [vmem:[#allocation7 + $0x3e8] sm:$0xf] }
 0x132   :  { %v1345_v30 = vpop.f32.mrf.mxu3  ;;  %v4275_v24 = vld [vmem:[#allocation7 + $0x2b8] sm:$0xf0] }
 0x133   :  { %2356 = vmatpush.bf16.msra.mxu1 %v4150_v22  ;;  %v5105_v22 = vld [vmem:[#allocation7 + $0x3d4] sm:$0xf0]  ;;  %v5063_v30 = vld [vmem:[#allocation7 + $0x28c] sm:$0xf] }
 0x135   :  { %2345 = vmatpush.bf16.msra.mxu0 %v3990_v46  ;;  %2316 = vmatpush.bf16.msrb.mxu2 %v4290_v23  ;;  %v4102_v46 = vor.u32 %v5023_v40, %v4099_v41  ;;  %v4369_v41 = vld [vmem:[#allocation7 + $0x368] sm:$0xf] }
 0x137   :  { %2357 = vmatpush.bf16.msra.mxu1 %v4134_v28  ;;  %v4259_v28 = vld [vmem:[#allocation7 + $0x298] sm:$0xf0] }
 0x138   :  { %v4262_v32 = vor.u32 %v5063_v30, %v4259_v28  ;;  %v4497_v28 = vld [vmem:[#allocation10 + $0x70] sm:$0xf] }
 0x139   :  { %2346 = vmatpush.bf16.msra.mxu0 %v3974_v59  ;;  %2317 = vmatpush.bf16.msrb.mxu2 %v4274_v31  ;;  %v5053_v59 = vld [vmem:[#allocation7 + $0x234] sm:$0xf0]  ;;  %v4402_v31 = vor.u32 %v5101_v15, %v4401_v9 }
 0x13a   :  { %v4210_v62 = vor.u32 %v5053_v59, %v4209_v58  ;;  %v4321_v58 = vld [vmem:[#allocation7 + $0x308] sm:$0xf]  ;;  %v5081_v59 = vld [vmem:[#allocation7 + $0x314] sm:$0xf0] }
 0x13b   :  { %2358 = vmatpush.bf16.msra.mxu1 %v4118_v38  ;;  %v4243_v38 = vld [vmem:[#allocation7 + $0x278] sm:$0xf0] }
 0x13c   :  { %v4246_v40 = vor.u32 %v5059_v37, %v4243_v38 }
 0x13d   :  { %2347 = vmatpush.bf16.msra.mxu0 %v3958_v13  ;;  %2318 = vmatpush.bf16.msrb.mxu2 %v4258_v39  ;;  %v5109_v13 = vld [vmem:[#allocation7 + $0x3f4] sm:$0xf0]  ;;  %v4386_v39 = vor.u32 %v5097_v35, %v4385_v34  ;;  %v5123_v35 = vld [vmem:[#allocation10 + $0x64] sm:$0xf0] }
 0x13e   :  { %v4434_v18 = vor.u32 %v5109_v13, %v4433_v54  ;;  %v5091_v54 = vld [vmem:[#allocation7 + $0x36c] sm:$0xf]  ;;  %v4371_v13 = vld [vmem:[#allocation7 + $0x378] sm:$0xf0] }
 0x13f   :  { %2359 = vmatpush.bf16.msra.mxu1 %v4102_v46  ;;  %v4370_v46 = vor.u32 %v5093_v43, %v4369_v41  ;;  %v4374_v2 = vor.u32 %v5091_v54, %v4371_v13  ;;  %v4499_v54 = vld [vmem:[#allocation10 + $0x78] sm:$0xf0] }
 0x140   :  { %2271 = vmatmul.bf16.vlgmr.msra.gmra.mxu2 %v5621_v17 }
 0x141   :  { %2348 = vmatpush.bf16.msra.mxu0 %v3942_v25  ;;  %2319 = vmatpush.bf16.msrb.mxu2 %v4242_v47  ;;  %v5067_v25 = vld [vmem:[#allocation7 + $0x2ac] sm:$0xf]  ;;  %v4230_v47 = vor.u32 %v5055_v44, %v4227_v45  ;;  %v4473_v44 = vld [vmem:[#allocation10 + $0x40] sm:$0xf] }
 0x142   :  { %v1369_v53 = vpop.f32.mrf.mxu1  ;;  %v4278_v29 = vor.u32 %v5067_v25, %v4275_v24  ;;  %v5079_v24 = vld [vmem:[#allocation7 + $0x30c] sm:$0xf] }
 0x143   :  { %2360 = vmatpush.bf16.msra.mxu1 %v4086_v51  ;;  %v4337_v51 = vld [vmem:[#allocation7 + $0x328] sm:$0xf]  ;;  %v5119_v45 = vld [vmem:[#allocation10 + $0x44] sm:$0xf0] }
 0x144   :  { %2349 = vmatmul.bf16.vlgmr.msra.gmra.mxu0 %v5597_v52  ;;  %v1356_v52 = vpop.f32.mrf.mxu0 }
 0x145   :  { %v1357_v36 = vadd.f32 %v1356_v52, %v1344_v42  ;;  %2320 = vmatpush.bf16.msrb.mxu2 %v4226_v55  ;;  %v4354_v42 = vor.u32 %v5089_v48, %v4353_v33  ;;  %v4214_v52 = vor.u32 %v5051_v49, %v4211_v50  ;;  %v5047_v55 = vld [vmem:[#allocation7 + $0x20c] sm:$0xf]  ;;  %v4465_v49 = vld [vmem:[#allocation10 + $0x30] sm:$0xf]  ;;  %v5117_v50 = vld [vmem:[#allocation10 + $0x34] sm:$0xf0] }
 0x147   :  { %v1370_v63 = vadd.f32 %v1369_v53, %v1357_v36  ;;  %2361 = vmatpush.bf16.msra.mxu1 %v4070_v60  ;;  %v5085_v53 = vld [vmem:[#allocation7 + $0x334] sm:$0xf0]  ;;  %v4198_v36 = vor.u32 %v5047_v55, %v4195_v56  ;;  %v5107_v60 = vld [vmem:[#allocation7 + $0x3ec] sm:$0xf] }
 0x148   :  { %v4338_v57 = vor.u32 %v5085_v53, %v4337_v51  ;;  %v5141_v51 = vld [vmem:[#allocation10 + $0xf4] sm:$0xf0]  ;;  %v4457_v53 = vld [vmem:[#allocation10 + $0x20] sm:$0xf]  ;;  %v5115_v55 = vld [vmem:[#allocation10 + $0x24] sm:$0xf0] }
 0x149   :  { %v1382_v1 = vpop.f32.mrf.mxu2  ;;  %2321 = vmatpush.bf16.msrb.mxu2 %v4210_v62  ;;  %v4435_v62 = vld [vmem:[#allocation7 + $0x3f8] sm:$0xf0] }
 0x14a   :  { %v1383_v5 = vadd.f32 %v1382_v1, %v1370_v63  ;;  %v1395_v6 = vpop.f32.mrf.mxu3  ;;  %v1371_v8 = vpop.f32.mrf.mxu1  ;;  %2362 = vmatmul.bf16.vlgmr.msra.gmra.mxu1 %v5609_v27  ;;  %v4418_v27 = vor.u32 %v5105_v22, %v4417_v21  ;;  %v4322_v63 = vor.u32 %v5081_v59, %v4321_v58  ;;  %v4438_v0 = vor.u32 %v5107_v60, %v4435_v62  ;;  %v5103_v1 = vld [vmem:[#allocation7 + $0x3cc] sm:$0xf]  ;;  %v4339_v21 = vld [vmem:[#allocation7 + $0x338] sm:$0xf0] }
 0x14b   :  { %v4422_v4 = vor.u32 %v5103_v1, %v4419_v3  ;;  %v4458_v58 = vor.u32 %v5115_v55, %v4457_v53  ;;  %v5137_v3 = vld [vmem:[#allocation10 + $0xd4] sm:$0xf0]  ;;  %v5151_v55 = vld [vmem:[#allocation10 + $0x144] sm:$0xf0] }
 0x14c   :  { %v1358_v7 = vpop.f32.mrf.mxu0  ;;  %v1396_v11 = vadd.f32 %v1395_v6, %v1383_v5  ;;  %v5099_v5 = vld [vmem:[#allocation7 + $0x3ac] sm:$0xf]  ;;  %v4403_v6 = vld [vmem:[#allocation7 + $0x3b8] sm:$0xf0] }
 0x14d   :  { %2322 = vmatpush.bf16.msrb.mxu2 %v4194_v10  ;;  %v4406_v7 = vor.u32 %v5099_v5, %v4403_v6  ;;  %v5095_v10 = vld [vmem:[#allocation7 + $0x38c] sm:$0xf]  ;;  %v4441_v6 = vld [vmem:[#allocation10] sm:$0xf] }
 0x14e   :  { %v1402_v16 = vmax.f32 %v1396_v11, 0.0  ;;  %v4387_v11 = vld [vmem:[#allocation7 + $0x398] sm:$0xf0] }
 0x150   :  { %v5629_v19 = vpack.c.bf16 %v1402_v16, %v1402_v16  ;;  %2323 = vmatmul.bf16.vlgmr.msrb.gmra.mxu2 %v5621_v17  ;;  %v5087_v16 = vld [vmem:[#allocation7 + $0x34c] sm:$0xf] }
 0x151   :  { %2367 = vmatpush.bf16.msra.mxu2 %v4310_v12  ;;  %v1384_v23 = vpop.f32.mrf.mxu2  ;;  %v4390_v12 = vor.u32 %v5095_v10, %v4387_v11  ;;  %v5135_v11 = vld [vmem:[#allocation10 + $0xc4] sm:$0xf0] }
 0x152   :  { %v1397_v26 = vpop.f32.mrf.mxu3  ;;  %2232 = vmatmul.bf16.vlgmr.msrb.gmra.mxu3 %v5629_v19  ;;  %v5636_v23 = vld [vmem:[#allocation8] sm:$0xf] }
 0x153   :  { %2328 = vmatpush.bf16.msrb.mxu3 %v4434_v18  ;;  %v4323_v26 = vld [vmem:[#allocation7 + $0x318] sm:$0xf0]  ;;  %v1538_v43 = vperm.slane %v5636_v23, 1 }
 0x155   :  { %2368 = vmatpush.bf16.msra.mxu2 %v4294_v20  ;;  %v5083_v20 = vld [vmem:[#allocation7 + $0x32c] sm:$0xf] }
 0x156   :  { %v4342_v22 = vor.u32 %v5083_v20, %v4339_v21  ;;  %v4625_v20 = vld [vmem:[#allocation10 + $0x170] sm:$0xf] }
 0x157   :  { %2329 = vmatpush.bf16.msrb.mxu3 %v4418_v27  ;;  %v1537_v27 = vperm.slane %v5636_v23, 0 }
 0x159   :  { %2369 = vmatpush.bf16.msra.mxu2 %v4278_v29  ;;  %v4326_v29 = vor.u32 %v5079_v24, %v4323_v26  ;;  %v5122_v24 = vld [vmem:[#allocation10 + $0x64] sm:$0xf]  ;;  %v4491_v26 = vld [vmem:[#allocation10 + $0x68] sm:$0xf0] }
 0x15b   :  { %2330 = vmatpush.bf16.msrb.mxu3 %v4402_v31  ;;  %v5125_v31 = vld [vmem:[#allocation10 + $0x74] sm:$0xf0] }
 0x15c   :  { %v4498_v34 = vor.u32 %v5125_v31, %v4497_v28  ;;  %v4617_v28 = vld [vmem:[#allocation10 + $0x160] sm:$0xf] }
 0x15d   :  { %2370 = vmatpush.bf16.msra.mxu2 %v4262_v32  ;;  %v4489_v32 = vld [vmem:[#allocation10 + $0x60] sm:$0xf] }
 0x15e   :  { %2791 = vmatpush.bf16.msrb.mxu0 %v4498_v34  ;;  %v4490_v37 = vor.u32 %v5123_v35, %v4489_v32  ;;  %v5155_v32 = vld [vmem:[#allocation10 + $0x164] sm:$0xf0]  ;;  %v5120_v34 = vld [vmem:[#allocation10 + $0x54] sm:$0xf]  ;;  %v4483_v35 = vld [vmem:[#allocation10 + $0x58] sm:$0xf0] }
 0x15f   :  { %2331 = vmatpush.bf16.msrb.mxu3 %v4386_v39  ;;  %v4481_v39 = vld [vmem:[#allocation10 + $0x50] sm:$0xf] }
 0x161   :  { %2371 = vmatpush.bf16.msra.mxu2 %v4246_v40  ;;  %v5121_v40 = vld [vmem:[#allocation10 + $0x54] sm:$0xf0] }
 0x162   :  { %2284 = vmatmul.bf16.vlgmr.msra.gmra.mxu3 %v5629_v19  ;;  %2792 = vmatpush.bf16.msrb.mxu0 %v4490_v37  ;;  %v4482_v41 = vor.u32 %v5121_v40, %v4481_v39  ;;  %v4618_v37 = vor.u32 %v5155_v32, %v4617_v28  ;;  %v4539_v28 = vld [vmem:[#allocation10 + $0xc8] sm:$0xf0] }
 0x163   :  { %2332 = vmatpush.bf16.msrb.mxu3 %v4370_v46  ;;  %v4474_v46 = vor.u32 %v5119_v45, %v4473_v44  ;;  %v4609_v44 = vld [vmem:[#allocation10 + $0x150] sm:$0xf] }
 0x165   :  { %2372 = vmatpush.bf16.msra.mxu2 %v4230_v47  ;;  %v2194_v61 = vpop.f32.mrf.mxu0 }
 0x166   :  { %v2195_v9 = vadd.f32 %v2194_v61, %v1537_v27  ;;  %2793 = vmatpush.bf16.msrb.mxu0 %v4482_v41  ;;  %v4545_v61 = vld [vmem:[#allocation10 + $0xd0] sm:$0xf] }
 0x167   :  { %2333 = vmatpush.bf16.msrb.mxu3 %v4354_v42  ;;  %v4561_v42 = vld [vmem:[#allocation10 + $0xf0] sm:$0xf]  ;;  %v4546_v5 = vor.u32 %v5137_v3, %v4545_v61  ;;  %v5149_v61 = vld [vmem:[#allocation10 + $0x134] sm:$0xf0] }
 0x168   :  { %v4562_v56 = vor.u32 %v5141_v51, %v4561_v42  ;;  %v4513_v41 = vld [vmem:[#allocation10 + $0x90] sm:$0xf]  ;;  %v4505_v42 = vld [vmem:[#allocation10 + $0x80] sm:$0xf] }
 0x169   :  { %2373 = vmatpush.bf16.msra.mxu2 %v4214_v52  ;;  %v4466_v52 = vor.u32 %v5117_v50, %v4465_v49  ;;  %v4601_v51 = vld [vmem:[#allocation10 + $0x140] sm:$0xf] }
 0x16a   :  { %2794 = vmatpush.bf16.msrb.mxu0 %v4474_v46  ;;  %2804 = vmatpush.bf16.msrb.mxu1 %v4562_v56  ;;  %v5116_v56 = vld [vmem:[#allocation10 + $0x34] sm:$0xf] }
 0x16b   :  { %2334 = vmatpush.bf16.msrb.mxu3 %v4338_v57  ;;  %v4553_v57 = vld [vmem:[#allocation10 + $0xe0] sm:$0xf] }
 0x16d   :  { %2374 = vmatpush.bf16.msra.mxu2 %v4198_v36  ;;  %v2196_v8 = vpop.f32.mrf.mxu0  ;;  %v5139_v36 = vld [vmem:[#allocation10 + $0xe4] sm:$0xf0] }
 0x16e   :  { %2795 = vmatpush.bf16.msrb.mxu0 %v4466_v52  ;;  %v4554_v60 = vor.u32 %v5139_v36, %v4553_v57  ;;  %v4537_v8 = vld [vmem:[#allocation10 + $0xc0] sm:$0xf]  ;;  %v5127_v52 = vld [vmem:[#allocation10 + $0x84] sm:$0xf0]  ;;  %v4467_v57 = vld [vmem:[#allocation10 + $0x38] sm:$0xf0]  ;;  %v4602_v36 = vor.u32 %v5151_v55, %v4601_v51 }
 0x16f   :  { %2335 = vmatpush.bf16.msrb.mxu3 %v4322_v63  ;;  %v4449_v63 = vld [vmem:[#allocation10 + $0x10] sm:$0xf]  ;;  %v4506_v53 = vor.u32 %v5127_v52, %v4505_v42  ;;  %v5171_v42 = vld [vmem:[#allocation10 + $0x1e4] sm:$0xf0]  ;;  %v5130_v52 = vld [vmem:[#allocation10 + $0xa4] sm:$0xf] }
 0x170   :  { %2375 = vmatmul.bf16.vlgmr.msra.gmra.mxu2 %v5621_v17  ;;  %v4355_v17 = vld [vmem:[#allocation7 + $0x358] sm:$0xf0]  ;;  %2805 = vmatpush.bf16.msrb.mxu1 %v4554_v60  ;;  %v4563_v60 = vld [vmem:[#allocation10 + $0xf8] sm:$0xf0]  ;;  %v5154_v55 = vld [vmem:[#allocation10 + $0x164] sm:$0xf] }
 0x171   :  { %v4358_v18 = vor.u32 %v5087_v16, %v4355_v17  ;;  %v4529_v17 = vld [vmem:[#allocation10 + $0xb0] sm:$0xf] }
 0x172   :  { %2336 = vmatmul.bf16.vlgmr.msrb.gmra.mxu3 %v5629_v19  ;;  %2796 = vmatpush.bf16.msrb.mxu0 %v4458_v58  ;;  %v4470_v58 = vor.u32 %v5116_v56, %v4467_v57  ;;  %v4619_v56 = vld [vmem:[#allocation10 + $0x168] sm:$0xf0] }
 0x173   :  { %2380 = vmatpush.bf16.msra.mxu3 %v4438_v0  ;;  %v5113_v0 = vld [vmem:[#allocation10 + $0x14] sm:$0xf0] }
 0x174   :  { %v4450_v1 = vor.u32 %v5113_v0, %v4449_v63  ;;  %2806 = vmatpush.bf16.msrb.mxu1 %v4546_v5  ;;  %v4593_v0 = vld [vmem:[#allocation10 + $0x130] sm:$0xf]  ;;  %v5138_v5 = vld [vmem:[#allocation10 + $0xe4] sm:$0xf] }
 0x175   :  { %v4594_v3 = vor.u32 %v5149_v61, %v4593_v0  ;;  %v4515_v0 = vld [vmem:[#allocation10 + $0x98] sm:$0xf0]  ;;  %v5152_v61 = vld [vmem:[#allocation10 + $0x154] sm:$0xf] }
 0x176   :  { %2797 = vmatpush.bf16.msrb.mxu0 %v4450_v1  ;;  %v5114_v1 = vld [vmem:[#allocation10 + $0x24] sm:$0xf] }
 0x177   :  { %2381 = vmatpush.bf16.msra.mxu3 %v4422_v4  ;;  %v1539_v4 = vperm.slane %v5636_v23, 2 }
 0x17b   :  { %2382 = vmatpush.bf16.msra.mxu3 %v4406_v7  ;;  %v5111_v7 = vld [vmem:[#allocation10 + $0x4] sm:$0xf0] }
 0x17c   :  { %v4442_v10 = vor.u32 %v5111_v7, %v4441_v6  ;;  %v4555_v6 = vld [vmem:[#allocation10 + $0xe8] sm:$0xf0] }
 0x17e   :  { %2798 = vmatpush.bf16.msrb.mxu0 %v4442_v10  ;;  %v4558_v10 = vor.u32 %v5138_v5, %v4555_v6 }
 0x17f   :  { %2383 = vmatpush.bf16.msra.mxu3 %v4390_v12  ;;  %v5124_v12 = vld [vmem:[#allocation10 + $0x74] sm:$0xf] }
 0x181   :  { %v2246_v14 = vpop.f32.mrf.mxu0 }
 0x182   :  { %v2247_v33 = vadd.f32 %v2246_v14, %v1538_v43  ;;  %v4502_v14 = vor.u32 %v5124_v12, %v4499_v54  ;;  %v5129_v43 = vld [vmem:[#allocation10 + $0x94] sm:$0xf0]  ;;  %v5147_v12 = vld [vmem:[#allocation10 + $0x124] sm:$0xf0] }
 0x183   :  { %2384 = vmatpush.bf16.msra.mxu3 %v4374_v2  ;;  %v4538_v2 = vor.u32 %v5135_v11, %v4537_v8  ;;  %v4514_v46 = vor.u32 %v5129_v43, %v4513_v41  ;;  %v4585_v11 = vld [vmem:[#allocation10 + $0x120] sm:$0xf]  ;;  %v5173_v41 = vld [vmem:[#allocation10 + $0x1f4] sm:$0xf0]  ;;  %v5132_v43 = vld [vmem:[#allocation10 + $0xb4] sm:$0xf] }
 0x184   :  { %2843 = vmatpush.bf16.msra.mxu0 %v4502_v14  ;;  %v4586_v54 = vor.u32 %v5147_v12, %v4585_v11  ;;  %v5136_v14 = vld [vmem:[#allocation10 + $0xd4] sm:$0xf]  ;;  %v5167_v11 = vld [vmem:[#allocation10 + $0x1c4] sm:$0xf0] }
 0x185   :  { %2807 = vmatpush.bf16.msrb.mxu1 %v4538_v2  ;;  %v4451_v2 = vld [vmem:[#allocation10 + $0x18] sm:$0xf0] }
 0x187   :  { %2385 = vmatpush.bf16.msra.mxu3 %v4358_v18  ;;  %v2207_v15 = vpop.f32.mrf.mxu1  ;;  %v5133_v18 = vld [vmem:[#allocation10 + $0xb4] sm:$0xf0] }
 0x188   :  { %v5639_v30 = vadd.f32 %v2207_v15, %v2195_v9  ;;  %v4521_v9 = vld [vmem:[#allocation10 + $0xa0] sm:$0xf]  ;;  %v5131_v15 = vld [vmem:[#allocation10 + $0xa4] sm:$0xf0] }
 0x189   :  { %v2248_v25 = vpop.f32.mrf.mxu0  ;;  %v4522_v31 = vor.u32 %v5131_v15, %v4521_v9  ;;  %v5134_v9 = vld [vmem:[#allocation10 + $0xc4] sm:$0xf] }
 0x18a   :  { %v5157_v25 = vld [vmem:[#allocation10 + $0x174] sm:$0xf0]  ;;  %v4542_v32 = vor.u32 %v5134_v9, %v4539_v28  ;;  %v5163_v28 = vld [vmem:[#allocation10 + $0x1a4] sm:$0xf0] }
 0x18b   :  { %2386 = vmatpush.bf16.msra.mxu3 %v4342_v22  ;;  %v4530_v22 = vor.u32 %v5133_v18, %v4529_v17  ;;  %v4626_v27 = vor.u32 %v5157_v25, %v4625_v20  ;;  %v4547_v17 = vld [vmem:[#allocation10 + $0xd8] sm:$0xf0]  ;;  %v1540_v18 = vperm.slane %v5636_v23, 3  ;;  %v4577_v25 = vld [vmem:[#allocation10 + $0x110] sm:$0xf] }
 0x18c   :  { %v4569_v23 = vld [vmem:[#allocation10 + $0x100] sm:$0xf] }
 0x18d   :  { %2817 = vmatpush.bf16.msrb.mxu2 %v4626_v27  ;;  %2808 = vmatpush.bf16.msrb.mxu1 %v4530_v22  ;;  %v4550_v22 = vor.u32 %v5136_v14, %v4547_v17  ;;  %v5110_v27 = vld [vmem:[#allocation10 + $0x4] sm:$0xf]  ;;  %v4603_v17 = vld [vmem:[#allocation10 + $0x148] sm:$0xf0] }
 0x18f   :  { %2387 = vmatpush.bf16.msra.mxu3 %v4326_v29  ;;  %v2209_v38 = vpop.f32.mrf.mxu1  ;;  %v4494_v29 = vor.u32 %v5122_v24, %v4491_v26  ;;  %v5145_v24 = vld [vmem:[#allocation10 + $0x114] sm:$0xf0] }
 0x190   :  { %v4486_v38 = vor.u32 %v5120_v34, %v4483_v35  ;;  %v4578_v26 = vor.u32 %v5145_v24, %v4577_v25  ;;  %v5143_v35 = vld [vmem:[#allocation10 + $0x104] sm:$0xf0]  ;;  %v5148_v24 = vld [vmem:[#allocation10 + $0x134] sm:$0xf] }
 0x191   :  { %2844 = vmatpush.bf16.msra.mxu0 %v4494_v29  ;;  %2809 = vmatpush.bf16.msrb.mxu1 %v4522_v31  ;;  %v4443_v29 = vld [vmem:[#allocation10 + $0x8] sm:$0xf0] }
 0x192   :  { %2388 = vmatmul.bf16.vlgmr.msra.gmra.mxu3 %v5629_v19  ;;  %2818 = vmatpush.bf16.msrb.mxu2 %v4618_v37  ;;  %v4446_v15 = vor.u32 %v5110_v27, %v4443_v29  ;;  %v4689_v37 = vld [vmem:[#allocation10 + $0x1f0] sm:$0xf] }
 0x195   :  { %2845 = vmatpush.bf16.msra.mxu0 %v4486_v38  ;;  %2810 = vmatpush.bf16.msrb.mxu1 %v4514_v46  ;;  %v4690_v46 = vor.u32 %v5173_v41, %v4689_v37  ;;  %v5161_v37 = vld [vmem:[#allocation10 + $0x194] sm:$0xf0]  ;;  %v4579_v41 = vld [vmem:[#allocation10 + $0x118] sm:$0xf0] }
 0x197   :  { %v2259_v48 = vpop.f32.mrf.mxu1  ;;  %2830 = vmatpush.bf16.msrb.mxu3 %v4690_v46  ;;  %v4633_v46 = vld [vmem:[#allocation10 + $0x180] sm:$0xf] }
 0x198   :  { %v5643_v19 = vadd.f32 %v2259_v48, %v2247_v33  ;;  %v5118_v33 = vld [vmem:[#allocation10 + $0x44] sm:$0xf]  ;;  %v4475_v48 = vld [vmem:[#allocation10 + $0x48] sm:$0xf0] }
 0x199   :  { %v4478_v50 = vor.u32 %v5118_v33, %v4475_v48  ;;  %2811 = vmatpush.bf16.msrb.mxu1 %v4506_v53  ;;  %v5156_v33 = vld [vmem:[#allocation10 + $0x174] sm:$0xf]  ;;  %v4627_v48 = vld [vmem:[#allocation10 + $0x178] sm:$0xf0]  ;;  %v4523_v53 = vld [vmem:[#allocation10 + $0xa8] sm:$0xf0] }
 0x19a   :  { %v4526_v57 = vor.u32 %v5130_v52, %v4523_v53 }
 0x19b   :  { %2846 = vmatpush.bf16.msra.mxu0 %v4478_v50  ;;  %v4681_v50 = vld [vmem:[#allocation10 + $0x1e0] sm:$0xf] }
 0x19c   :  { %v4682_v51 = vor.u32 %v5171_v42, %v4681_v50  ;;  %v4691_v50 = vld [vmem:[#allocation10 + $0x1f8] sm:$0xf0] }
 0x19e   :  { %2831 = vmatpush.bf16.msrb.mxu3 %v4682_v51 }
 0x19f   :  { %v2261_v62 = vpop.f32.mrf.mxu1  ;;  %2847 = vmatpush.bf16.msra.mxu0 %v4470_v58 }
 0x1a1   :  { %v2298_v47 = vpop.f32.mrf.mxu0 }
 0x1a2   :  { %v2299_v13 = vadd.f32 %v2298_v47, %v1539_v4  ;;  %v5153_v47 = vld [vmem:[#allocation10 + $0x154] sm:$0xf0]  ;;  %v4459_v4 = vld [vmem:[#allocation10 + $0x28] sm:$0xf0] }
 0x1a3   :  { %v4610_v49 = vor.u32 %v5153_v47, %v4609_v44  ;;  %v4462_v8 = vor.u32 %v5114_v1, %v4459_v4  ;;  %v4531_v44 = vld [vmem:[#allocation10 + $0xb8] sm:$0xf0] }
 0x1a4   :  { %v4534_v47 = vor.u32 %v5132_v43, %v4531_v44  ;;  %v4611_v4 = vld [vmem:[#allocation10 + $0x158] sm:$0xf0] }
 0x1a5   :  { %2819 = vmatpush.bf16.msrb.mxu2 %v4610_v49  ;;  %2848 = vmatpush.bf16.msra.mxu0 %v4462_v8 }
 0x1a7   :  { %v2311_v16 = vpop.f32.mrf.mxu1 }
 0x1a8   :  { %v5646_v21 = vadd.f32 %v2311_v16, %v2299_v13  ;;  %v5112_v13 = vld [vmem:[#allocation10 + $0x14] sm:$0xf] }
 0x1a9   :  { %v2300_v59 = vpop.f32.mrf.mxu0  ;;  %2820 = vmatpush.bf16.msrb.mxu2 %v4602_v36  ;;  %v4454_v16 = vor.u32 %v5112_v13, %v4451_v2  ;;  %v4622_v36 = vor.u32 %v5154_v55, %v4619_v56  ;;  %v4507_v13 = vld [vmem:[#allocation10 + $0x88] sm:$0xf0]  ;;  %v5150_v2 = vld [vmem:[#allocation10 + $0x144] sm:$0xf] }
 0x1aa   :  { %v5140_v59 = vld [vmem:[#allocation10 + $0xf4] sm:$0xf] }
 0x1ab   :  { %v4566_v63 = vor.u32 %v5140_v59, %v4563_v60  ;;  %2849 = vmatpush.bf16.msra.mxu0 %v4454_v16  ;;  %v4673_v59 = vld [vmem:[#allocation10 + $0x1d0] sm:$0xf]  ;;  %v5169_v60 = vld [vmem:[#allocation10 + $0x1d4] sm:$0xf0] }
 0x1ad   :  { %2856 = vmatpush.bf16.msra.mxu1 %v4566_v63  ;;  %2821 = vmatpush.bf16.msrb.mxu2 %v4594_v3  ;;  %v5128_v63 = vld [vmem:[#allocation10 + $0x94] sm:$0xf] }
 0x1ae   :  { %v4518_v3 = vor.u32 %v5128_v63, %v4515_v0  ;;  %v5166_v0 = vld [vmem:[#allocation10 + $0x1c4] sm:$0xf] }
 0x1af   :  { %v2313_v40 = vpop.f32.mrf.mxu1  ;;  %2850 = vmatpush.bf16.msra.mxu0 %v4446_v15  ;;  %v4649_v15 = vld [vmem:[#allocation10 + $0x1a0] sm:$0xf] }
 0x1b0   :  { %v4570_v40 = vor.u32 %v5143_v35, %v4569_v23  ;;  %v4641_v35 = vld [vmem:[#allocation10 + $0x190] sm:$0xf] }
 0x1b1   :  { %2857 = vmatpush.bf16.msra.mxu1 %v4558_v10  ;;  %2822 = vmatpush.bf16.msrb.mxu2 %v4586_v54  ;;  %v4665_v10 = vld [vmem:[#allocation10 + $0x1c0] sm:$0xf]  ;;  %v5126_v54 = vld [vmem:[#allocation10 + $0x84] sm:$0xf]  ;;  %v4642_v43 = vor.u32 %v5161_v37, %v4641_v35  ;;  %v5177_v35 = vld [vmem:[%s5782_s7 + $0x18] sm:$0xff] }
 0x1b2   :  { %v4666_v12 = vor.u32 %v5167_v11, %v4665_v10  ;;  %v4510_v16 = vor.u32 %v5126_v54, %v4507_v13  ;;  %v5162_v13 = vld [vmem:[#allocation10 + $0x1a4] sm:$0xf]  ;;  %v5189_v37 = vld [vmem:[%s5782_s7 + $0x78] sm:$0xff] }
 0x1b3   :  { %v5648_v39 = vpop.f32.mrf.mxu2 }
 0x1b4   :  { %v2221_v1 = vadd.f32 %v5648_v39, %v5639_v30  ;;  %v4606_v30 = vor.u32 %v5150_v2, %v4603_v17  ;;  %v4651_v2 = vld [vmem:[#allocation10 + $0x1a8] sm:$0xf0]  ;;  %v4643_v17 = vld [vmem:[#allocation10 + $0x198] sm:$0xf0] }
 0x1b5   :  { %2858 = vmatpush.bf16.msra.mxu1 %v4550_v22  ;;  %2823 = vmatpush.bf16.msrb.mxu2 %v4578_v26  ;;  %v5165_v22 = vld [vmem:[#allocation10 + $0x1b4] sm:$0xf0]  ;;  %v4595_v26 = vld [vmem:[#allocation10 + $0x138] sm:$0xf0] }
 0x1b6   :  { %v4598_v27 = vor.u32 %v5148_v24, %v4595_v26 }
 0x1b9   :  { %2859 = vmatpush.bf16.msra.mxu1 %v4542_v32  ;;  %2824 = vmatpush.bf16.msrb.mxu2 %v4570_v40  ;;  %v4650_v32 = vor.u32 %v5163_v28, %v4649_v15  ;;  %v5144_v40 = vld [vmem:[#allocation10 + $0x114] sm:$0xf] }
 0x1ba   :  { %v4582_v44 = vor.u32 %v5144_v40, %v4579_v41  ;;  %v5181_v28 = vld [vmem:[%s5782_s7 + $0x38] sm:$0xff] }
 0x1bb   :  { %v2222_v62 = vpop.f32.mrf.mxu2 }
 0x1bc   :  { %v4674_v62 = vor.u32 %v5169_v60, %v4673_v59  ;;  %v5168_v59 = vld [vmem:[#allocation10 + $0x1d4] sm:$0xf]  ;;  %v4675_v60 = vld [vmem:[#allocation10 + $0x1d8] sm:$0xf0] }
 0x1bd   :  { %2860 = vmatpush.bf16.msra.mxu1 %v4534_v47  ;;  %v5159_v47 = vld [vmem:[#allocation10 + $0x184] sm:$0xf0] }
 0x1be   :  { %2832 = vmatpush.bf16.msrb.mxu3 %v4674_v62  ;;  %v4634_v51 = vor.u32 %v5159_v47, %v4633_v46  ;;  %v4678_v62 = vor.u32 %v5168_v59, %v4675_v60  ;;  %v5175_v47 = vld [vmem:[%s5782_s7 + $0x8] sm:$0xff] }
 0x1c1   :  { %v5650_v45 = vpop.f32.mrf.mxu0  ;;  %2861 = vmatpush.bf16.msra.mxu1 %v4526_v57 }
 0x1c2   :  { %v2351_v31 = vadd.f32 %v5650_v45, %v1540_v18  ;;  %v4630_v45 = vor.u32 %v5156_v33, %v4627_v48  ;;  %2833 = vmatpush.bf16.msrb.mxu3 %v4666_v12  ;;  %v4657_v18 = vld [vmem:[#allocation10 + $0x1b0] sm:$0xf]  ;;  %v5142_v33 = vld [vmem:[#allocation10 + $0x104] sm:$0xf] }
 0x1c3   :  { %v5653_v20 = vpop.f32.mrf.mxu2  ;;  %v4658_v25 = vor.u32 %v5165_v22, %v4657_v18 }
 0x1c4   :  { %2869 = vmatpush.bf16.msra.mxu2 %v4630_v45  ;;  %v2273_v48 = vadd.f32 %v5653_v20, %v5643_v19  ;;  %v5172_v45 = vld [vmem:[#allocation10 + $0x1f4] sm:$0xf] }
 0x1c5   :  { %2862 = vmatpush.bf16.msra.mxu1 %v4518_v3  ;;  %v4694_v55 = vor.u32 %v5172_v45, %v4691_v50 }
 0x1c6   :  { %2834 = vmatpush.bf16.msrb.mxu3 %v4658_v25 }
 0x1c7   :  { %v2363_v34 = vpop.f32.mrf.mxu1 }
 0x1c8   :  { %v5656_v38 = vadd.f32 %v2363_v34, %v2351_v31  ;;  %2870 = vmatpush.bf16.msra.mxu2 %v4622_v36  ;;  %v5146_v31 = vld [vmem:[#allocation10 + $0x124] sm:$0xf]  ;;  %v4587_v34 = vld [vmem:[#allocation10 + $0x128] sm:$0xf0] }
 0x1c9   :  { %v2352_v7 = vpop.f32.mrf.mxu0  ;;  %2863 = vmatpush.bf16.msra.mxu1 %v4510_v16  ;;  %v4590_v23 = vor.u32 %v5146_v31, %v4587_v34  ;;  %v5170_v36 = vld [vmem:[#allocation10 + $0x1e4] sm:$0xf]  ;;  %v5160_v16 = vld [vmem:[#allocation10 + $0x194] sm:$0xf]  ;;  %v5180_v31 = vld [vmem:[%s5782_s7 + $0x30] sm:$0xff] }
 0x1ca   :  { %v4614_v7 = vor.u32 %v5152_v61, %v4611_v4  ;;  %2835 = vmatpush.bf16.msrb.mxu3 %v4650_v32  ;;  %v4667_v61 = vld [vmem:[#allocation10 + $0x1c8] sm:$0xf0] }
 0x1cb   :  { %v2274_v49 = vpop.f32.mrf.mxu2  ;;  %v4670_v3 = vor.u32 %v5166_v0, %v4667_v61 }
 0x1cc   :  { %2871 = vmatpush.bf16.msra.mxu2 %v4614_v7  ;;  %v4571_v49 = vld [vmem:[#allocation10 + $0x108] sm:$0xf0]  ;;  %v5164_v7 = vld [vmem:[#allocation10 + $0x1b4] sm:$0xf] }
 0x1cd   :  { %v4574_v53 = vor.u32 %v5142_v33, %v4571_v49  ;;  %v5187_v33 = vld [vmem:[%s5782_s7 + $0x68] sm:$0xff]  ;;  %v5186_v49 = vld [vmem:[%s5782_s7 + $0x60] sm:$0xff] }
 0x1ce   :  { %2836 = vmatpush.bf16.msrb.mxu3 %v4642_v43  ;;  %v5176_v43 = vld [vmem:[%s5782_s7 + $0x10] sm:$0xff] }
 0x1cf   :  { %v2365_v58 = vpop.f32.mrf.mxu1 }
 0x1d0   :  { %2872 = vmatpush.bf16.msra.mxu2 %v4606_v30  ;;  %v4683_v58 = vld [vmem:[#allocation10 + $0x1e8] sm:$0xf0] }
 0x1d1   :  { %v4686_v19 = vor.u32 %v5170_v36, %v4683_v58  ;;  %v5197_v58 = vld [vmem:[%s5784_s9 + $0x38] sm:$0xff] }
 0x1d2   :  { %2837 = vmatpush.bf16.msrb.mxu3 %v4634_v51 }
 0x1d3   :  { %v5660_v6 = vpop.f32.mrf.mxu2 }
 0x1d4   :  { %2873 = vmatpush.bf16.msra.mxu2 %v4598_v27 }
 0x1d5   :  { %v2233_v5 = vpop.f32.mrf.mxu3 }
 0x1d6   :  { %v2234_v8 = vadd.f32 %v2233_v5, %v2221_v1  ;;  %2882 = vmatpush.bf16.msra.mxu3 %v4694_v55  ;;  %v2325_v1 = vadd.f32 %v5660_v6, %v5646_v21  ;;  %v4646_v21 = vor.u32 %v5160_v16, %v4643_v17  ;;  %v5158_v6 = vld [vmem:[#allocation10 + $0x184] sm:$0xf]  ;;  %v5182_v55 = vld [vmem:[%s5782_s7 + $0x40] sm:$0xff]  ;;  %v5193_v16 = vld [vmem:[%s5784_s9 + $0x18] sm:$0xff] }
 0x1d7   :  { %v5192_v17 = vld [vmem:[%s5784_s9 + $0x10] sm:$0xff] }
 0x1d8   :  { %v2393_v14 = vmax.f32 %v2234_v8, 0.0  ;;  %2874 = vmatpush.bf16.msra.mxu2 %v4590_v23  ;;  %v4659_v8 = vld [vmem:[#allocation10 + $0x1b8] sm:$0xf0] }
 0x1d9   :  { %v4662_v11 = vor.u32 %v5164_v7, %v4659_v8  ;;  %v5178_v23 = vld [vmem:[%s5782_s7 + $0x20] sm:$0xff] }
 0x1da   :  { %v2462_v39 = vpack.c.bf16 %v2393_v14, %v2393_v14  ;;  %2883 = vmatpush.bf16.msra.mxu3 %v4686_v19  ;;  %v4654_v14 = vor.u32 %v5162_v13, %v4651_v2  ;;  %v5196_v19 = vld [vmem:[%s5784_s9 + $0x30] sm:$0xff]  ;;  %v5195_v2 = vld [vmem:[%s5784_s9 + $0x28] sm:$0xff] }
 0x1db   :  { %v2326_v9 = vpop.f32.mrf.mxu2 }
 0x1dc   :  { %2799 = vmatmul.bf16.vlgmr.msrb.gmra.mxu0 %v2462_v39  ;;  %2875 = vmatpush.bf16.msra.mxu2 %v4582_v44  ;;  %v5188_v44 = vld [vmem:[%s5782_s7 + $0x70] sm:$0xff] }
 0x1dd   :  { %v2235_v29 = vpop.f32.mrf.mxu3  ;;  %3031 = vmatpush.bf16.msrb.mxu0 %v5181_v28 }
 0x1de   :  { %2884 = vmatpush.bf16.msra.mxu3 %v4678_v62 }
 0x1e0   :  { %2876 = vmatpush.bf16.msra.mxu2 %v4574_v53  ;;  %v5183_v53 = vld [vmem:[%s5782_s7 + $0x48] sm:$0xff] }
 0x1e1   :  { %3032 = vmatpush.bf16.msrb.mxu0 %v5180_v31  ;;  %v5198_v31 = vld [vmem:[%s5786_s11] sm:$0xff] }
 0x1e2   :  { %2885 = vmatpush.bf16.msra.mxu3 %v4670_v3 }
 0x1e5   :  { %v2285_v42 = vpop.f32.mrf.mxu3 }
 0x1e6   :  { %v2286_v52 = vadd.f32 %v2285_v42, %v2273_v48  ;;  %2886 = vmatpush.bf16.msra.mxu3 %v4662_v11  ;;  %v5174_v48 = vld [vmem:[%s5782_s7] sm:$0xff]  ;;  %v5185_v42 = vld [vmem:[%s5782_s7 + $0x58] sm:$0xff] }
 0x1e8   :  { %v2394_v56 = vmax.f32 %v2286_v52, 0.0  ;;  %v5184_v52 = vld [vmem:[%s5782_s7 + $0x50] sm:$0xff] }
 0x1ea   :  { %v2463_v57 = vpack.c.bf16 %v2394_v56, %v2394_v56  ;;  %2887 = vmatpush.bf16.msra.mxu3 %v4654_v14  ;;  %v5194_v14 = vld [vmem:[%s5784_s9 + $0x20] sm:$0xff] }
 0x1ec   :  { %2812 = vmatmul.bf16.vlgmr.msrb.gmra.mxu1 %v2463_v57  ;;  %2851 = vmatmul.bf16.vlgmr.msra.gmra.mxu0 %v2462_v39  ;;  %v4635_v39 = vld [vmem:[#allocation10 + $0x188] sm:$0xf0] }
 0x1ed   :  { %v2287_v20 = vpop.f32.mrf.mxu3  ;;  %v4638_v18 = vor.u32 %v5158_v6, %v4635_v39  ;;  %3044 = vmatpush.bf16.msrb.mxu1 %v5189_v37  ;;  %v5201_v6 = vld [vmem:[%s5786_s11 + $0x18] sm:$0xff]  ;;  %v5200_v39 = vld [vmem:[%s5786_s11 + $0x10] sm:$0xff] }
 0x1ee   :  { %2888 = vmatpush.bf16.msra.mxu3 %v4646_v21  ;;  %v5190_v21 = vld [vmem:[%s5784_s9] sm:$0xff] }
 0x1f1   :  { %3045 = vmatpush.bf16.msrb.mxu1 %v5188_v44  ;;  %v5219_v44 = vld [vmem:[%s5787_s12] ss:$0 sm:$0xff] }
 0x1f2   :  { %2889 = vmatpush.bf16.msra.mxu3 %v4638_v18  ;;  %v5199_v18 = vld [vmem:[%s5786_s11 + $0x8] sm:$0xff] }
 0x1f3   :  { %v2376_v63 = vpop.f32.mrf.mxu2 }
 0x1f4   :  { %v2377_v22 = vadd.f32 %v2376_v63, %v5656_v38  ;;  %v5179_v38 = vld [vmem:[%s5782_s7 + $0x28] sm:$0xff] }
 0x1f5   :  { %v2337_v4 = vpop.f32.mrf.mxu3  ;;  %3033 = vmatpush.bf16.msrb.mxu0 %v5179_v38  ;;  %3046 = vmatpush.bf16.msrb.mxu1 %v5187_v33  ;;  %v5203_v38 = vld [vmem:[%s5788_s13 + $0x8] sm:$0xff] }
 0x1f6   :  { %v2338_v5 = vadd.f32 %v2337_v4, %v2325_v1 }
 0x1f8   :  { %v2395_v10 = vmax.f32 %v2338_v5, 0.0 }
 0x1f9   :  { %3034 = vmatpush.bf16.msrb.mxu0 %v5178_v23  ;;  %3047 = vmatpush.bf16.msrb.mxu1 %v5186_v49 }
 0x1fa   :  { %v2464_v12 = vpack.c.bf16 %v2395_v10, %v2395_v10 }
 0x1fb   :  { %v2378_v54 = vpop.f32.mrf.mxu2 }
 0x1fc   :  { %2825 = vmatmul.bf16.vlgmr.msrb.gmra.mxu2 %v2464_v12  ;;  %2864 = vmatmul.bf16.vlgmr.msra.gmra.mxu1 %v2463_v57  ;;  %v2461_v57 = vld [vmem:[#allocation11] sm:$0x3] }
 0x1fd   :  { %v2339_v30 = vpop.f32.mrf.mxu3  ;;  %3035 = vmatpush.bf16.msrb.mxu0 %v5177_v35  ;;  %3048 = vmatpush.bf16.msrb.mxu1 %v5185_v42  ;;  %v2467_v36 = vperm.slane %v2461_v57, 0  ;;  %v2468_v3 = vperm.slane %v2461_v57, 1 }
 0x1fe   :  { %3127 = vmatpush.bf16.msrb.mxu2 %v5197_v58  ;;  %v5191_v30 = vld [vmem:[%s5784_s9 + $0x8] sm:$0xff] }
 0x201   :  { %3036 = vmatpush.bf16.msrb.mxu0 %v5176_v43  ;;  %3049 = vmatpush.bf16.msrb.mxu1 %v5184_v52  ;;  %v5204_v43 = vld [vmem:[%s5790_s15] sm:$0xff] }
 0x202   :  { %3128 = vmatpush.bf16.msrb.mxu2 %v5196_v19 }
 0x205   :  { %3037 = vmatpush.bf16.msrb.mxu0 %v5175_v47  ;;  %3050 = vmatpush.bf16.msrb.mxu1 %v5183_v53 }
 0x206   :  { %3129 = vmatpush.bf16.msrb.mxu2 %v5195_v2 }
 0x209   :  { %3038 = vmatpush.bf16.msrb.mxu0 %v5174_v48  ;;  %3051 = vmatpush.bf16.msrb.mxu1 %v5182_v55  ;;  %v5221_v55 = vld [vmem:[%s5791_s16] ss:$0 sm:$0xff] }
 0x20a   :  { %3130 = vmatpush.bf16.msrb.mxu2 %v5194_v14 }
 0x20c   :  { %2877 = vmatmul.bf16.vlgmr.msra.gmra.mxu2 %v2464_v12 }
 0x20d   :  { %3259 = vmatpush.bf16.msra.mxu0 %v5204_v43 }
 0x20e   :  { %3131 = vmatpush.bf16.msrb.mxu2 %v5193_v16 }
 0x212   :  { %3132 = vmatpush.bf16.msrb.mxu2 %v5192_v17 }
 0x215   :  { %v2389_v25 = vpop.f32.mrf.mxu3 }
 0x216   :  { %v2390_v24 = vadd.f32 %v2389_v25, %v2377_v22  ;;  %3133 = vmatpush.bf16.msrb.mxu2 %v5191_v30 }
 0x218   :  { %v2396_v26 = vmax.f32 %v2390_v24, 0.0  ;;  %v5217_v24 = vld [vmem:[%s5783_s8] ss:$0 sm:$0xff] }
 0x21a   :  { %v2465_v27 = vpack.c.bf16 %v2396_v26, %v2396_v26  ;;  %3134 = vmatpush.bf16.msrb.mxu2 %v5190_v21 }
 0x21c   :  { %2838 = vmatmul.bf16.vlgmr.msrb.gmra.mxu3 %v2465_v27 }
 0x21d   :  { %v2391_v29 = vpop.f32.mrf.mxu3  ;;  %3186 = vmatpush.bf16.msrb.mxu3 %v5201_v6 }
 0x221   :  { %3187 = vmatpush.bf16.msrb.mxu3 %v5200_v39 }
 0x225   :  { %3188 = vmatpush.bf16.msrb.mxu3 %v5199_v18 }
 0x229   :  { %3189 = vmatpush.bf16.msrb.mxu3 %v5198_v31 }
 0x22c   :  { %2890 = vmatmul.bf16.vlgmr.msra.gmra.mxu3 %v2465_v27 }
 0x22d   :  { %3227 = vmatpush.bf16.msra.mxu3 %v5203_v38 }
 0x259   :  { %v2800_v9 = vpop.f32.mrf.mxu0 }
 0x25a   :  { %v2801_v20 = vadd.f32 %v2800_v9, %v2467_v36 }
 0x261   :  { %v2802_v15 = vpop.f32.mrf.mxu0 }
 0x269   :  { %v2813_v32 = vpop.f32.mrf.mxu1  ;;  %v2852_v34 = vpop.f32.mrf.mxu0 }
 0x26a   :  { %v2814_v60 = vadd.f32 %v2813_v32, %v2801_v20  ;;  %v2853_v5 = vadd.f32 %v2852_v34, %v2468_v3  ;;  %v5202_v32 = vld [vmem:[%s5788_s13] sm:$0xff]  ;;  %v5218_v34 = vld [vmem:[#allocation13] ss:$0 sm:$0xff] }
 0x26b   :  { %3228 = vmatpush.bf16.msra.mxu3 %v5202_v32 }
 0x271   :  { %v2815_v40 = vpop.f32.mrf.mxu1  ;;  %v2854_v41 = vpop.f32.mrf.mxu0 }
 0x279   :  { %v2865_v46 = vpop.f32.mrf.mxu1 }
 0x27a   :  { %v2866_v7 = vadd.f32 %v2865_v46, %v2853_v5 }
 0x27f   :  { %v2826_v45 = vpop.f32.mrf.mxu2 }
 0x280   :  { %v2827_v62 = vadd.f32 %v2826_v45, %v2814_v60  ;;  %v5220_v45 = vld [vmem:[%s5789_s14] ss:$0 sm:$0xff] }
 0x281   :  { %v2867_v50 = vpop.f32.mrf.mxu1 }
 0x287   :  { %v2828_v51 = vpop.f32.mrf.mxu2 }
 0x28f   :  { %v2878_v56 = vpop.f32.mrf.mxu2 }
 0x290   :  { %v2879_v8 = vadd.f32 %v2878_v56, %v2866_v7 }
 0x297   :  { %v2880_v59 = vpop.f32.mrf.mxu2 }
 0x29f   :  { %v2839_v63 = vpop.f32.mrf.mxu3 }
 0x2a0   :  { %v2840_v0 = vadd.f32 %v2839_v63, %v2827_v62 }
 0x2a2   :  { %v2895_v61 = vmax.f32 %v2840_v0, 0.0 }
 0x2a4   :  { %v2930_v1 = vpack.c.bf16 %v2895_v61, %v2895_v61 }
 0x2a6   :  { %3039 = vmatmul.bf16.vlgmr.msrb.gmra.mxu0 %v2930_v1 }
 0x2a7   :  { %v2841_v4 = vpop.f32.mrf.mxu3 }
 0x2af   :  { %v2891_v10 = vpop.f32.mrf.mxu3 }
 0x2b0   :  { %v2892_v11 = vadd.f32 %v2891_v10, %v2879_v8 }
 0x2b2   :  { %v2896_v12 = vmax.f32 %v2892_v11, 0.0 }
 0x2b4   :  { %v2931_v54 = vpack.c.bf16 %v2896_v12, %v2896_v12 }
 0x2b6   :  { %3052 = vmatmul.bf16.vlgmr.msrb.gmra.mxu1 %v2931_v54 }
 0x2b7   :  { %v2893_v13 = vpop.f32.mrf.mxu3 }
 0x323   :  { %v3040_v22 = vpop.f32.mrf.mxu0 }
 0x324   :  { %v3041_v26 = vadd.f32 %v5217_v24, %v3040_v22 }
 0x32b   :  { %v3042_v25 = vpop.f32.mrf.mxu0 }
 0x333   :  { %v3053_v27 = vpop.f32.mrf.mxu1 }
 0x334   :  { %v3054_v29 = vadd.f32 %v3053_v27, %v3041_v26 }
 0x336   :  { %v3057_v9 = vmax.f32 %v3054_v29, 0.0 }
 0x338   :  { %v3075_v15 = vpack.c.bf16 %v3057_v9, %v3057_v9 }
 0x33a   :  { %3135 = vmatmul.bf16.vlgmr.msrb.gmra.mxu2 %v3075_v15 }
 0x33b   :  { %v3055_v28 = vpop.f32.mrf.mxu1 }
 0x3bd   :  { %v3136_v23 = vpop.f32.mrf.mxu2 }
 0x3be   :  { %v3137_v35 = vadd.f32 %v5218_v34, %v3136_v23 }
 0x3c0   :  { %v3140_v37 = vmax.f32 %v3137_v35, 0.0 }
 0x3c2   :  { %v3150_v40 = vpack.c.bf16 %v3140_v37, %v3140_v37 }
 0x3c4   :  { %4807 = vmatmul.msk.bf16.vlgmr.msrb.gmra.mxu3 %vm3178_vm0, %v3150_v40 }
 0x3c5   :  { %v3138_v41 = vpop.f32.mrf.mxu2 }
 0x447   :  { %v3191_v46 = vpop.f32.mrf.mxu3 }
 0x448   :  { %v3192_v47 = vadd.f32 %v5219_v44, %v3191_v46 }
 0x44a   :  { %v3195_v33 = vmax.f32 %v3192_v47, 0.0 }
 0x44c   :  { %v3201_v48 = vpack.c.bf16 %v3195_v33, %v3195_v33 }
 0x44e   :  { %4816 = vmatmul.msk.bf16.vlgmr.msra.gmra.mxu3 %vm3217_vm1, %v3201_v48 }
 0x44f   :  { %v3193_v49 = vpop.f32.mrf.mxu3 }
 0x4d1   :  { %v3230_v50 = vpop.f32.mrf.mxu3 }
 0x4d2   :  { %v3231_v42 = vadd.f32 %v5220_v45, %v3230_v50 }
 0x4d4   :  { %v3234_v52 = vmax.f32 %v3231_v42, 0.0 }
 0x4d6   :  { %v3238_v51 = vpack.c.bf16 %v3234_v52, %v3234_v52 }
 0x4d8   :  { %4821 = vmatmul.msk.bf16.vlgmr.msra.gmra.mxu0 %vm3248_vm2, %v3238_v51 }
 0x4d9   :  { %v3232_v53 = vpop.f32.mrf.mxu3 }
 0x555   :  { %v3261_v56 = vpop.f32.mrf.mxu0 }
 0x556   :  { %v3262_v57 = vadd.f32 %v5221_v55, %v3261_v56 }
 0x558   :  { %v3265_v36 = vmax.f32 %v3262_v57, 0.0 }
 0x55a   :  { %3266 = vst [vmem:[#allocation14] sm:$0xff] %v3265_v36 }
 0x55b   :  { %3277 = dma.vmem_to_hbm [thread:$0]  %s3273_s2, 128, %s3275_s23, [#allocation4]  }
 0x55d   :  { %v3263_v58 = vpop.f32.mrf.mxu0 }
 0x55e   :  { %5422 = dma.done.wait [#allocation4], 128  }
 0x55f   :  { %5423 = vsyncadd [#allocation4], 4294967168 }
 0x560   :  { %3282 = vsyncpa [#allocation3], 1 }
 0x561   :  { %3283 = vsyncpa [#allocation6], 1 }
 0x562   :  { %3284 = vsyncpa [#allocation9], 1 }
 0x563   :  { %3285 = vsyncpa [#allocation12], 1 }
 0x564   :  { %3286 = vsyncpa [#allocation4], 1 }

</bundles_post_ra>
